<compile_context>
chip_gen: v7x
topology: tpu7x:2x2x1
jax: 0.10.0
libtpu: 0.0.40
codegen_flags: <defaults>
</compile_context>

<pallas_src>
import functools

import jax
import jax.numpy as jnp
from jax.experimental import pallas as pl
from jax.experimental.pallas import tpu as pltpu


# --------------------------------- kernel ------------------------------------

def _crf_forward_kernel(*refs, start_idx, has_weights, unroll):
    if has_weights:
        (maxlen_ref,      # SMEM (n_tiles,) i32 : per-tile max sequence length
         emis_ref,        # VMEM (St, L, Bt) f32: emissions, batch on lanes
         mask_ref,        # VMEM (St, L, Bt) i8 : 0/1 tag mask
         w_ref,           # VMEM (St, L, Bt) f32: marginal weights
         lens_ref,        # VMEM (1, Bt) i32    : sequence lengths
         etransT_ref,     # VMEM (L, L) f32     : exp(transition)^T [curr, prev]
         end_ref,         # VMEM (L, 1) f32     : transition[:, end_idx]
         out_ref,         # VMEM (2, Bt) f32    : [unlabeled; labeled]
         alpha_scr) = refs  # VMEM (2, L, Bt) f32 scratch (carry across chunks)
    else:
        (maxlen_ref, emis_ref, mask_ref, lens_ref,
         etransT_ref, end_ref, out_ref, alpha_scr) = refs
        w_ref = None

    St, L, Bt = emis_ref.shape
    neg_inf = jnp.float32(-jnp.inf)
    bt = pl.program_id(0)
    ct = pl.program_id(1)
    n_ct = pl.num_programs(1)
    chunk_base = ct * St

    # Chunk 0: virtual "t = -1" carry, one-hot (in log space) at the START
    # label, so the standard recursion applied at t=0 reproduces
    # alpha0 = transition[start, :] + emission[0] (+ log-mask + weights).
    @pl.when(ct == 0)
    def _():
        lbl = jax.lax.broadcasted_iota(jnp.int32, (L, Bt), 0)
        init = jnp.where(lbl == start_idx, 0.0, neg_inf).astype(jnp.float32)
        alpha_scr[0] = init
        alpha_scr[1] = init

    etrans_b = etransT_ref[...][:, :, None]          # (Lc, Lp, 1), hoisted relayout
    lens = lens_ref[...]                             # (1, Bt)

    # Skip whole chunks that lie past every sequence in this batch tile.
    @pl.when(chunk_base < maxlen_ref[bt])
    def _():
        def lse_step(a):                              # a: (Lp, Bt)
            # Factored logsumexp over the previous label (sublane axis):
            # exp() on the carry only; transitions were exponentiated once
            # in the wrapper.  Keeps the max==-inf -> 0 clamp of
            # log_sum_exp_pytorch.
            m = jnp.max(a, axis=0, keepdims=True)     # (1, Bt)  XLU
            m0 = jnp.where(m == neg_inf, 0.0, m)
            ea = jnp.exp(a - m0)                      # (Lp, Bt) 1 EUP vreg
            s = jnp.sum(etrans_b * ea[None, :, :], axis=1)   # (Lc, Bt) VPU+XLU
            return m0 + jnp.log(s)                    # 1 EUP vreg

        def body(i, carry):
            a_u, a_l = carry                          # each (L, Bt)
            emis_t = emis_ref[i]                      # (L, Bt) f32
            mf = mask_ref[i].astype(jnp.float32)      # i8 -> f32, then select
            lm_t = jnp.where(mf == 0.0, neg_inf, 0.0)
            if w_ref is not None:
                lm_t = lm_t + w_ref[i]
            n_u = lse_step(a_u) + emis_t
            n_l = lse_step(a_l) + emis_t + lm_t
            # Freeze lanes whose sequence already ended (t >= len), so the
            # carry equals alpha at time len-1 for every sequence.
            keep = (chunk_base + i) < lens            # (1, Bt)
            return (jnp.where(keep, n_u, a_u), jnp.where(keep, n_l, a_l))

        a_u, a_l = jax.lax.fori_loop(0, St, body, (alpha_scr[0], alpha_scr[1]),
                                     unroll=unroll)
        alpha_scr[0] = a_u
        alpha_scr[1] = a_l

    # Termination: add transition into STOP, reduce over labels (sublanes).
    @pl.when(ct == n_ct - 1)
    def _():
        end_col = end_ref[...]                        # (L, 1)

        def final(a):
            last = a + end_col
            m = jnp.max(last, axis=0, keepdims=True)
            m0 = jnp.where(m == neg_inf, 0.0, m)
            return m0 + jnp.log(jnp.sum(jnp.exp(last - m0), axis=0, keepdims=True))

        out_ref[...] = jnp.concatenate(
            [final(alpha_scr[0]), final(alpha_scr[1])], axis=0)   # (2, Bt)


# -------------------------------- wrapper -------------------------------------

def linear_crf_partial_forward(encoder_scores, word_seq_lens, label_tag_mask,
                               transition, *, start_idx, end_idx, weights=None,
                               batch_tile=128, time_chunk=128):
    """Returns (unlabeled_score, labeled_score): scalars summed over the batch,
    matching LinearCRFpartial.forward semantics."""
    B, S, L = encoder_scores.shape
    f32 = jnp.float32
    Bt = batch_tile
    n_tiles = (B + Bt - 1) // Bt
    Bp = n_tiles * Bt
    St = int(min(time_chunk, S))
    n_chunks = (S + St - 1) // St
    Sp = n_chunks * St

    emis = encoder_scores.astype(f32)
    mask = (label_tag_mask != 0).astype(jnp.int8)     # 4x smaller HBM stream
    lens = word_seq_lens.reshape(B).astype(jnp.int32)
    w = None if weights is None else weights.astype(f32)

    # Pad batch to a multiple of the lane tile; padded lanes get len=1 and
    # finite scores (0 emission, mask=1) so the recursion stays NaN-free;
    # their outputs are discarded below.
    if Bp != B:
        pad = Bp - B
        emis = jnp.pad(emis, ((0, pad), (0, 0), (0, 0)))
        mask = jnp.pad(mask, ((0, pad), (0, 0), (0, 0)), constant_values=1)
        lens = jnp.pad(lens, (0, pad), constant_values=1)
        if w is not None:
            w = jnp.pad(w, ((0, pad), (0, 0), (0, 0)))

    # Lane-major layout: batch on the 128-lane axis, labels on sublanes.
    emis_t = jnp.transpose(emis, (1, 2, 0))           # (S, L, Bp)
    mask_t = jnp.transpose(mask, (1, 2, 0))           # (S, L, Bp) i8
    w_t = None if w is None else jnp.transpose(w, (1, 2, 0))
    if Sp != S:                                       # pad time to chunk multiple
        ps = Sp - S
        emis_t = jnp.pad(emis_t, ((0, ps), (0, 0), (0, 0)))
        mask_t = jnp.pad(mask_t, ((0, ps), (0, 0), (0, 0)), constant_values=1)
        if w_t is not None:
            w_t = jnp.pad(w_t, ((0, ps), (0, 0), (0, 0)))

    lens2 = lens.reshape(1, Bp)
    tile_max_len = jnp.max(lens.reshape(n_tiles, Bt), axis=1).astype(jnp.int32)

    trans = transition.astype(f32)
    etransT = jnp.exp(trans).T                        # exp(transition)^T [curr, prev]
    end_col = trans[:, end_idx].reshape(L, 1)         # transition[c, end] (log domain)

    has_w = w_t is not None
    unroll = St if St <= 32 else 8
    kernel = functools.partial(_crf_forward_kernel, start_idx=int(start_idx),
                               has_weights=has_w, unroll=unroll)

    in_specs = [
        pl.BlockSpec((St, L, Bt), lambda bt, ct, ml: (ct, 0, bt)),   # emissions
        pl.BlockSpec((St, L, Bt), lambda bt, ct, ml: (ct, 0, bt)),   # i8 tag mask
    ]
    inputs = [emis_t, mask_t]
    if has_w:
        in_specs.append(pl.BlockSpec((St, L, Bt), lambda bt, ct, ml: (ct, 0, bt)))
        inputs.append(w_t)
    in_specs += [
        pl.BlockSpec((1, Bt), lambda bt, ct, ml: (0, bt)),           # seq lens
        pl.BlockSpec((L, L), lambda bt, ct, ml: (0, 0)),             # exp(trans)^T
        pl.BlockSpec((L, 1), lambda bt, ct, ml: (0, 0)),             # end column
    ]
    inputs += [lens2, etransT, end_col]

    # Explicit scoped-VMEM budget derived from the chunked block sizes
    # (2 pipeline buffers per stream + scratch, with headroom).
    stream_bytes = St * L * Bt * (4 + 1 + (4 if has_w else 0))
    vmem_limit = int(min(64 << 20, max(16 << 20, 4 * stream_bytes + (4 << 20))))

    # TODO(synk): when n_tiles == 1 on v7x, the unlabeled/labeled recursions
    # could be split onto a size-2 parallel grid axis so both TensorCores work.
    out = pl.pallas_call(
        kernel,
        out_shape=jax.ShapeDtypeStruct((n_tiles, 2, Bt), f32),
        grid_spec=pltpu.PrefetchScalarGridSpec(
            num_scalar_prefetch=1,
            grid=(n_tiles, n_chunks),
            in_specs=in_specs,
            out_specs=pl.BlockSpec((None, 2, Bt), lambda bt, ct, ml: (bt, 0, 0)),
            scratch_shapes=[pltpu.VMEM((2, L, Bt), f32)],
        ),
        compiler_params=pltpu.CompilerParams(
            dimension_semantics=("parallel", "arbitrary"),
            vmem_limit_bytes=vmem_limit),
    )(tile_max_len, *inputs)

    # (n_tiles, 2, Bt) -> (2, Bp); drop padded lanes, sum over the real batch.
    z = jnp.transpose(out, (1, 0, 2)).reshape(2, Bp)[:, :B]
    return jnp.sum(z[0]), jnp.sum(z[1])


# --------------------------- pure-JAX reference -------------------------------

def reference_forward(encoder_scores, word_seq_lens, label_tag_mask,
                      transition, start_idx, end_idx, weights=None):
    B, S, L = encoder_scores.shape
    all_scores = transition[None, None] + encoder_scores[:, :, None, :]
    log_mask = jnp.log(label_tag_mask.astype(jnp.float32))
    w = jnp.zeros((B, S, L), jnp.float32) if weights is None else weights
    lens = word_seq_lens.reshape(B)

    def lse(x, axis):
        m = jnp.max(x, axis=axis, keepdims=True)
        m0 = jnp.where(m == -jnp.inf, 0.0, m)
        return jnp.squeeze(m0, axis) + jnp.log(jnp.sum(jnp.exp(x - m0), axis=axis))

    alpha_u = all_scores[:, 0, start_idx, :]
    alpha_l = alpha_u + log_mask[:, 0, :] + w[:, 0, :]
    last_u, last_l = alpha_u, alpha_l
    for t in range(1, S):
        au = lse(alpha_u[:, :, None] + all_scores[:, t], axis=1)
        al = lse(alpha_l[:, :, None] + all_scores[:, t], axis=1) + log_mask[:, t] + w[:, t]
        is_last = (t == lens - 1)[:, None]
        last_u = jnp.where(is_last, au, last_u)
        last_l = jnp.where(is_last, al, last_l)
        alpha_u, alpha_l = au, al

    end_row = transition[:, end_idx][None, :]
    zu = lse(last_u + end_row, axis=1)
    zl = lse(last_l + end_row, axis=1)
    return jnp.sum(zu), jnp.sum(zl)


# ----------------------------------- main --------------------------------------

if __name__ == "__main__":
    # Deterministic synthetic config (mirrors LinearCRFpartial.__init__).
    labels = ["O", "B-X", "I-X", "E-X", "S-X", "<START>", "<STOP>", "<PAD>"]
    L = len(labels)                      # label_size = 8
    start_idx, end_idx, pad_idx = 5, 6, 7
    B, S = 2, 8

    key = jax.random.PRNGKey(0)
    k_trans, k_emis, k_mask, k_w = jax.random.split(key, 4)

    transition = jax.random.normal(k_trans, (L, L), jnp.float32)
    transition = transition.at[:, start_idx].set(-10000.0)
    transition = transition.at[end_idx, :].set(-10000.0)
    transition = transition.at[:, pad_idx].set(-10000.0)
    transition = transition.at[pad_idx, :].set(-10000.0)

    encoder_scores = jax.random.normal(k_emis, (B, S, L), jnp.float32)
    word_seq_lens = jnp.array([[S], [5]], jnp.int32)            # (B, 1) as in the module
    label_tag_mask = (jax.random.uniform(k_mask, (B, S, L)) > 0.5).astype(jnp.float32)
    label_tag_mask = label_tag_mask.at[:, :, 0].set(1.0)        # >=1 valid tag per position
    weights = 0.1 * jax.random.normal(k_w, (B, S, L), jnp.float32)

    fwd = jax.jit(functools.partial(linear_crf_partial_forward,
                                    start_idx=start_idx, end_idx=end_idx))

    # Path 1: weights=None (forward_unlabeled + forward_labeled).
    unlab, lab = fwd(encoder_scores, word_seq_lens, label_tag_mask, transition)
    jax.block_until_ready((unlab, lab))
    ref_u, ref_l = reference_forward(encoder_scores, word_seq_lens, label_tag_mask,
                                     transition, start_idx, end_idx)
    assert bool(jnp.allclose(unlab, ref_u, rtol=1e-5, atol=1e-3)), (unlab, ref_u)
    assert bool(jnp.allclose(lab, ref_l, rtol=1e-5, atol=1e-3)), (lab, ref_l)

    # Path 2: with marginal weights (forward_labeled_with_marginal).
    unlab_w, lab_w = fwd(encoder_scores, word_seq_lens, label_tag_mask, transition,
                         weights=weights)
    jax.block_until_ready((unlab_w, lab_w))
    ref_uw, ref_lw = reference_forward(encoder_scores, word_seq_lens, label_tag_mask,
                                       transition, start_idx, end_idx, weights)
    assert bool(jnp.allclose(unlab_w, ref_uw, rtol=1e-5, atol=1e-3)), (unlab_w, ref_uw)
    assert bool(jnp.allclose(lab_w, ref_lw, rtol=1e-5, atol=1e-3)), (lab_w, ref_lw)

    # TODO(synk): decode / constrained viterbi / backward_score / marginal are
    # not part of forward() and are not implemented here.
    # TODO(synk): sequences with word_seq_len == 0 keep the virtual START carry
    # (degenerate case; the PyTorch module's gather at index -1 is undefined).
    print("KERNEL_OK")
</pallas_src>

<mosaic_0001>
module attributes {stable_mosaic.version = 11 : i64} {
  func.func @_crf_forward_kernel(%arg0: i32, %arg1: i32, %arg2: memref<1xi32, #tpu.memory_space<smem>>, %arg3: memref<8x8x128xf32, #tpu.memory_space<vmem>>, %arg4: memref<8x8x128xi8, #tpu.memory_space<vmem>>, %arg5: memref<1x128xi32, #tpu.memory_space<vmem>>, %arg6: memref<8x8xf32, #tpu.memory_space<vmem>>, %arg7: memref<8x1xf32, #tpu.memory_space<vmem>>, %arg8: memref<1x2x128xf32, #tpu.memory_space<vmem>>, %arg9: memref<2x8x128xf32, #tpu.memory_space<vmem>>) attributes {dimension_semantics = [#tpu.dimension_semantics<parallel>, #tpu.dimension_semantics<arbitrary>], iteration_bounds = array<i64: 1, 1>, scalar_prefetch = 1 : i64, scratch_operands = 1 : i64, tpu.core_type = #tpu.core_type<tc>, window_params = [{transform_indices = @transform_0, window_bounds = array<i64: 8, 8, 128>}, {transform_indices = @transform_1, window_bounds = array<i64: 8, 8, 128>}, {transform_indices = @transform_2, window_bounds = array<i64: 1, 128>}, {pipeline_mode = #tpu.pipeline_mode<synchronous>, transform_indices = @transform_3, window_bounds = array<i64: 8, 8>}, {pipeline_mode = #tpu.pipeline_mode<synchronous>, transform_indices = @transform_4, window_bounds = array<i64: 8, 1>}, {transform_indices = @transform_5, window_bounds = array<i64: 1, 2, 128>}]} {
    %c8_i32 = arith.constant 8 : i32
    %0 = arith.muli %arg1, %c8_i32 : i32
    %c0_i32 = arith.constant 0 : i32
    %1 = arith.cmpi eq, %arg1, %c0_i32 : i32
    %2 = arith.extui %1 : i1 to i32
    %cst = arith.constant 0xFF800000 : f32
    %c0_i32_0 = arith.constant 0 : i32
    %3 = arith.cmpi ne, %2, %c0_i32_0 : i32
    scf.if %3 {
      %15 = tpu.iota {dimensions = array<i32: 0>} : vector<8x128xi32>
      %c5_i32 = arith.constant 5 : i32
      %16 = vector.broadcast %c5_i32 : i32 to vector<8x128xi32>
      %17 = arith.cmpi eq, %15, %16 : vector<8x128xi32>
      %cst_9 = arith.constant 0.000000e+00 : f32
      %18 = vector.broadcast %cst_9 : f32 to vector<8x128xf32>
      %19 = vector.broadcast %cst : f32 to vector<8x128xf32>
      %20 = arith.select %17, %18, %19 : vector<8x128xi1>, vector<8x128xf32>
      %c0_10 = arith.constant 0 : index
      %c0_11 = arith.constant 0 : index
      %c0_12 = arith.constant 0 : index
      %21 = vector.load %arg9[%c0_10, %c0_11, %c0_12] : memref<2x8x128xf32, #tpu.memory_space<vmem>>, vector<1x8x128xf32>
      %22 = vector.shape_cast %21 : vector<1x8x128xf32> to vector<8x128xf32>
      %23 = vector.shape_cast %20 : vector<8x128xf32> to vector<1x8x128xf32>
      tpu.vector_store %arg9[%c0_10, %c0_11, %c0_12], %23 {strides = array<i32>} : memref<2x8x128xf32, #tpu.memory_space<vmem>>, vector<1x8x128xf32>,
      %c1 = arith.constant 1 : index
      %c0_13 = arith.constant 0 : index
      %c0_14 = arith.constant 0 : index
      %24 = vector.load %arg9[%c1, %c0_13, %c0_14] : memref<2x8x128xf32, #tpu.memory_space<vmem>>, vector<1x8x128xf32>
      %25 = vector.shape_cast %24 : vector<1x8x128xf32> to vector<8x128xf32>
      %26 = vector.shape_cast %20 : vector<8x128xf32> to vector<1x8x128xf32>
      tpu.vector_store %arg9[%c1, %c0_13, %c0_14], %26 {strides = array<i32>} : memref<2x8x128xf32, #tpu.memory_space<vmem>>, vector<1x8x128xf32>,
    } else {
    }
    %c0 = arith.constant 0 : index
    %c0_1 = arith.constant 0 : index
    %4 = vector.load %arg6[%c0, %c0_1] : memref<8x8xf32, #tpu.memory_space<vmem>>, vector<8x8xf32>
    %5 = vector.shape_cast %4 : vector<8x8xf32> to vector<8x8x1xf32>
    %c0_2 = arith.constant 0 : index
    %c0_3 = arith.constant 0 : index
    %6 = vector.load %arg5[%c0_2, %c0_3] : memref<1x128xi32, #tpu.memory_space<vmem>>, vector<1x128xi32>
    %7 = arith.index_cast %arg0 : i32 to index
    %8 = memref.load %arg2[%7] : memref<1xi32, #tpu.memory_space<smem>>
    %9 = arith.cmpi slt, %0, %8 : i32
    %10 = arith.extui %9 : i1 to i32
    %cst_4 = arith.constant 0xFF800000 : f32
    %c0_i32_5 = arith.constant 0 : i32
    %11 = arith.cmpi ne, %10, %c0_i32_5 : i32
    scf.if %11 {
      %c0_9 = arith.constant 0 : index
      %c0_10 = arith.constant 0 : index
      %c0_11 = arith.constant 0 : index
      %15 = vector.load %arg9[%c0_9, %c0_10, %c0_11] : memref<2x8x128xf32, #tpu.memory_space<vmem>>, vector<1x8x128xf32>
      %16 = vector.shape_cast %15 : vector<1x8x128xf32> to vector<8x128xf32>
      %c1 = arith.constant 1 : index
      %c0_12 = arith.constant 0 : index
      %c0_13 = arith.constant 0 : index
      %17 = vector.load %arg9[%c1, %c0_12, %c0_13] : memref<2x8x128xf32, #tpu.memory_space<vmem>>, vector<1x8x128xf32>
      %18 = vector.shape_cast %17 : vector<1x8x128xf32> to vector<8x128xf32>
      %c0_i32_14 = arith.constant 0 : i32
      %19 = arith.index_cast %c0_i32_14 : i32 to index
      %c0_15 = arith.constant 0 : index
      %c0_16 = arith.constant 0 : index
      %20 = vector.load %arg3[%19, %c0_15, %c0_16] : memref<8x8x128xf32, #tpu.memory_space<vmem>>, vector<1x8x128xf32>
      %21 = vector.shape_cast %20 : vector<1x8x128xf32> to vector<8x128xf32>
      %22 = arith.index_cast %c0_i32_14 : i32 to index
      %c0_17 = arith.constant 0 : index
      %c0_18 = arith.constant 0 : index
      %23 = vector.load %arg4[%22, %c0_17, %c0_18] : memref<8x8x128xi8, #tpu.memory_space<vmem>>, vector<1x8x128xi8>
      %24 = vector.shape_cast %23 : vector<1x8x128xi8> to vector<8x128xi8>
      %25 = arith.sitofp %24 : vector<8x128xi8> to vector<8x128xf32>
      %cst_19 = arith.constant 0.000000e+00 : f32
      %26 = vector.broadcast %cst_19 : f32 to vector<8x128xf32>
      %27 = arith.cmpf oeq, %25, %26 : vector<8x128xf32>
      %cst_20 = arith.constant 0.000000e+00 : f32
      %28 = vector.broadcast %cst_4 : f32 to vector<8x128xf32>
      %29 = vector.broadcast %cst_20 : f32 to vector<8x128xf32>
      %30 = arith.select %27, %28, %29 : vector<8x128xi1>, vector<8x128xf32>
      %cst_21 = arith.constant dense<0xFF800000> : vector<128xf32>
      %31 = vector.multi_reduction <maximumf>, %16, %cst_21 [0] : vector<8x128xf32> to vector<128xf32>
      %32 = vector.shape_cast %31 : vector<128xf32> to vector<1x128xf32>
      %33 = vector.broadcast %cst_4 : f32 to vector<1x128xf32>
      %34 = arith.cmpf oeq, %32, %33 : vector<1x128xf32>
      %cst_22 = arith.constant 0.000000e+00 : f32
      %35 = vector.broadcast %cst_22 : f32 to vector<1x128xf32>
      %36 = arith.select %34, %35, %32 : vector<1x128xi1>, vector<1x128xf32>
      %37 = vector.broadcast %36 : vector<1x128xf32> to vector<8x128xf32>
      %38 = arith.subf %16, %37 : vector<8x128xf32>
      %39 = math.exp %38 : vector<8x128xf32>
      %40 = vector.shape_cast %39 : vector<8x128xf32> to vector<1x8x128xf32>
      %41 = vector.broadcast %5 : vector<8x8x1xf32> to vector<8x8x128xf32>
      %42 = vector.broadcast %40 : vector<1x8x128xf32> to vector<8x8x128xf32>
      %43 = arith.mulf %41, %42 : vector<8x8x128xf32>
      %cst_23 = arith.constant dense<0.000000e+00> : vector<8x128xf32>
      %44 = vector.multi_reduction <add>, %43, %cst_23 [1] : vector<8x8x128xf32> to vector<8x128xf32>
      %45 = math.log %44 : vector<8x128xf32>
      %46 = vector.broadcast %36 : vector<1x128xf32> to vector<8x128xf32>
      %47 = arith.addf %46, %45 : vector<8x128xf32>
      %48 = arith.addf %47, %21 : vector<8x128xf32>
      %cst_24 = arith.constant dense<0xFF800000> : vector<128xf32>
      %49 = vector.multi_reduction <maximumf>, %18, %cst_24 [0] : vector<8x128xf32> to vector<128xf32>
      %50 = vector.shape_cast %49 : vector<128xf32> to vector<1x128xf32>
      %51 = vector.broadcast %cst_4 : f32 to vector<1x128xf32>
      %52 = arith.cmpf oeq, %50, %51 : vector<1x128xf32>
      %cst_25 = arith.constant 0.000000e+00 : f32
      %53 = vector.broadcast %cst_25 : f32 to vector<1x128xf32>
      %54 = arith.select %52, %53, %50 : vector<1x128xi1>, vector<1x128xf32>
      %55 = vector.broadcast %54 : vector<1x128xf32> to vector<8x128xf32>
      %56 = arith.subf %18, %55 : vector<8x128xf32>
      %57 = math.exp %56 : vector<8x128xf32>
      %58 = vector.shape_cast %57 : vector<8x128xf32> to vector<1x8x128xf32>
      %59 = vector.broadcast %5 : vector<8x8x1xf32> to vector<8x8x128xf32>
      %60 = vector.broadcast %58 : vector<1x8x128xf32> to vector<8x8x128xf32>
      %61 = arith.mulf %59, %60 : vector<8x8x128xf32>
      %cst_26 = arith.constant dense<0.000000e+00> : vector<8x128xf32>
      %62 = vector.multi_reduction <add>, %61, %cst_26 [1] : vector<8x8x128xf32> to vector<8x128xf32>
      %63 = math.log %62 : vector<8x128xf32>
      %64 = vector.broadcast %54 : vector<1x128xf32> to vector<8x128xf32>
      %65 = arith.addf %64, %63 : vector<8x128xf32>
      %66 = arith.addf %65, %21 : vector<8x128xf32>
      %67 = arith.addf %66, %30 : vector<8x128xf32>
      %68 = arith.addi %0, %c0_i32_14 : i32
      %69 = vector.broadcast %68 : i32 to vector<1x128xi32>
      %70 = arith.cmpi slt, %69, %6 : vector<1x128xi32>
      %71 = vector.shape_cast %70 : vector<1x128xi1> to vector<1x128xi1>
      %72 = vector.broadcast %71 : vector<1x128xi1> to vector<8x128xi1>
      %73 = arith.select %72, %48, %16 : vector<8x128xi1>, vector<8x128xf32>
      %74 = vector.shape_cast %70 : vector<1x128xi1> to vector<1x128xi1>
      %75 = vector.broadcast %74 : vector<1x128xi1> to vector<8x128xi1>
      %76 = arith.select %75, %67, %18 : vector<8x128xi1>, vector<8x128xf32>
      %c1_i32 = arith.constant 1 : i32
      %77 = arith.index_cast %c1_i32 : i32 to index
      %c0_27 = arith.constant 0 : index
      %c0_28 = arith.constant 0 : index
      %78 = vector.load %arg3[%77, %c0_27, %c0_28] : memref<8x8x128xf32, #tpu.memory_space<vmem>>, vector<1x8x128xf32>
      %79 = vector.shape_cast %78 : vector<1x8x128xf32> to vector<8x128xf32>
      %80 = arith.index_cast %c1_i32 : i32 to index
      %c0_29 = arith.constant 0 : index
      %c0_30 = arith.constant 0 : index
      %81 = vector.load %arg4[%80, %c0_29, %c0_30] : memref<8x8x128xi8, #tpu.memory_space<vmem>>, vector<1x8x128xi8>
      %82 = vector.shape_cast %81 : vector<1x8x128xi8> to vector<8x128xi8>
      %83 = arith.sitofp %82 : vector<8x128xi8> to vector<8x128xf32>
      %cst_31 = arith.constant 0.000000e+00 : f32
      %84 = vector.broadcast %cst_31 : f32 to vector<8x128xf32>
      %85 = arith.cmpf oeq, %83, %84 : vector<8x128xf32>
      %cst_32 = arith.constant 0.000000e+00 : f32
      %86 = vector.broadcast %cst_4 : f32 to vector<8x128xf32>
      %87 = vector.broadcast %cst_32 : f32 to vector<8x128xf32>
      %88 = arith.select %85, %86, %87 : vector<8x128xi1>, vector<8x128xf32>
      %cst_33 = arith.constant dense<0xFF800000> : vector<128xf32>
      %89 = vector.multi_reduction <maximumf>, %73, %cst_33 [0] : vector<8x128xf32> to vector<128xf32>
      %90 = vector.shape_cast %89 : vector<128xf32> to vector<1x128xf32>
      %91 = vector.broadcast %cst_4 : f32 to vector<1x128xf32>
      %92 = arith.cmpf oeq, %90, %91 : vector<1x128xf32>
      %cst_34 = arith.constant 0.000000e+00 : f32
      %93 = vector.broadcast %cst_34 : f32 to vector<1x128xf32>
      %94 = arith.select %92, %93, %90 : vector<1x128xi1>, vector<1x128xf32>
      %95 = vector.broadcast %94 : vector<1x128xf32> to vector<8x128xf32>
      %96 = arith.subf %73, %95 : vector<8x128xf32>
      %97 = math.exp %96 : vector<8x128xf32>
      %98 = vector.shape_cast %97 : vector<8x128xf32> to vector<1x8x128xf32>
      %99 = vector.broadcast %5 : vector<8x8x1xf32> to vector<8x8x128xf32>
      %100 = vector.broadcast %98 : vector<1x8x128xf32> to vector<8x8x128xf32>
      %101 = arith.mulf %99, %100 : vector<8x8x128xf32>
      %cst_35 = arith.constant dense<0.000000e+00> : vector<8x128xf32>
      %102 = vector.multi_reduction <add>, %101, %cst_35 [1] : vector<8x8x128xf32> to vector<8x128xf32>
      %103 = math.log %102 : vector<8x128xf32>
      %104 = vector.broadcast %94 : vector<1x128xf32> to vector<8x128xf32>
      %105 = arith.addf %104, %103 : vector<8x128xf32>
      %106 = arith.addf %105, %79 : vector<8x128xf32>
      %cst_36 = arith.constant dense<0xFF800000> : vector<128xf32>
      %107 = vector.multi_reduction <maximumf>, %76, %cst_36 [0] : vector<8x128xf32> to vector<128xf32>
      %108 = vector.shape_cast %107 : vector<128xf32> to vector<1x128xf32>
      %109 = vector.broadcast %cst_4 : f32 to vector<1x128xf32>
      %110 = arith.cmpf oeq, %108, %109 : vector<1x128xf32>
      %cst_37 = arith.constant 0.000000e+00 : f32
      %111 = vector.broadcast %cst_37 : f32 to vector<1x128xf32>
      %112 = arith.select %110, %111, %108 : vector<1x128xi1>, vector<1x128xf32>
      %113 = vector.broadcast %112 : vector<1x128xf32> to vector<8x128xf32>
      %114 = arith.subf %76, %113 : vector<8x128xf32>
      %115 = math.exp %114 : vector<8x128xf32>
      %116 = vector.shape_cast %115 : vector<8x128xf32> to vector<1x8x128xf32>
      %117 = vector.broadcast %5 : vector<8x8x1xf32> to vector<8x8x128xf32>
      %118 = vector.broadcast %116 : vector<1x8x128xf32> to vector<8x8x128xf32>
      %119 = arith.mulf %117, %118 : vector<8x8x128xf32>
      %cst_38 = arith.constant dense<0.000000e+00> : vector<8x128xf32>
      %120 = vector.multi_reduction <add>, %119, %cst_38 [1] : vector<8x8x128xf32> to vector<8x128xf32>
      %121 = math.log %120 : vector<8x128xf32>
      %122 = vector.broadcast %112 : vector<1x128xf32> to vector<8x128xf32>
      %123 = arith.addf %122, %121 : vector<8x128xf32>
      %124 = arith.addf %123, %79 : vector<8x128xf32>
      %125 = arith.addf %124, %88 : vector<8x128xf32>
      %126 = arith.addi %0, %c1_i32 : i32
      %127 = vector.broadcast %126 : i32 to vector<1x128xi32>
      %128 = arith.cmpi slt, %127, %6 : vector<1x128xi32>
      %129 = vector.shape_cast %128 : vector<1x128xi1> to vector<1x128xi1>
      %130 = vector.broadcast %129 : vector<1x128xi1> to vector<8x128xi1>
      %131 = arith.select %130, %106, %73 : vector<8x128xi1>, vector<8x128xf32>
      %132 = vector.shape_cast %128 : vector<1x128xi1> to vector<1x128xi1>
      %133 = vector.broadcast %132 : vector<1x128xi1> to vector<8x128xi1>
      %134 = arith.select %133, %125, %76 : vector<8x128xi1>, vector<8x128xf32>
      %c2_i32 = arith.constant 2 : i32
      %135 = arith.index_cast %c2_i32 : i32 to index
      %c0_39 = arith.constant 0 : index
      %c0_40 = arith.constant 0 : index
      %136 = vector.load %arg3[%135, %c0_39, %c0_40] : memref<8x8x128xf32, #tpu.memory_space<vmem>>, vector<1x8x128xf32>
      %137 = vector.shape_cast %136 : vector<1x8x128xf32> to vector<8x128xf32>
      %138 = arith.index_cast %c2_i32 : i32 to index
      %c0_41 = arith.constant 0 : index
      %c0_42 = arith.constant 0 : index
      %139 = vector.load %arg4[%138, %c0_41, %c0_42] : memref<8x8x128xi8, #tpu.memory_space<vmem>>, vector<1x8x128xi8>
      %140 = vector.shape_cast %139 : vector<1x8x128xi8> to vector<8x128xi8>
      %141 = arith.sitofp %140 : vector<8x128xi8> to vector<8x128xf32>
      %cst_43 = arith.constant 0.000000e+00 : f32
      %142 = vector.broadcast %cst_43 : f32 to vector<8x128xf32>
      %143 = arith.cmpf oeq, %141, %142 : vector<8x128xf32>
      %cst_44 = arith.constant 0.000000e+00 : f32
      %144 = vector.broadcast %cst_4 : f32 to vector<8x128xf32>
      %145 = vector.broadcast %cst_44 : f32 to vector<8x128xf32>
      %146 = arith.select %143, %144, %145 : vector<8x128xi1>, vector<8x128xf32>
      %cst_45 = arith.constant dense<0xFF800000> : vector<128xf32>
      %147 = vector.multi_reduction <maximumf>, %131, %cst_45 [0] : vector<8x128xf32> to vector<128xf32>
      %148 = vector.shape_cast %147 : vector<128xf32> to vector<1x128xf32>
      %149 = vector.broadcast %cst_4 : f32 to vector<1x128xf32>
      %150 = arith.cmpf oeq, %148, %149 : vector<1x128xf32>
      %cst_46 = arith.constant 0.000000e+00 : f32
      %151 = vector.broadcast %cst_46 : f32 to vector<1x128xf32>
      %152 = arith.select %150, %151, %148 : vector<1x128xi1>, vector<1x128xf32>
      %153 = vector.broadcast %152 : vector<1x128xf32> to vector<8x128xf32>
      %154 = arith.subf %131, %153 : vector<8x128xf32>
      %155 = math.exp %154 : vector<8x128xf32>
      %156 = vector.shape_cast %155 : vector<8x128xf32> to vector<1x8x128xf32>
      %157 = vector.broadcast %5 : vector<8x8x1xf32> to vector<8x8x128xf32>
      %158 = vector.broadcast %156 : vector<1x8x128xf32> to vector<8x8x128xf32>
      %159 = arith.mulf %157, %158 : vector<8x8x128xf32>
      %cst_47 = arith.constant dense<0.000000e+00> : vector<8x128xf32>
      %160 = vector.multi_reduction <add>, %159, %cst_47 [1] : vector<8x8x128xf32> to vector<8x128xf32>
      %161 = math.log %160 : vector<8x128xf32>
      %162 = vector.broadcast %152 : vector<1x128xf32> to vector<8x128xf32>
      %163 = arith.addf %162, %161 : vector<8x128xf32>
      %164 = arith.addf %163, %137 : vector<8x128xf32>
      %cst_48 = arith.constant dense<0xFF800000> : vector<128xf32>
      %165 = vector.multi_reduction <maximumf>, %134, %cst_48 [0] : vector<8x128xf32> to vector<128xf32>
      %166 = vector.shape_cast %165 : vector<128xf32> to vector<1x128xf32>
      %167 = vector.broadcast %cst_4 : f32 to vector<1x128xf32>
      %168 = arith.cmpf oeq, %166, %167 : vector<1x128xf32>
      %cst_49 = arith.constant 0.000000e+00 : f32
      %169 = vector.broadcast %cst_49 : f32 to vector<1x128xf32>
      %170 = arith.select %168, %169, %166 : vector<1x128xi1>, vector<1x128xf32>
      %171 = vector.broadcast %170 : vector<1x128xf32> to vector<8x128xf32>
      %172 = arith.subf %134, %171 : vector<8x128xf32>
      %173 = math.exp %172 : vector<8x128xf32>
      %174 = vector.shape_cast %173 : vector<8x128xf32> to vector<1x8x128xf32>
      %175 = vector.broadcast %5 : vector<8x8x1xf32> to vector<8x8x128xf32>
      %176 = vector.broadcast %174 : vector<1x8x128xf32> to vector<8x8x128xf32>
      %177 = arith.mulf %175, %176 : vector<8x8x128xf32>
      %cst_50 = arith.constant dense<0.000000e+00> : vector<8x128xf32>
      %178 = vector.multi_reduction <add>, %177, %cst_50 [1] : vector<8x8x128xf32> to vector<8x128xf32>
      %179 = math.log %178 : vector<8x128xf32>
      %180 = vector.broadcast %170 : vector<1x128xf32> to vector<8x128xf32>
      %181 = arith.addf %180, %179 : vector<8x128xf32>
      %182 = arith.addf %181, %137 : vector<8x128xf32>
      %183 = arith.addf %182, %146 : vector<8x128xf32>
      %184 = arith.addi %0, %c2_i32 : i32
      %185 = vector.broadcast %184 : i32 to vector<1x128xi32>
      %186 = arith.cmpi slt, %185, %6 : vector<1x128xi32>
      %187 = vector.shape_cast %186 : vector<1x128xi1> to vector<1x128xi1>
      %188 = vector.broadcast %187 : vector<1x128xi1> to vector<8x128xi1>
      %189 = arith.select %188, %164, %131 : vector<8x128xi1>, vector<8x128xf32>
      %190 = vector.shape_cast %186 : vector<1x128xi1> to vector<1x128xi1>
      %191 = vector.broadcast %190 : vector<1x128xi1> to vector<8x128xi1>
      %192 = arith.select %191, %183, %134 : vector<8x128xi1>, vector<8x128xf32>
      %c3_i32 = arith.constant 3 : i32
      %193 = arith.index_cast %c3_i32 : i32 to index
      %c0_51 = arith.constant 0 : index
      %c0_52 = arith.constant 0 : index
      %194 = vector.load %arg3[%193, %c0_51, %c0_52] : memref<8x8x128xf32, #tpu.memory_space<vmem>>, vector<1x8x128xf32>
      %195 = vector.shape_cast %194 : vector<1x8x128xf32> to vector<8x128xf32>
      %196 = arith.index_cast %c3_i32 : i32 to index
      %c0_53 = arith.constant 0 : index
      %c0_54 = arith.constant 0 : index
      %197 = vector.load %arg4[%196, %c0_53, %c0_54] : memref<8x8x128xi8, #tpu.memory_space<vmem>>, vector<1x8x128xi8>
      %198 = vector.shape_cast %197 : vector<1x8x128xi8> to vector<8x128xi8>
      %199 = arith.sitofp %198 : vector<8x128xi8> to vector<8x128xf32>
      %cst_55 = arith.constant 0.000000e+00 : f32
      %200 = vector.broadcast %cst_55 : f32 to vector<8x128xf32>
      %201 = arith.cmpf oeq, %199, %200 : vector<8x128xf32>
      %cst_56 = arith.constant 0.000000e+00 : f32
      %202 = vector.broadcast %cst_4 : f32 to vector<8x128xf32>
      %203 = vector.broadcast %cst_56 : f32 to vector<8x128xf32>
      %204 = arith.select %201, %202, %203 : vector<8x128xi1>, vector<8x128xf32>
      %cst_57 = arith.constant dense<0xFF800000> : vector<128xf32>
      %205 = vector.multi_reduction <maximumf>, %189, %cst_57 [0] : vector<8x128xf32> to vector<128xf32>
      %206 = vector.shape_cast %205 : vector<128xf32> to vector<1x128xf32>
      %207 = vector.broadcast %cst_4 : f32 to vector<1x128xf32>
      %208 = arith.cmpf oeq, %206, %207 : vector<1x128xf32>
      %cst_58 = arith.constant 0.000000e+00 : f32
      %209 = vector.broadcast %cst_58 : f32 to vector<1x128xf32>
      %210 = arith.select %208, %209, %206 : vector<1x128xi1>, vector<1x128xf32>
      %211 = vector.broadcast %210 : vector<1x128xf32> to vector<8x128xf32>
      %212 = arith.subf %189, %211 : vector<8x128xf32>
      %213 = math.exp %212 : vector<8x128xf32>
      %214 = vector.shape_cast %213 : vector<8x128xf32> to vector<1x8x128xf32>
      %215 = vector.broadcast %5 : vector<8x8x1xf32> to vector<8x8x128xf32>
      %216 = vector.broadcast %214 : vector<1x8x128xf32> to vector<8x8x128xf32>
      %217 = arith.mulf %215, %216 : vector<8x8x128xf32>
      %cst_59 = arith.constant dense<0.000000e+00> : vector<8x128xf32>
      %218 = vector.multi_reduction <add>, %217, %cst_59 [1] : vector<8x8x128xf32> to vector<8x128xf32>
      %219 = math.log %218 : vector<8x128xf32>
      %220 = vector.broadcast %210 : vector<1x128xf32> to vector<8x128xf32>
      %221 = arith.addf %220, %219 : vector<8x128xf32>
      %222 = arith.addf %221, %195 : vector<8x128xf32>
      %cst_60 = arith.constant dense<0xFF800000> : vector<128xf32>
      %223 = vector.multi_reduction <maximumf>, %192, %cst_60 [0] : vector<8x128xf32> to vector<128xf32>
      %224 = vector.shape_cast %223 : vector<128xf32> to vector<1x128xf32>
      %225 = vector.broadcast %cst_4 : f32 to vector<1x128xf32>
      %226 = arith.cmpf oeq, %224, %225 : vector<1x128xf32>
      %cst_61 = arith.constant 0.000000e+00 : f32
      %227 = vector.broadcast %cst_61 : f32 to vector<1x128xf32>
      %228 = arith.select %226, %227, %224 : vector<1x128xi1>, vector<1x128xf32>
      %229 = vector.broadcast %228 : vector<1x128xf32> to vector<8x128xf32>
      %230 = arith.subf %192, %229 : vector<8x128xf32>
      %231 = math.exp %230 : vector<8x128xf32>
      %232 = vector.shape_cast %231 : vector<8x128xf32> to vector<1x8x128xf32>
      %233 = vector.broadcast %5 : vector<8x8x1xf32> to vector<8x8x128xf32>
      %234 = vector.broadcast %232 : vector<1x8x128xf32> to vector<8x8x128xf32>
      %235 = arith.mulf %233, %234 : vector<8x8x128xf32>
      %cst_62 = arith.constant dense<0.000000e+00> : vector<8x128xf32>
      %236 = vector.multi_reduction <add>, %235, %cst_62 [1] : vector<8x8x128xf32> to vector<8x128xf32>
      %237 = math.log %236 : vector<8x128xf32>
      %238 = vector.broadcast %228 : vector<1x128xf32> to vector<8x128xf32>
      %239 = arith.addf %238, %237 : vector<8x128xf32>
      %240 = arith.addf %239, %195 : vector<8x128xf32>
      %241 = arith.addf %240, %204 : vector<8x128xf32>
      %242 = arith.addi %0, %c3_i32 : i32
      %243 = vector.broadcast %242 : i32 to vector<1x128xi32>
      %244 = arith.cmpi slt, %243, %6 : vector<1x128xi32>
      %245 = vector.shape_cast %244 : vector<1x128xi1> to vector<1x128xi1>
      %246 = vector.broadcast %245 : vector<1x128xi1> to vector<8x128xi1>
      %247 = arith.select %246, %222, %189 : vector<8x128xi1>, vector<8x128xf32>
      %248 = vector.shape_cast %244 : vector<1x128xi1> to vector<1x128xi1>
      %249 = vector.broadcast %248 : vector<1x128xi1> to vector<8x128xi1>
      %250 = arith.select %249, %241, %192 : vector<8x128xi1>, vector<8x128xf32>
      %c4_i32 = arith.constant 4 : i32
      %251 = arith.index_cast %c4_i32 : i32 to index
      %c0_63 = arith.constant 0 : index
      %c0_64 = arith.constant 0 : index
      %252 = vector.load %arg3[%251, %c0_63, %c0_64] : memref<8x8x128xf32, #tpu.memory_space<vmem>>, vector<1x8x128xf32>
      %253 = vector.shape_cast %252 : vector<1x8x128xf32> to vector<8x128xf32>
      %254 = arith.index_cast %c4_i32 : i32 to index
      %c0_65 = arith.constant 0 : index
      %c0_66 = arith.constant 0 : index
      %255 = vector.load %arg4[%254, %c0_65, %c0_66] : memref<8x8x128xi8, #tpu.memory_space<vmem>>, vector<1x8x128xi8>
      %256 = vector.shape_cast %255 : vector<1x8x128xi8> to vector<8x128xi8>
      %257 = arith.sitofp %256 : vector<8x128xi8> to vector<8x128xf32>
      %cst_67 = arith.constant 0.000000e+00 : f32
      %258 = vector.broadcast %cst_67 : f32 to vector<8x128xf32>
      %259 = arith.cmpf oeq, %257, %258 : vector<8x128xf32>
      %cst_68 = arith.constant 0.000000e+00 : f32
      %260 = vector.broadcast %cst_4 : f32 to vector<8x128xf32>
      %261 = vector.broadcast %cst_68 : f32 to vector<8x128xf32>
      %262 = arith.select %259, %260, %261 : vector<8x128xi1>, vector<8x128xf32>
      %cst_69 = arith.constant dense<0xFF800000> : vector<128xf32>
      %263 = vector.multi_reduction <maximumf>, %247, %cst_69 [0] : vector<8x128xf32> to vector<128xf32>
      %264 = vector.shape_cast %263 : vector<128xf32> to vector<1x128xf32>
      %265 = vector.broadcast %cst_4 : f32 to vector<1x128xf32>
      %266 = arith.cmpf oeq, %264, %265 : vector<1x128xf32>
      %cst_70 = arith.constant 0.000000e+00 : f32
      %267 = vector.broadcast %cst_70 : f32 to vector<1x128xf32>
      %268 = arith.select %266, %267, %264 : vector<1x128xi1>, vector<1x128xf32>
      %269 = vector.broadcast %268 : vector<1x128xf32> to vector<8x128xf32>
      %270 = arith.subf %247, %269 : vector<8x128xf32>
      %271 = math.exp %270 : vector<8x128xf32>
      %272 = vector.shape_cast %271 : vector<8x128xf32> to vector<1x8x128xf32>
      %273 = vector.broadcast %5 : vector<8x8x1xf32> to vector<8x8x128xf32>
      %274 = vector.broadcast %272 : vector<1x8x128xf32> to vector<8x8x128xf32>
      %275 = arith.mulf %273, %274 : vector<8x8x128xf32>
      %cst_71 = arith.constant dense<0.000000e+00> : vector<8x128xf32>
      %276 = vector.multi_reduction <add>, %275, %cst_71 [1] : vector<8x8x128xf32> to vector<8x128xf32>
      %277 = math.log %276 : vector<8x128xf32>
      %278 = vector.broadcast %268 : vector<1x128xf32> to vector<8x128xf32>
      %279 = arith.addf %278, %277 : vector<8x128xf32>
      %280 = arith.addf %279, %253 : vector<8x128xf32>
      %cst_72 = arith.constant dense<0xFF800000> : vector<128xf32>
      %281 = vector.multi_reduction <maximumf>, %250, %cst_72 [0] : vector<8x128xf32> to vector<128xf32>
      %282 = vector.shape_cast %281 : vector<128xf32> to vector<1x128xf32>
      %283 = vector.broadcast %cst_4 : f32 to vector<1x128xf32>
      %284 = arith.cmpf oeq, %282, %283 : vector<1x128xf32>
      %cst_73 = arith.constant 0.000000e+00 : f32
      %285 = vector.broadcast %cst_73 : f32 to vector<1x128xf32>
      %286 = arith.select %284, %285, %282 : vector<1x128xi1>, vector<1x128xf32>
      %287 = vector.broadcast %286 : vector<1x128xf32> to vector<8x128xf32>
      %288 = arith.subf %250, %287 : vector<8x128xf32>
      %289 = math.exp %288 : vector<8x128xf32>
      %290 = vector.shape_cast %289 : vector<8x128xf32> to vector<1x8x128xf32>
      %291 = vector.broadcast %5 : vector<8x8x1xf32> to vector<8x8x128xf32>
      %292 = vector.broadcast %290 : vector<1x8x128xf32> to vector<8x8x128xf32>
      %293 = arith.mulf %291, %292 : vector<8x8x128xf32>
      %cst_74 = arith.constant dense<0.000000e+00> : vector<8x128xf32>
      %294 = vector.multi_reduction <add>, %293, %cst_74 [1] : vector<8x8x128xf32> to vector<8x128xf32>
      %295 = math.log %294 : vector<8x128xf32>
      %296 = vector.broadcast %286 : vector<1x128xf32> to vector<8x128xf32>
      %297 = arith.addf %296, %295 : vector<8x128xf32>
      %298 = arith.addf %297, %253 : vector<8x128xf32>
      %299 = arith.addf %298, %262 : vector<8x128xf32>
      %300 = arith.addi %0, %c4_i32 : i32
      %301 = vector.broadcast %300 : i32 to vector<1x128xi32>
      %302 = arith.cmpi slt, %301, %6 : vector<1x128xi32>
      %303 = vector.shape_cast %302 : vector<1x128xi1> to vector<1x128xi1>
      %304 = vector.broadcast %303 : vector<1x128xi1> to vector<8x128xi1>
      %305 = arith.select %304, %280, %247 : vector<8x128xi1>, vector<8x128xf32>
      %306 = vector.shape_cast %302 : vector<1x128xi1> to vector<1x128xi1>
      %307 = vector.broadcast %306 : vector<1x128xi1> to vector<8x128xi1>
      %308 = arith.select %307, %299, %250 : vector<8x128xi1>, vector<8x128xf32>
      %c5_i32 = arith.constant 5 : i32
      %309 = arith.index_cast %c5_i32 : i32 to index
      %c0_75 = arith.constant 0 : index
      %c0_76 = arith.constant 0 : index
      %310 = vector.load %arg3[%309, %c0_75, %c0_76] : memref<8x8x128xf32, #tpu.memory_space<vmem>>, vector<1x8x128xf32>
      %311 = vector.shape_cast %310 : vector<1x8x128xf32> to vector<8x128xf32>
      %312 = arith.index_cast %c5_i32 : i32 to index
      %c0_77 = arith.constant 0 : index
      %c0_78 = arith.constant 0 : index
      %313 = vector.load %arg4[%312, %c0_77, %c0_78] : memref<8x8x128xi8, #tpu.memory_space<vmem>>, vector<1x8x128xi8>
      %314 = vector.shape_cast %313 : vector<1x8x128xi8> to vector<8x128xi8>
      %315 = arith.sitofp %314 : vector<8x128xi8> to vector<8x128xf32>
      %cst_79 = arith.constant 0.000000e+00 : f32
      %316 = vector.broadcast %cst_79 : f32 to vector<8x128xf32>
      %317 = arith.cmpf oeq, %315, %316 : vector<8x128xf32>
      %cst_80 = arith.constant 0.000000e+00 : f32
      %318 = vector.broadcast %cst_4 : f32 to vector<8x128xf32>
      %319 = vector.broadcast %cst_80 : f32 to vector<8x128xf32>
      %320 = arith.select %317, %318, %319 : vector<8x128xi1>, vector<8x128xf32>
      %cst_81 = arith.constant dense<0xFF800000> : vector<128xf32>
      %321 = vector.multi_reduction <maximumf>, %305, %cst_81 [0] : vector<8x128xf32> to vector<128xf32>
      %322 = vector.shape_cast %321 : vector<128xf32> to vector<1x128xf32>
      %323 = vector.broadcast %cst_4 : f32 to vector<1x128xf32>
      %324 = arith.cmpf oeq, %322, %323 : vector<1x128xf32>
      %cst_82 = arith.constant 0.000000e+00 : f32
      %325 = vector.broadcast %cst_82 : f32 to vector<1x128xf32>
      %326 = arith.select %324, %325, %322 : vector<1x128xi1>, vector<1x128xf32>
      %327 = vector.broadcast %326 : vector<1x128xf32> to vector<8x128xf32>
      %328 = arith.subf %305, %327 : vector<8x128xf32>
      %329 = math.exp %328 : vector<8x128xf32>
      %330 = vector.shape_cast %329 : vector<8x128xf32> to vector<1x8x128xf32>
      %331 = vector.broadcast %5 : vector<8x8x1xf32> to vector<8x8x128xf32>
      %332 = vector.broadcast %330 : vector<1x8x128xf32> to vector<8x8x128xf32>
      %333 = arith.mulf %331, %332 : vector<8x8x128xf32>
      %cst_83 = arith.constant dense<0.000000e+00> : vector<8x128xf32>
      %334 = vector.multi_reduction <add>, %333, %cst_83 [1] : vector<8x8x128xf32> to vector<8x128xf32>
      %335 = math.log %334 : vector<8x128xf32>
      %336 = vector.broadcast %326 : vector<1x128xf32> to vector<8x128xf32>
      %337 = arith.addf %336, %335 : vector<8x128xf32>
      %338 = arith.addf %337, %311 : vector<8x128xf32>
      %cst_84 = arith.constant dense<0xFF800000> : vector<128xf32>
      %339 = vector.multi_reduction <maximumf>, %308, %cst_84 [0] : vector<8x128xf32> to vector<128xf32>
      %340 = vector.shape_cast %339 : vector<128xf32> to vector<1x128xf32>
      %341 = vector.broadcast %cst_4 : f32 to vector<1x128xf32>
      %342 = arith.cmpf oeq, %340, %341 : vector<1x128xf32>
      %cst_85 = arith.constant 0.000000e+00 : f32
      %343 = vector.broadcast %cst_85 : f32 to vector<1x128xf32>
      %344 = arith.select %342, %343, %340 : vector<1x128xi1>, vector<1x128xf32>
      %345 = vector.broadcast %344 : vector<1x128xf32> to vector<8x128xf32>
      %346 = arith.subf %308, %345 : vector<8x128xf32>
      %347 = math.exp %346 : vector<8x128xf32>
      %348 = vector.shape_cast %347 : vector<8x128xf32> to vector<1x8x128xf32>
      %349 = vector.broadcast %5 : vector<8x8x1xf32> to vector<8x8x128xf32>
      %350 = vector.broadcast %348 : vector<1x8x128xf32> to vector<8x8x128xf32>
      %351 = arith.mulf %349, %350 : vector<8x8x128xf32>
      %cst_86 = arith.constant dense<0.000000e+00> : vector<8x128xf32>
      %352 = vector.multi_reduction <add>, %351, %cst_86 [1] : vector<8x8x128xf32> to vector<8x128xf32>
      %353 = math.log %352 : vector<8x128xf32>
      %354 = vector.broadcast %344 : vector<1x128xf32> to vector<8x128xf32>
      %355 = arith.addf %354, %353 : vector<8x128xf32>
      %356 = arith.addf %355, %311 : vector<8x128xf32>
      %357 = arith.addf %356, %320 : vector<8x128xf32>
      %358 = arith.addi %0, %c5_i32 : i32
      %359 = vector.broadcast %358 : i32 to vector<1x128xi32>
      %360 = arith.cmpi slt, %359, %6 : vector<1x128xi32>
      %361 = vector.shape_cast %360 : vector<1x128xi1> to vector<1x128xi1>
      %362 = vector.broadcast %361 : vector<1x128xi1> to vector<8x128xi1>
      %363 = arith.select %362, %338, %305 : vector<8x128xi1>, vector<8x128xf32>
      %364 = vector.shape_cast %360 : vector<1x128xi1> to vector<1x128xi1>
      %365 = vector.broadcast %364 : vector<1x128xi1> to vector<8x128xi1>
      %366 = arith.select %365, %357, %308 : vector<8x128xi1>, vector<8x128xf32>
      %c6_i32 = arith.constant 6 : i32
      %367 = arith.index_cast %c6_i32 : i32 to index
      %c0_87 = arith.constant 0 : index
      %c0_88 = arith.constant 0 : index
      %368 = vector.load %arg3[%367, %c0_87, %c0_88] : memref<8x8x128xf32, #tpu.memory_space<vmem>>, vector<1x8x128xf32>
      %369 = vector.shape_cast %368 : vector<1x8x128xf32> to vector<8x128xf32>
      %370 = arith.index_cast %c6_i32 : i32 to index
      %c0_89 = arith.constant 0 : index
      %c0_90 = arith.constant 0 : index
      %371 = vector.load %arg4[%370, %c0_89, %c0_90] : memref<8x8x128xi8, #tpu.memory_space<vmem>>, vector<1x8x128xi8>
      %372 = vector.shape_cast %371 : vector<1x8x128xi8> to vector<8x128xi8>
      %373 = arith.sitofp %372 : vector<8x128xi8> to vector<8x128xf32>
      %cst_91 = arith.constant 0.000000e+00 : f32
      %374 = vector.broadcast %cst_91 : f32 to vector<8x128xf32>
      %375 = arith.cmpf oeq, %373, %374 : vector<8x128xf32>
      %cst_92 = arith.constant 0.000000e+00 : f32
      %376 = vector.broadcast %cst_4 : f32 to vector<8x128xf32>
      %377 = vector.broadcast %cst_92 : f32 to vector<8x128xf32>
      %378 = arith.select %375, %376, %377 : vector<8x128xi1>, vector<8x128xf32>
      %cst_93 = arith.constant dense<0xFF800000> : vector<128xf32>
      %379 = vector.multi_reduction <maximumf>, %363, %cst_93 [0] : vector<8x128xf32> to vector<128xf32>
      %380 = vector.shape_cast %379 : vector<128xf32> to vector<1x128xf32>
      %381 = vector.broadcast %cst_4 : f32 to vector<1x128xf32>
      %382 = arith.cmpf oeq, %380, %381 : vector<1x128xf32>
      %cst_94 = arith.constant 0.000000e+00 : f32
      %383 = vector.broadcast %cst_94 : f32 to vector<1x128xf32>
      %384 = arith.select %382, %383, %380 : vector<1x128xi1>, vector<1x128xf32>
      %385 = vector.broadcast %384 : vector<1x128xf32> to vector<8x128xf32>
      %386 = arith.subf %363, %385 : vector<8x128xf32>
      %387 = math.exp %386 : vector<8x128xf32>
      %388 = vector.shape_cast %387 : vector<8x128xf32> to vector<1x8x128xf32>
      %389 = vector.broadcast %5 : vector<8x8x1xf32> to vector<8x8x128xf32>
      %390 = vector.broadcast %388 : vector<1x8x128xf32> to vector<8x8x128xf32>
      %391 = arith.mulf %389, %390 : vector<8x8x128xf32>
      %cst_95 = arith.constant dense<0.000000e+00> : vector<8x128xf32>
      %392 = vector.multi_reduction <add>, %391, %cst_95 [1] : vector<8x8x128xf32> to vector<8x128xf32>
      %393 = math.log %392 : vector<8x128xf32>
      %394 = vector.broadcast %384 : vector<1x128xf32> to vector<8x128xf32>
      %395 = arith.addf %394, %393 : vector<8x128xf32>
      %396 = arith.addf %395, %369 : vector<8x128xf32>
      %cst_96 = arith.constant dense<0xFF800000> : vector<128xf32>
      %397 = vector.multi_reduction <maximumf>, %366, %cst_96 [0] : vector<8x128xf32> to vector<128xf32>
      %398 = vector.shape_cast %397 : vector<128xf32> to vector<1x128xf32>
      %399 = vector.broadcast %cst_4 : f32 to vector<1x128xf32>
      %400 = arith.cmpf oeq, %398, %399 : vector<1x128xf32>
      %cst_97 = arith.constant 0.000000e+00 : f32
      %401 = vector.broadcast %cst_97 : f32 to vector<1x128xf32>
      %402 = arith.select %400, %401, %398 : vector<1x128xi1>, vector<1x128xf32>
      %403 = vector.broadcast %402 : vector<1x128xf32> to vector<8x128xf32>
      %404 = arith.subf %366, %403 : vector<8x128xf32>
      %405 = math.exp %404 : vector<8x128xf32>
      %406 = vector.shape_cast %405 : vector<8x128xf32> to vector<1x8x128xf32>
      %407 = vector.broadcast %5 : vector<8x8x1xf32> to vector<8x8x128xf32>
      %408 = vector.broadcast %406 : vector<1x8x128xf32> to vector<8x8x128xf32>
      %409 = arith.mulf %407, %408 : vector<8x8x128xf32>
      %cst_98 = arith.constant dense<0.000000e+00> : vector<8x128xf32>
      %410 = vector.multi_reduction <add>, %409, %cst_98 [1] : vector<8x8x128xf32> to vector<8x128xf32>
      %411 = math.log %410 : vector<8x128xf32>
      %412 = vector.broadcast %402 : vector<1x128xf32> to vector<8x128xf32>
      %413 = arith.addf %412, %411 : vector<8x128xf32>
      %414 = arith.addf %413, %369 : vector<8x128xf32>
      %415 = arith.addf %414, %378 : vector<8x128xf32>
      %416 = arith.addi %0, %c6_i32 : i32
      %417 = vector.broadcast %416 : i32 to vector<1x128xi32>
      %418 = arith.cmpi slt, %417, %6 : vector<1x128xi32>
      %419 = vector.shape_cast %418 : vector<1x128xi1> to vector<1x128xi1>
      %420 = vector.broadcast %419 : vector<1x128xi1> to vector<8x128xi1>
      %421 = arith.select %420, %396, %363 : vector<8x128xi1>, vector<8x128xf32>
      %422 = vector.shape_cast %418 : vector<1x128xi1> to vector<1x128xi1>
      %423 = vector.broadcast %422 : vector<1x128xi1> to vector<8x128xi1>
      %424 = arith.select %423, %415, %366 : vector<8x128xi1>, vector<8x128xf32>
      %c7_i32 = arith.constant 7 : i32
      %425 = arith.index_cast %c7_i32 : i32 to index
      %c0_99 = arith.constant 0 : index
      %c0_100 = arith.constant 0 : index
      %426 = vector.load %arg3[%425, %c0_99, %c0_100] : memref<8x8x128xf32, #tpu.memory_space<vmem>>, vector<1x8x128xf32>
      %427 = vector.shape_cast %426 : vector<1x8x128xf32> to vector<8x128xf32>
      %428 = arith.index_cast %c7_i32 : i32 to index
      %c0_101 = arith.constant 0 : index
      %c0_102 = arith.constant 0 : index
      %429 = vector.load %arg4[%428, %c0_101, %c0_102] : memref<8x8x128xi8, #tpu.memory_space<vmem>>, vector<1x8x128xi8>
      %430 = vector.shape_cast %429 : vector<1x8x128xi8> to vector<8x128xi8>
      %431 = arith.sitofp %430 : vector<8x128xi8> to vector<8x128xf32>
      %cst_103 = arith.constant 0.000000e+00 : f32
      %432 = vector.broadcast %cst_103 : f32 to vector<8x128xf32>
      %433 = arith.cmpf oeq, %431, %432 : vector<8x128xf32>
      %cst_104 = arith.constant 0.000000e+00 : f32
      %434 = vector.broadcast %cst_4 : f32 to vector<8x128xf32>
      %435 = vector.broadcast %cst_104 : f32 to vector<8x128xf32>
      %436 = arith.select %433, %434, %435 : vector<8x128xi1>, vector<8x128xf32>
      %cst_105 = arith.constant dense<0xFF800000> : vector<128xf32>
      %437 = vector.multi_reduction <maximumf>, %421, %cst_105 [0] : vector<8x128xf32> to vector<128xf32>
      %438 = vector.shape_cast %437 : vector<128xf32> to vector<1x128xf32>
      %439 = vector.broadcast %cst_4 : f32 to vector<1x128xf32>
      %440 = arith.cmpf oeq, %438, %439 : vector<1x128xf32>
      %cst_106 = arith.constant 0.000000e+00 : f32
      %441 = vector.broadcast %cst_106 : f32 to vector<1x128xf32>
      %442 = arith.select %440, %441, %438 : vector<1x128xi1>, vector<1x128xf32>
      %443 = vector.broadcast %442 : vector<1x128xf32> to vector<8x128xf32>
      %444 = arith.subf %421, %443 : vector<8x128xf32>
      %445 = math.exp %444 : vector<8x128xf32>
      %446 = vector.shape_cast %445 : vector<8x128xf32> to vector<1x8x128xf32>
      %447 = vector.broadcast %5 : vector<8x8x1xf32> to vector<8x8x128xf32>
      %448 = vector.broadcast %446 : vector<1x8x128xf32> to vector<8x8x128xf32>
      %449 = arith.mulf %447, %448 : vector<8x8x128xf32>
      %cst_107 = arith.constant dense<0.000000e+00> : vector<8x128xf32>
      %450 = vector.multi_reduction <add>, %449, %cst_107 [1] : vector<8x8x128xf32> to vector<8x128xf32>
      %451 = math.log %450 : vector<8x128xf32>
      %452 = vector.broadcast %442 : vector<1x128xf32> to vector<8x128xf32>
      %453 = arith.addf %452, %451 : vector<8x128xf32>
      %454 = arith.addf %453, %427 : vector<8x128xf32>
      %cst_108 = arith.constant dense<0xFF800000> : vector<128xf32>
      %455 = vector.multi_reduction <maximumf>, %424, %cst_108 [0] : vector<8x128xf32> to vector<128xf32>
      %456 = vector.shape_cast %455 : vector<128xf32> to vector<1x128xf32>
      %457 = vector.broadcast %cst_4 : f32 to vector<1x128xf32>
      %458 = arith.cmpf oeq, %456, %457 : vector<1x128xf32>
      %cst_109 = arith.constant 0.000000e+00 : f32
      %459 = vector.broadcast %cst_109 : f32 to vector<1x128xf32>
      %460 = arith.select %458, %459, %456 : vector<1x128xi1>, vector<1x128xf32>
      %461 = vector.broadcast %460 : vector<1x128xf32> to vector<8x128xf32>
      %462 = arith.subf %424, %461 : vector<8x128xf32>
      %463 = math.exp %462 : vector<8x128xf32>
      %464 = vector.shape_cast %463 : vector<8x128xf32> to vector<1x8x128xf32>
      %465 = vector.broadcast %5 : vector<8x8x1xf32> to vector<8x8x128xf32>
      %466 = vector.broadcast %464 : vector<1x8x128xf32> to vector<8x8x128xf32>
      %467 = arith.mulf %465, %466 : vector<8x8x128xf32>
      %cst_110 = arith.constant dense<0.000000e+00> : vector<8x128xf32>
      %468 = vector.multi_reduction <add>, %467, %cst_110 [1] : vector<8x8x128xf32> to vector<8x128xf32>
      %469 = math.log %468 : vector<8x128xf32>
      %470 = vector.broadcast %460 : vector<1x128xf32> to vector<8x128xf32>
      %471 = arith.addf %470, %469 : vector<8x128xf32>
      %472 = arith.addf %471, %427 : vector<8x128xf32>
      %473 = arith.addf %472, %436 : vector<8x128xf32>
      %474 = arith.addi %0, %c7_i32 : i32
      %475 = vector.broadcast %474 : i32 to vector<1x128xi32>
      %476 = arith.cmpi slt, %475, %6 : vector<1x128xi32>
      %477 = vector.shape_cast %476 : vector<1x128xi1> to vector<1x128xi1>
      %478 = vector.broadcast %477 : vector<1x128xi1> to vector<8x128xi1>
      %479 = arith.select %478, %454, %421 : vector<8x128xi1>, vector<8x128xf32>
      %480 = vector.shape_cast %476 : vector<1x128xi1> to vector<1x128xi1>
      %481 = vector.broadcast %480 : vector<1x128xi1> to vector<8x128xi1>
      %482 = arith.select %481, %473, %424 : vector<8x128xi1>, vector<8x128xf32>
      %c8_i32_111 = arith.constant 8 : i32
      %c0_112 = arith.constant 0 : index
      %c0_113 = arith.constant 0 : index
      %c0_114 = arith.constant 0 : index
      %483 = vector.load %arg9[%c0_112, %c0_113, %c0_114] : memref<2x8x128xf32, #tpu.memory_space<vmem>>, vector<1x8x128xf32>
      %484 = vector.shape_cast %483 : vector<1x8x128xf32> to vector<8x128xf32>
      %485 = vector.shape_cast %479 : vector<8x128xf32> to vector<1x8x128xf32>
      tpu.vector_store %arg9[%c0_112, %c0_113, %c0_114], %485 {strides = array<i32>} : memref<2x8x128xf32, #tpu.memory_space<vmem>>, vector<1x8x128xf32>,
      %c1_115 = arith.constant 1 : index
      %c0_116 = arith.constant 0 : index
      %c0_117 = arith.constant 0 : index
      %486 = vector.load %arg9[%c1_115, %c0_116, %c0_117] : memref<2x8x128xf32, #tpu.memory_space<vmem>>, vector<1x8x128xf32>
      %487 = vector.shape_cast %486 : vector<1x8x128xf32> to vector<8x128xf32>
      %488 = vector.shape_cast %482 : vector<8x128xf32> to vector<1x8x128xf32>
      tpu.vector_store %arg9[%c1_115, %c0_116, %c0_117], %488 {strides = array<i32>} : memref<2x8x128xf32, #tpu.memory_space<vmem>>, vector<1x8x128xf32>,
    } else {
    }
    %c0_i32_6 = arith.constant 0 : i32
    %12 = arith.cmpi eq, %arg1, %c0_i32_6 : i32
    %13 = arith.extui %12 : i1 to i32
    %cst_7 = arith.constant 0xFF800000 : f32
    %c0_i32_8 = arith.constant 0 : i32
    %14 = arith.cmpi ne, %13, %c0_i32_8 : i32
    scf.if %14 {
      %c0_9 = arith.constant 0 : index
      %c0_10 = arith.constant 0 : index
      %15 = vector.load %arg7[%c0_9, %c0_10] : memref<8x1xf32, #tpu.memory_space<vmem>>, vector<8x1xf32>
      %c0_11 = arith.constant 0 : index
      %c0_12 = arith.constant 0 : index
      %c0_13 = arith.constant 0 : index
      %16 = vector.load %arg9[%c0_11, %c0_12, %c0_13] : memref<2x8x128xf32, #tpu.memory_space<vmem>>, vector<1x8x128xf32>
      %17 = vector.shape_cast %16 : vector<1x8x128xf32> to vector<8x128xf32>
      %18 = vector.broadcast %15 : vector<8x1xf32> to vector<8x128xf32>
      %19 = arith.addf %17, %18 : vector<8x128xf32>
      %cst_14 = arith.constant dense<0xFF800000> : vector<128xf32>
      %20 = vector.multi_reduction <maximumf>, %19, %cst_14 [0] : vector<8x128xf32> to vector<128xf32>
      %21 = vector.shape_cast %20 : vector<128xf32> to vector<1x128xf32>
      %22 = vector.broadcast %cst_7 : f32 to vector<1x128xf32>
      %23 = arith.cmpf oeq, %21, %22 : vector<1x128xf32>
      %cst_15 = arith.constant 0.000000e+00 : f32
      %24 = vector.broadcast %cst_15 : f32 to vector<1x128xf32>
      %25 = arith.select %23, %24, %21 : vector<1x128xi1>, vector<1x128xf32>
      %26 = vector.broadcast %25 : vector<1x128xf32> to vector<8x128xf32>
      %27 = arith.subf %19, %26 : vector<8x128xf32>
      %28 = math.exp %27 : vector<8x128xf32>
      %cst_16 = arith.constant dense<0.000000e+00> : vector<128xf32>
      %29 = vector.multi_reduction <add>, %28, %cst_16 [0] : vector<8x128xf32> to vector<128xf32>
      %30 = vector.shape_cast %29 : vector<128xf32> to vector<1x128xf32>
      %31 = math.log %30 : vector<1x128xf32>
      %32 = arith.addf %25, %31 : vector<1x128xf32>
      %c1 = arith.constant 1 : index
      %c0_17 = arith.constant 0 : index
      %c0_18 = arith.constant 0 : index
      %33 = vector.load %arg9[%c1, %c0_17, %c0_18] : memref<2x8x128xf32, #tpu.memory_space<vmem>>, vector<1x8x128xf32>
      %34 = vector.shape_cast %33 : vector<1x8x128xf32> to vector<8x128xf32>
      %35 = vector.broadcast %15 : vector<8x1xf32> to vector<8x128xf32>
      %36 = arith.addf %34, %35 : vector<8x128xf32>
      %cst_19 = arith.constant dense<0xFF800000> : vector<128xf32>
      %37 = vector.multi_reduction <maximumf>, %36, %cst_19 [0] : vector<8x128xf32> to vector<128xf32>
      %38 = vector.shape_cast %37 : vector<128xf32> to vector<1x128xf32>
      %39 = vector.broadcast %cst_7 : f32 to vector<1x128xf32>
      %40 = arith.cmpf oeq, %38, %39 : vector<1x128xf32>
      %cst_20 = arith.constant 0.000000e+00 : f32
      %41 = vector.broadcast %cst_20 : f32 to vector<1x128xf32>
      %42 = arith.select %40, %41, %38 : vector<1x128xi1>, vector<1x128xf32>
      %43 = vector.broadcast %42 : vector<1x128xf32> to vector<8x128xf32>
      %44 = arith.subf %36, %43 : vector<8x128xf32>
      %45 = math.exp %44 : vector<8x128xf32>
      %cst_21 = arith.constant dense<0.000000e+00> : vector<128xf32>
      %46 = vector.multi_reduction <add>, %45, %cst_21 [0] : vector<8x128xf32> to vector<128xf32>
      %47 = vector.shape_cast %46 : vector<128xf32> to vector<1x128xf32>
      %48 = math.log %47 : vector<1x128xf32>
      %49 = arith.addf %42, %48 : vector<1x128xf32>
      %50 = tpu.concatenate %32, %49 in 0 : vector<1x128xf32>, vector<1x128xf32> -> vector<2x128xf32>
      %c0_22 = arith.constant 0 : index
      %c0_23 = arith.constant 0 : index
      %c0_24 = arith.constant 0 : index
      %51 = vector.load %arg8[%c0_22, %c0_23, %c0_24] : memref<1x2x128xf32, #tpu.memory_space<vmem>>, vector<1x2x128xf32>
      %52 = vector.shape_cast %51 : vector<1x2x128xf32> to vector<2x128xf32>
      %53 = vector.shape_cast %50 : vector<2x128xf32> to vector<1x2x128xf32>
      tpu.vector_store %arg8[%c0_22, %c0_23, %c0_24], %53 {strides = array<i32>} : memref<1x2x128xf32, #tpu.memory_space<vmem>>, vector<1x2x128xf32>,
    } else {
    }
    return
  }
  func.func @transform_0(%arg0: i32, %arg1: i32, %arg2: memref<1xi32, #tpu.memory_space<smem>>) -> (i32, i32, i32) {
    %c0_i32 = arith.constant 0 : i32
    %c0_i32_0 = arith.constant 0 : i32
    return %arg1, %c0_i32, %arg0 : i32, i32, i32
  }
  func.func @transform_1(%arg0: i32, %arg1: i32, %arg2: memref<1xi32, #tpu.memory_space<smem>>) -> (i32, i32, i32) {
    %c0_i32 = arith.constant 0 : i32
    %c0_i32_0 = arith.constant 0 : i32
    return %arg1, %c0_i32, %arg0 : i32, i32, i32
  }
  func.func @transform_2(%arg0: i32, %arg1: i32, %arg2: memref<1xi32, #tpu.memory_space<smem>>) -> (i32, i32) {
    %c0_i32 = arith.constant 0 : i32
    %c0_i32_0 = arith.constant 0 : i32
    return %c0_i32, %arg0 : i32, i32
  }
  func.func @transform_3(%arg0: i32, %arg1: i32, %arg2: memref<1xi32, #tpu.memory_space<smem>>) -> (i32, i32) {
    %c0_i32 = arith.constant 0 : i32
    %c0_i32_0 = arith.constant 0 : i32
    %c0_i32_1 = arith.constant 0 : i32
    return %c0_i32, %c0_i32_0 : i32, i32
  }
  func.func @transform_4(%arg0: i32, %arg1: i32, %arg2: memref<1xi32, #tpu.memory_space<smem>>) -> (i32, i32) {
    %c0_i32 = arith.constant 0 : i32
    %c0_i32_0 = arith.constant 0 : i32
    %c0_i32_1 = arith.constant 0 : i32
    return %c0_i32, %c0_i32_0 : i32, i32
  }
  func.func @transform_5(%arg0: i32, %arg1: i32, %arg2: memref<1xi32, #tpu.memory_space<smem>>) -> (i32, i32, i32) {
    %c0_i32 = arith.constant 0 : i32
    %c0_i32_0 = arith.constant 0 : i32
    %c0_i32_1 = arith.constant 0 : i32
    return %arg0, %c0_i32, %c0_i32_0 : i32, i32, i32
  }
}

</mosaic_0001>

<bundles_post_ra>
// kernel: linear_crf_partial_forward.1
= control target key start
LH: loop header
LB: loop body
LE: loop exit
PB: predicated region body
PF: predicated region fallthrough
CT: control target
= control target key end

     0   :  { %v27_v0 = vlaneseq  ;;  %v2268_v6 = vmov -inf   ;;  %s2928_s4 = inlined_call_operand.vmem [shape: f32[8,8], index: 4, kind: input, shape index: {}]   ;;  %s2929_s3 = inlined_call_operand.vmem [shape: s32[1,128], index: 3, kind: input, shape index: {}]   ;;  %s2930_s0 = inlined_call_operand.<no memory space> [shape: s32[1], index: 0, kind: input, shape index: {}]   ;;  %s2931_s1 = inlined_call_operand.vmem [shape: f32[8,8,128], index: 1, kind: input, shape index: {}]   ;;  %s2932_s2 = inlined_call_operand.vmem [shape: s8[8,8,128], index: 2, kind: input, shape index: {}]   ;;  %s2933_s5 = inlined_call_operand.vmem [shape: f32[8,1], index: 5, kind: input, shape index: {}]   ;;  %s2934_s6 = inlined_call_operand.vmem [shape: f32[1,2,128], index: 6, kind: output, shape index: {}]  }
   0x1   :  { %v34_v2 = vld [vmem:[%s2928_s4] sm:$0xff]  ;;  %p1944_p0 = scmp.le.s32.totalorder %s2930_s0, 0 }
   0x2   :  { %v28_v1 = vshrl.u32 %v27_v0, 7  ;;  %v2316_v11 = vld [vmem:[%s2929_s3] sm:$0x1]  ;;  %vm197_vm4 = vcmask (!%p1944_p0), 1041409   ;;  %vm199_vm5 = vcmask (!%p1944_p0), 1042434   ;;  %vm201_vm6 = vcmask (!%p1944_p0), 1043459  }
   0x3   :  { %vm1945_vm3 = vcmp.gt.s32.totalorder (!%p1944_p0), %v2316_v11, 0  ;;  %vm203_vm7 = vcmask (!%p1944_p0), 1044484   ;;  %vm205_vm8 = vcmask (!%p1944_p0), 1045509   ;;  %vm207_vm9 = vcmask (!%p1944_p0), 1046534  }
   0x4   :  { %vm29_vm0 = vcmp.eq.s32.totalorder %v28_v1, 5  ;;  %v51_v3 = vsub.s32 2, %v28_v1  ;;  %v2310_v4 = vsub.s32 0, %v28_v1  ;;  %v58_v5 = vsub.s32 3, %v28_v1 }
   0x5   :  { %v30_v7 = vsel %vm29_vm0, 0.0, %v2268_v6  ;;  %v44_v8 = vsub.s32 1, %v28_v1  ;;  %v72_v14 = vsub.s32 5, %v28_v1  ;;  %v65_v15 = vsub.s32 4, %v28_v1 }
   0x6   :  { %31 = vst [vmem:[#allocation2] sm:$0xff] %v30_v7  ;;  %33 = vst [vmem:[#allocation2 + $0x8] sm:$0xff] %v30_v7  ;;  %v52_v9 = vrot.slane %v34_v2, %v51_v3  ;;  %v38_v10 = vrot.slane %v34_v2, %v2310_v4  ;;  %v59_v12 = vrot.slane %v34_v2, %v58_v5  ;;  %v86_v18 = vsub.s32 7, %v28_v1 }
   0x7   :  { %v45_v13 = vrot.slane %v34_v2, %v44_v8  ;;  %v73_v16 = vrot.slane %v34_v2, %v72_v14  ;;  %v66_v17 = vrot.slane %v34_v2, %v65_v15  ;;  %v79_v19 = vsub.s32 6, %v28_v1 }
   0x8   :  { %54 = vbcast.lane.b32.xlu1 %v52_v9, 256  ;;  %40 = vbcast.lane.b32.xlu0 %v38_v10, 256  ;;  %v87_v20 = vrot.slane %v34_v2, %v86_v18  ;;  %vm209_vm10 = vcmask (!%p1944_p0), 1047559   ;;  %vm1948_vm15 = vcmp.gt.s32.totalorder (!%p1944_p0), %v2316_v11, 1 }
   0x9   :  { %v80_v21 = vrot.slane %v34_v2, %v79_v19 }
   0xc   :  { %61 = vbcast.lane.b32.xlu1 %v59_v12, 256  ;;  %47 = vbcast.lane.b32.xlu0 %v45_v13, 256 }
   0xd   :  { %v2337_v30 = vld [vmem:[#allocation2] sm:$0xff] (!%p1944_p0)  ;;  %v2339_v31 = vld [vmem:[#allocation2 + $0x8] sm:$0xff] (!%p1944_p0) }
   0xe   :  { %v106_v32 = vrot.slane (!%p1944_p0), %v2337_v30, 4  ;;  %v214_v33 = vrot.slane (!%p1944_p0), %v2339_v31, 4 }
  0x10   :  { %75 = vbcast.lane.b32.xlu1 %v73_v16, 256  ;;  %68 = vbcast.lane.b32.xlu0 %v66_v17, 256  ;;  %v107_v34 = vmax.f32 (!%p1944_p0), %v2337_v30, %v106_v32  ;;  %v215_v35 = vmax.f32 (!%p1944_p0), %v2339_v31, %v214_v33 }
  0x12   :  { %v108_v36 = vrot.slane (!%p1944_p0), %v107_v34, 2  ;;  %v216_v37 = vrot.slane (!%p1944_p0), %v215_v35, 2 }
  0x14   :  { %89 = vbcast.lane.b32.xlu1 %v87_v20, 256  ;;  %82 = vbcast.lane.b32.xlu0 %v80_v21, 256  ;;  %v109_v38 = vmax.f32 (!%p1944_p0), %v107_v34, %v108_v36  ;;  %v217_v39 = vmax.f32 (!%p1944_p0), %v215_v35, %v216_v37 }
  0x16   :  { %v110_v40 = vrot.slane (!%p1944_p0), %v109_v38, 1  ;;  %v218_v41 = vrot.slane (!%p1944_p0), %v217_v39, 1 }
  0x18   :  { %v111_v42 = vmax.f32 (!%p1944_p0), %v109_v38, %v110_v40  ;;  %v219_v43 = vmax.f32 (!%p1944_p0), %v217_v39, %v218_v41 }
  0x1a   :  { %vm112_vm1 = vcmp.eq.f32.partialorder (!%p1944_p0), %v111_v42, -inf  ;;  %vm220_vm2 = vcmp.eq.f32.partialorder (!%p1944_p0), %v219_v43, -inf }
  0x1b   :  { %v2345_v44 = vsel (!%p1944_p0), %vm112_vm1, 0.0, %v111_v42  ;;  %v2349_v47 = vsel (!%p1944_p0), %vm220_vm2, 0.0, %v219_v43 }
  0x1c   :  { %v114_v45 = vsub.f32 (!%p1944_p0), %v2337_v30, %v2345_v44  ;;  %v222_v48 = vsub.f32 (!%p1944_p0), %v2339_v31, %v2349_v47 }
  0x1e   :  { %v115_v46 = vmul.f32 (!%p1944_p0), 1.442695, %v114_v45  ;;  %v223_v49 = vmul.f32 (!%p1944_p0), 1.442695, %v222_v48 }
  0x20   :  { %1971 = vpow2.f32 (!%p1944_p0), %v115_v46 }
  0x21   :  { %1973 = vpow2.f32 (!%p1944_p0), %v223_v49 }
  0x2a   :  { %v1972_v50 = vpop.eup (!%p1944_p0), %1971 }
  0x2b   :  { %v1974_v35 = vpop.eup (!%p1944_p0), %1973 }
  0x7a   :  { %v2318_v22 = vpop.permute.xlu1 %54  ;;  %v2320_v23 = vpop.permute.xlu0 %40 }
  0x7b   :  { %v117_v51 = vmul.f32 (!%p1944_p0), %v1972_v50, %v2320_v23  ;;  %v119_v53 = vmul.f32 (!%p1944_p0), %v1972_v50, %v2318_v22 }
  0x7d   :  { %v125_v59 = vrot.slane (!%p1944_p0), %v117_v51, 4  ;;  %v137_v61 = vrot.slane (!%p1944_p0), %v119_v53, 4 }
  0x7e   :  { %v2322_v24 = vpop.permute.xlu1 %61  ;;  %v2324_v25 = vpop.permute.xlu0 %47 }
  0x7f   :  { %v118_v52 = vmul.f32 (!%p1944_p0), %v1972_v50, %v2324_v25  ;;  %v120_v54 = vmul.f32 (!%p1944_p0), %v1972_v50, %v2322_v24  ;;  %v126_v3 = vadd.f32 (!%p1944_p0), %v125_v59, %v117_v51  ;;  %v138_v6 = vadd.f32 (!%p1944_p0), %v137_v61, %v119_v53 }
  0x80   :  { %96 = sbr.rel (%p1944_p0) target bundleno = 761 (0x2f9), region = 29  ;;  %v226_v59 = vmul.f32 (!%p1944_p0), %v1974_v35, %v2324_v25  ;;  %v228_v61 = vmul.f32 (!%p1944_p0), %v1974_v35, %v2322_v24 }
  0x81   :  { %v131_v60 = vrot.slane (!%p1944_p0), %v118_v52, 4  ;;  %v143_v62 = vrot.slane (!%p1944_p0), %v120_v54, 4  ;;  %v127_v13 = vrot.slane (!%p1944_p0), %v126_v3, 2  ;;  %v139_v15 = vrot.slane (!%p1944_p0), %v138_v6, 2 }
  0x82   :  { %v2326_v26 = vpop.permute.xlu1 %75  ;;  %v2328_v27 = vpop.permute.xlu0 %68 }
  0x83   :  { %v121_v55 = vmul.f32 (!%p1944_p0), %v1972_v50, %v2328_v27  ;;  %v122_v56 = vmul.f32 (!%p1944_p0), %v1972_v50, %v2326_v26  ;;  %v132_v5 = vadd.f32 (!%p1944_p0), %v131_v60, %v118_v52  ;;  %v144_v7 = vadd.f32 (!%p1944_p0), %v143_v62, %v120_v54 }
  0x84   :  { %v128_v21 = vadd.f32 (!%p1944_p0), %v127_v13, %v126_v3  ;;  %v140_v33 = vadd.f32 (!%p1944_p0), %v139_v15, %v138_v6  ;;  %v227_v60 = vmul.f32 (!%p1944_p0), %v1974_v35, %v2318_v22  ;;  %v229_v62 = vmul.f32 (!%p1944_p0), %v1974_v35, %v2328_v27 }
  0x85   :  { %v149_v63 = vrot.slane (!%p1944_p0), %v121_v55, 4  ;;  %v155_v0 = vrot.slane (!%p1944_p0), %v122_v56, 4  ;;  %v133_v14 = vrot.slane (!%p1944_p0), %v132_v5, 2  ;;  %v145_v16 = vrot.slane (!%p1944_p0), %v144_v7, 2 }
  0x86   :  { %v2330_v28 = vpop.permute.xlu1 %89  ;;  %v2332_v29 = vpop.permute.xlu0 %82  ;;  %v129_v40 = vrot.slane (!%p1944_p0), %v128_v21, 1  ;;  %v141_v42 = vrot.slane (!%p1944_p0), %v140_v33, 1  ;;  %v239_v3 = vrot.slane (!%p1944_p0), %v226_v59, 4  ;;  %v251_v6 = vrot.slane (!%p1944_p0), %v228_v61, 4 }
  0x87   :  { %v123_v57 = vmul.f32 %v1972_v50, %v2332_v29  ;;  %v124_v58 = vmul.f32 %v1972_v50, %v2330_v28  ;;  %v150_v8 = vadd.f32 %v149_v63, %v121_v55  ;;  %v156_v9 = vadd.f32 %v155_v0, %v122_v56 }
  0x88   :  { %v134_v32 = vadd.f32 %v133_v14, %v132_v5  ;;  %v146_v34 = vadd.f32 %v145_v16, %v144_v7  ;;  %v130_v50 = vadd.f32 %v129_v40, %v128_v21  ;;  %v142_v52 = vadd.f32 %v141_v42, %v140_v33 }
  0x89   :  { %v161_v1 = vrot.slane %v123_v57, 4  ;;  %v167_v2 = vrot.slane %v124_v58, 4  ;;  %v151_v17 = vrot.slane %v150_v8, 2  ;;  %v157_v18 = vrot.slane %v156_v9, 2 }
  0x8a   :  { %v135_v41 = vrot.slane %v134_v32, 1  ;;  %v147_v43 = vrot.slane %v146_v34, 1  ;;  %1975 = vlog2.f32 %v130_v50  ;;  %v230_v63 = vmul.f32 %v1974_v35, %v2326_v26 }
  0x8b   :  { %v162_v10 = vadd.f32 %v161_v1, %v123_v57  ;;  %v168_v12 = vadd.f32 %v167_v2, %v124_v58  ;;  %v152_v36 = vadd.f32 %v151_v17, %v150_v8  ;;  %v158_v37 = vadd.f32 %v157_v18, %v156_v9 }
  0x8c   :  { %v136_v51 = vadd.f32 %v135_v41, %v134_v32  ;;  %v148_v53 = vadd.f32 %v147_v43, %v146_v34  ;;  %v225_v58 = vmul.f32 %v1974_v35, %v2320_v23  ;;  %v231_v0 = vmul.f32 %v1974_v35, %v2332_v29 }
  0x8d   :  { %v163_v19 = vrot.slane %v162_v10, 2  ;;  %v169_v20 = vrot.slane %v168_v12, 2  ;;  %v153_v45 = vrot.slane %v152_v36, 1  ;;  %v159_v46 = vrot.slane %v158_v37, 1 }
  0x8e   :  { %1977 = vlog2.f32 %v136_v51  ;;  %v2369_v1 = vmul.f32 %v1974_v35, %v2330_v28  ;;  %v233_v2 = vrot.slane %v225_v58, 4  ;;  %v245_v5 = vrot.slane %v227_v60, 4 }
  0x8f   :  { %v164_v38 = vadd.f32 %v163_v19, %v162_v10  ;;  %v170_v39 = vadd.f32 %v169_v20, %v168_v12  ;;  %v154_v54 = vadd.f32 %v153_v45, %v152_v36  ;;  %v160_v55 = vadd.f32 %v159_v46, %v158_v37 }
  0x90   :  { %1979 = vlog2.f32 %v142_v52  ;;  %v234_v7 = vadd.f32 %v233_v2, %v225_v58  ;;  %v257_v8 = vrot.slane %v229_v62, 4  ;;  %v263_v9 = vrot.slane %v230_v63, 4 }
  0x91   :  { %v165_v48 = vrot.slane %v164_v38, 1  ;;  %v171_v49 = vrot.slane %v170_v39, 1  ;;  %1981 = vlog2.f32 %v148_v53  ;;  %v240_v10 = vadd.f32 %v239_v3, %v226_v59 }
  0x92   :  { %1983 = vlog2.f32 %v154_v54  ;;  %v246_v12 = vadd.f32 %v245_v5, %v227_v60  ;;  %v252_v13 = vadd.f32 %v251_v6, %v228_v61  ;;  %v235_v14 = vrot.slane %v234_v7, 2 }
  0x93   :  { %v166_v56 = vadd.f32 %v165_v48, %v164_v38  ;;  %v172_v57 = vadd.f32 %v171_v49, %v170_v39  ;;  %1985 = vlog2.f32 %v160_v55  ;;  %v258_v15 = vadd.f32 %v257_v8, %v229_v62 }
  0x94   :  { %v264_v16 = vadd.f32 %v263_v9, %v230_v63  ;;  %v241_v17 = vrot.slane %v240_v10, 2  ;;  %v247_v18 = vrot.slane %v246_v12, 2  ;;  %v253_v19 = vrot.slane %v252_v13, 2  ;;  %v1976_v38 = vpop.eup %1975 }
  0x95   :  { %1987 = vlog2.f32 %v166_v56  ;;  %v236_v20 = vadd.f32 %v235_v14, %v234_v7  ;;  %v259_v21 = vrot.slane %v258_v15, 2  ;;  %v269_v33 = vrot.slane %v231_v0, 4 }
  0x96   :  { %1989 = vlog2.f32 %v172_v57  ;;  %v265_v32 = vrot.slane %v264_v16, 2  ;;  %v242_v34 = vadd.f32 %v241_v17, %v240_v10  ;;  %v248_v35 = vadd.f32 %v247_v18, %v246_v12 }
  0x97   :  { %v254_v36 = vadd.f32 %v253_v19, %v252_v13  ;;  %v275_v37 = vrot.slane %v2369_v1, 4  ;;  %v237_v39 = vrot.slane %v236_v20, 1  ;;  %v260_v40 = vadd.f32 %v259_v21, %v258_v15 }
  0x98   :  { %v266_v41 = vadd.f32 %v265_v32, %v264_v16  ;;  %v270_v42 = vadd.f32 %v269_v33, %v231_v0  ;;  %v1978_v43 = vpop.eup %1977  ;;  %v174_v45 = vmul.f32 0.6931472, %v1976_v38  ;;  %v243_v46 = vrot.slane %v242_v34, 1  ;;  %v100_v38 = vld [vmem:[%s2931_s1] sm:$0xff] }
  0x99   :  { %v249_v48 = vrot.slane %v248_v35, 1  ;;  %v255_v49 = vrot.slane %v254_v36, 1  ;;  %v176_v51 = vmul.f32 0.6931472, %v1978_v43  ;;  %v238_v52 = vadd.f32 %v237_v39, %v236_v20  ;;  %v2401_v43 = vld [vmem:[%s2932_s2] sm:$0xf]  }
  0x9a   :  { %v1980_v50 = vpop.eup %1979  ;;  %v261_v53 = vrot.slane %v260_v40, 1  ;;  %v244_v56 = vadd.f32 %v243_v46, %v242_v34  ;;  %v267_v57 = vrot.slane %v266_v41, 1  ;;  %v2269_v58 = vmov 0  }
  0x9b   :  { %v1982_v54 = vpop.eup %1981  ;;  %v178_v55 = vmul.f32 0.6931472, %v1980_v50  ;;  %v318_v59 = vsel %vm1945_vm3, 1, %v2269_v58  ;;  %v198_v62 = vsel %vm197_vm4, %v176_v51, %v174_v45  ;;  %v250_v63 = vadd.f32 %v249_v48, %v248_v35 }
  0x9c   :  { %v1984_v60 = vpop.eup %1983  ;;  %v180_v61 = vmul.f32 0.6931472, %v1982_v54  ;;  %v256_v0 = vadd.f32 %v255_v49, %v254_v36  ;;  %v271_v6 = vrot.slane %v270_v42, 2  ;;  %v276_v7 = vadd.f32 %v275_v37, %v2369_v1 }
  0x9d   :  { %v1986_v2 = vpop.eup %1985  ;;  %v182_v3 = vmul.f32 0.6931472, %v1984_v60  ;;  %v200_v5 = vsel %vm199_vm5, %v178_v55, %v198_v62  ;;  %v262_v12 = vadd.f32 %v261_v53, %v260_v40  ;;  %1991 = vlog2.f32 %v238_v52 }
  0x9e   :  { %v184_v9 = vmul.f32 0.6931472, %v1986_v2  ;;  %v202_v10 = vsel %vm201_vm6, %v180_v61, %v200_v5  ;;  %v272_v16 = vadd.f32 %v271_v6, %v270_v42  ;;  %v277_v17 = vrot.slane %v276_v7, 2 }
  0x9f   :  { %v1988_v8 = vpop.eup %1987  ;;  %v204_v15 = vsel %vm203_vm7, %v182_v3, %v202_v10  ;;  %v268_v20 = vadd.f32 %v267_v57, %v266_v41  ;;  %1993 = vlog2.f32 %v244_v56  ;;  %v322_v34 = vrot.slane %v318_v59, %v2310_v4 }
  0xa0   :  { %v1990_v13 = vpop.eup %1989  ;;  %v186_v14 = vmul.f32 0.6931472, %v1988_v8  ;;  %v206_v19 = vsel %vm205_vm8, %v184_v9, %v204_v15  ;;  %v273_v1 = vrot.slane %v272_v16, 1  ;;  %v278_v32 = vadd.f32 %v277_v17, %v276_v7 }
  0xa1   :  { %v188_v18 = vmul.f32 0.6931472, %v1990_v13  ;;  %1995 = vlog2.f32 %v250_v63  ;;  %vm2389_vm11 = vcmp.eq.s32.totalorder %v322_v34, 1  ;;  %v102_v51 = vunpack.c.0.s8 %v2401_v43 }
  0xa2   :  { %v208_v21 = vsel %vm207_vm9, %v186_v14, %v206_v19  ;;  %1997 = vlog2.f32 %v256_v0  ;;  %v274_v36 = vadd.f32 %v273_v1, %v272_v16  ;;  %v279_v37 = vrot.slane %v278_v32, 1 }
  0xa3   :  { %v210_v33 = vsel %vm209_vm10, %v188_v18, %v208_v21  ;;  %1999 = vlog2.f32 %v262_v12  ;;  %v103_v0 = vcvt.s32.f32 %v102_v51  ;;  %v2270_v17 = vmov 0.0  }
  0xa4   :  { %v212_v35 = vadd.f32 %v210_v33, %v2345_v44  ;;  %2001 = vlog2.f32 %v268_v20  ;;  %v280_v40 = vadd.f32 %v279_v37, %v278_v32 }
  0xa5   :  { %2003 = vlog2.f32 %v274_v36  ;;  %vm104_vm12 = vcmp.eq.f32.partialorder %v103_v0, 0.0 }
  0xa6   :  { %v213_v39 = vadd.f32 %v212_v35, %v100_v38  ;;  %2005 = vlog2.f32 %v280_v40  ;;  %v105_v18 = vsel %vm104_vm12, -inf, %v2270_v17 }
  0xa7   :  { %v1992_v42 = vpop.eup %1991 }
  0xa8   :  { %v2396_v44 = vsel %vm2389_vm11, %v213_v39, %v2337_v30  ;;  %v282_v46 = vmul.f32 0.6931472, %v1992_v42 }
  0xa9   :  { %v334_v45 = vrot.slane %v2396_v44, 4  ;;  %v1994_v48 = vpop.eup %1993 }
  0xaa   :  { %v284_v52 = vmul.f32 0.6931472, %v1994_v48 }
  0xab   :  { %v335_v49 = vmax.f32 %v2396_v44, %v334_v45  ;;  %v1996_v50 = vpop.eup %1995 }
  0xac   :  { %v1998_v53 = vpop.eup %1997  ;;  %v286_v54 = vmul.f32 0.6931472, %v1996_v50  ;;  %v305_v57 = vsel %vm197_vm4, %v284_v52, %v282_v46 }
  0xad   :  { %v336_v30 = vrot.slane %v335_v49, 2  ;;  %v2000_v55 = vpop.eup %1999  ;;  %v288_v56 = vmul.f32 0.6931472, %v1998_v53 }
  0xae   :  { %v2002_v59 = vpop.eup %2001  ;;  %v290_v60 = vmul.f32 0.6931472, %v2000_v55  ;;  %v306_v61 = vsel %vm199_vm5, %v286_v54, %v305_v57 }
  0xaf   :  { %v337_v62 = vmax.f32 %v335_v49, %v336_v30  ;;  %v2004_v63 = vpop.eup %2003  ;;  %v292_v2 = vmul.f32 0.6931472, %v2002_v59  ;;  %v307_v3 = vsel %vm201_vm6, %v288_v56, %v306_v61 }
  0xb0   :  { %v294_v5 = vmul.f32 0.6931472, %v2004_v63  ;;  %v308_v6 = vsel %vm203_vm7, %v290_v60, %v307_v3  ;;  %v2006_v8 = vpop.eup %2005 }
  0xb1   :  { %v338_v7 = vrot.slane %v337_v62, 1  ;;  %v309_v9 = vsel %vm205_vm8, %v292_v2, %v308_v6  ;;  %v296_v10 = vmul.f32 0.6931472, %v2006_v8 }
  0xb2   :  { %v310_v12 = vsel %vm207_vm9, %v294_v5, %v309_v9 }
  0xb3   :  { %v339_v13 = vmax.f32 %v337_v62, %v338_v7  ;;  %v311_v14 = vsel %vm209_vm10, %v296_v10, %v310_v12 }
  0xb4   :  { %v313_v15 = vadd.f32 %v311_v14, %v2349_v47 }
  0xb5   :  { %vm340_vm13 = vcmp.eq.f32.partialorder %v339_v13, -inf }
  0xb6   :  { %v2414_v16 = vsel %vm340_vm13, 0.0, %v339_v13  ;;  %v314_v20 = vadd.f32 %v313_v15, %v100_v38 }
  0xb7   :  { %v342_v19 = vsub.f32 %v2396_v44, %v2414_v16 }
  0xb8   :  { %v315_v1 = vadd.f32 %v314_v20, %v105_v18 }
  0xb9   :  { %v343_v21 = vmul.f32 1.442695, %v342_v19 }
  0xba   :  { %v2422_v32 = vsel %vm2389_vm11, %v315_v1, %v2339_v31  ;;  %vm1951_vm11 = vcmp.gt.s32.totalorder %v2316_v11, 2 }
  0xbb   :  { %2007 = vpow2.f32 %v343_v21  ;;  %v435_v33 = vrot.slane %v2422_v32, 4 }
  0xbd   :  { %v436_v47 = vmax.f32 %v2422_v32, %v435_v33 }
  0xbf   :  { %v437_v34 = vrot.slane %v436_v47, 2 }
  0xc1   :  { %v438_v35 = vmax.f32 %v436_v47, %v437_v34 }
  0xc3   :  { %v439_v37 = vrot.slane %v438_v35, 1 }
  0xc5   :  { %v2008_v36 = vpop.eup %2007 }
  0xc6   :  { %v345_v39 = vmul.f32 %v2008_v36, %v2320_v23  ;;  %v346_v38 = vmul.f32 %v2008_v36, %v2324_v25  ;;  %v347_v40 = vmul.f32 %v2008_v36, %v2318_v22  ;;  %v348_v42 = vmul.f32 %v2008_v36, %v2322_v24 }
  0xc7   :  { %v349_v41 = vmul.f32 %v2008_v36, %v2328_v27  ;;  %v350_v31 = vmul.f32 %v2008_v36, %v2326_v26  ;;  %v351_v45 = vmul.f32 %v2008_v36, %v2332_v29  ;;  %v352_v46 = vmul.f32 %v2008_v36, %v2330_v28 }
  0xc8   :  { %v353_v48 = vrot.slane %v345_v39, 4  ;;  %v359_v49 = vrot.slane %v346_v38, 4  ;;  %v365_v50 = vrot.slane %v347_v40, 4  ;;  %v371_v51 = vrot.slane %v348_v42, 4 }
  0xc9   :  { %v377_v52 = vrot.slane %v349_v41, 4  ;;  %v383_v53 = vrot.slane %v350_v31, 4  ;;  %v389_v54 = vrot.slane %v351_v45, 4  ;;  %v395_v30 = vrot.slane %v352_v46, 4 }
  0xca   :  { %v354_v55 = vadd.f32 %v353_v48, %v345_v39  ;;  %v360_v56 = vadd.f32 %v359_v49, %v346_v38  ;;  %v366_v57 = vadd.f32 %v365_v50, %v347_v40  ;;  %v372_v59 = vadd.f32 %v371_v51, %v348_v42 }
  0xcb   :  { %v378_v60 = vadd.f32 %v377_v52, %v349_v41  ;;  %v384_v61 = vadd.f32 %v383_v53, %v350_v31  ;;  %v390_v62 = vadd.f32 %v389_v54, %v351_v45  ;;  %v396_v63 = vadd.f32 %v395_v30, %v352_v46 }
  0xcc   :  { %v355_v0 = vrot.slane %v354_v55, 2  ;;  %v361_v2 = vrot.slane %v360_v56, 2  ;;  %v367_v3 = vrot.slane %v366_v57, 2  ;;  %v373_v5 = vrot.slane %v372_v59, 2 }
  0xcd   :  { %v379_v6 = vrot.slane %v378_v60, 2  ;;  %v385_v7 = vrot.slane %v384_v61, 2  ;;  %v391_v8 = vrot.slane %v390_v62, 2  ;;  %v397_v9 = vrot.slane %v396_v63, 2 }
  0xce   :  { %v356_v10 = vadd.f32 %v355_v0, %v354_v55  ;;  %v362_v12 = vadd.f32 %v361_v2, %v360_v56  ;;  %v368_v13 = vadd.f32 %v367_v3, %v366_v57  ;;  %v374_v14 = vadd.f32 %v373_v5, %v372_v59 }
  0xcf   :  { %v380_v15 = vadd.f32 %v379_v6, %v378_v60  ;;  %v386_v18 = vadd.f32 %v385_v7, %v384_v61  ;;  %v392_v19 = vadd.f32 %v391_v8, %v390_v62  ;;  %v398_v20 = vadd.f32 %v397_v9, %v396_v63 }
  0xd0   :  { %v357_v21 = vrot.slane %v356_v10, 1  ;;  %v363_v1 = vrot.slane %v362_v12, 1  ;;  %v369_v33 = vrot.slane %v368_v13, 1  ;;  %v375_v47 = vrot.slane %v374_v14, 1 }
  0xd1   :  { %v381_v34 = vrot.slane %v380_v15, 1  ;;  %v387_v36 = vrot.slane %v386_v18, 1  ;;  %v393_v42 = vrot.slane %v392_v19, 1  ;;  %v399_v31 = vrot.slane %v398_v20, 1 }
  0xd2   :  { %v358_v39 = vadd.f32 %v357_v21, %v356_v10  ;;  %v364_v38 = vadd.f32 %v363_v1, %v362_v12  ;;  %v370_v40 = vadd.f32 %v369_v33, %v368_v13  ;;  %v376_v41 = vadd.f32 %v375_v47, %v374_v14 }
  0xd3   :  { %v382_v45 = vadd.f32 %v381_v34, %v380_v15  ;;  %v440_v46 = vmax.f32 %v438_v35, %v439_v37  ;;  %v388_v48 = vadd.f32 %v387_v36, %v386_v18  ;;  %v394_v49 = vadd.f32 %v393_v42, %v392_v19 }
  0xd4   :  { %2009 = vlog2.f32 %v358_v39  ;;  %v400_v50 = vadd.f32 %v399_v31, %v398_v20  ;;  %v2442_v2 = vsel %vm1948_vm15, 1, %v2269_v58 }
  0xd5   :  { %2011 = vlog2.f32 %v364_v38  ;;  %vm441_vm14 = vcmp.eq.f32.partialorder %v440_v46, -inf  ;;  %v544_v14 = vrot.slane %v2442_v2, %v2310_v4 }
  0xd6   :  { %2013 = vlog2.f32 %v370_v40  ;;  %v2434_v51 = vsel %vm441_vm14, 0.0, %v440_v46  ;;  %v2463_v40 = vld [vmem:[%s2931_s1 + $0x8] sm:$0xff] }
  0xd7   :  { %2015 = vlog2.f32 %v376_v41  ;;  %v443_v52 = vsub.f32 %v2422_v32, %v2434_v51  ;;  %vm2466_vm0 = vcmp.eq.s32.totalorder %v544_v14, 1 }
  0xd8   :  { %2017 = vlog2.f32 %v382_v45 }
  0xd9   :  { %2019 = vlog2.f32 %v388_v48  ;;  %v444_v53 = vmul.f32 1.442695, %v443_v52 }
  0xda   :  { %2021 = vlog2.f32 %v394_v49 }
  0xdb   :  { %2023 = vlog2.f32 %v400_v50 }
  0xdc   :  { %2025 = vpow2.f32 %v444_v53 }
  0xde   :  { %v2010_v54 = vpop.eup %2009 }
  0xdf   :  { %v2012_v35 = vpop.eup %2011  ;;  %v402_v37 = vmul.f32 0.6931472, %v2010_v54 }
  0xe0   :  { %v2014_v30 = vpop.eup %2013  ;;  %v404_v55 = vmul.f32 0.6931472, %v2012_v35 }
  0xe1   :  { %v2016_v56 = vpop.eup %2015  ;;  %v406_v57 = vmul.f32 0.6931472, %v2014_v30 }
  0xe2   :  { %v2018_v59 = vpop.eup %2017  ;;  %v408_v60 = vmul.f32 0.6931472, %v2016_v56  ;;  %v425_v61 = vsel %vm197_vm4, %v404_v55, %v402_v37 }
  0xe3   :  { %v2020_v62 = vpop.eup %2019  ;;  %v410_v63 = vmul.f32 0.6931472, %v2018_v59  ;;  %v426_v0 = vsel %vm199_vm5, %v406_v57, %v425_v61 }
  0xe4   :  { %v2022_v3 = vpop.eup %2021  ;;  %v412_v5 = vmul.f32 0.6931472, %v2020_v62  ;;  %v427_v6 = vsel %vm201_vm6, %v408_v60, %v426_v0 }
  0xe5   :  { %v2024_v7 = vpop.eup %2023  ;;  %v414_v8 = vmul.f32 0.6931472, %v2022_v3  ;;  %v428_v9 = vsel %vm203_vm7, %v410_v63, %v427_v6 }
  0xe6   :  { %v2026_v10 = vpop.eup %2025  ;;  %v416_v12 = vmul.f32 0.6931472, %v2024_v7  ;;  %v429_v13 = vsel %vm205_vm8, %v412_v5, %v428_v9 }
  0xe7   :  { %v430_v15 = vsel %vm207_vm9, %v414_v8, %v429_v13  ;;  %v446_v18 = vmul.f32 %v2026_v10, %v2320_v23  ;;  %v447_v19 = vmul.f32 %v2026_v10, %v2324_v25  ;;  %v448_v20 = vmul.f32 %v2026_v10, %v2318_v22 }
  0xe8   :  { %v431_v21 = vsel %vm209_vm10, %v416_v12, %v430_v15  ;;  %v449_v1 = vmul.f32 %v2026_v10, %v2322_v24  ;;  %v450_v33 = vmul.f32 %v2026_v10, %v2328_v27  ;;  %v451_v47 = vmul.f32 %v2026_v10, %v2326_v26 }
  0xe9   :  { %v433_v34 = vadd.f32 %v431_v21, %v2414_v16  ;;  %v452_v36 = vmul.f32 %v2026_v10, %v2332_v29  ;;  %v453_v39 = vmul.f32 %v2026_v10, %v2330_v28  ;;  %v454_v38 = vrot.slane %v446_v18, 4 }
  0xea   :  { %v460_v42 = vrot.slane %v447_v19, 4  ;;  %v466_v41 = vrot.slane %v448_v20, 4  ;;  %v472_v31 = vrot.slane %v449_v1, 4  ;;  %v478_v45 = vrot.slane %v450_v33, 4 }
  0xeb   :  { %v434_v46 = vadd.f32 %v2463_v40, %v433_v34  ;;  %v455_v48 = vadd.f32 %v454_v38, %v446_v18  ;;  %v484_v49 = vrot.slane %v451_v47, 4  ;;  %v490_v50 = vrot.slane %v452_v36, 4 }
  0xec   :  { %v461_v16 = vadd.f32 %v460_v42, %v447_v19  ;;  %v467_v52 = vadd.f32 %v466_v41, %v448_v20  ;;  %v473_v53 = vadd.f32 %v472_v31, %v449_v1  ;;  %v479_v54 = vadd.f32 %v478_v45, %v450_v33 }
  0xed   :  { %v456_v35 = vrot.slane %v455_v48, 2  ;;  %v485_v37 = vadd.f32 %v484_v49, %v451_v47  ;;  %v491_v30 = vadd.f32 %v490_v50, %v452_v36  ;;  %v496_v55 = vrot.slane %v453_v39, 4 }
  0xee   :  { %v462_v56 = vrot.slane %v461_v16, 2  ;;  %v468_v57 = vrot.slane %v467_v52, 2  ;;  %v474_v59 = vrot.slane %v473_v53, 2  ;;  %v480_v60 = vrot.slane %v479_v54, 2 }
  0xef   :  { %v457_v61 = vadd.f32 %v456_v35, %v455_v48  ;;  %v486_v62 = vrot.slane %v485_v37, 2  ;;  %v492_v63 = vrot.slane %v491_v30, 2  ;;  %v497_v0 = vadd.f32 %v496_v55, %v453_v39 }
  0xf0   :  { %v463_v2 = vadd.f32 %v462_v56, %v461_v16  ;;  %v469_v3 = vadd.f32 %v468_v57, %v467_v52  ;;  %v475_v5 = vadd.f32 %v474_v59, %v473_v53  ;;  %v481_v6 = vadd.f32 %v480_v60, %v479_v54 }
  0xf1   :  { %v458_v7 = vrot.slane %v457_v61, 1  ;;  %v487_v8 = vadd.f32 %v486_v62, %v485_v37  ;;  %v493_v9 = vadd.f32 %v492_v63, %v491_v30  ;;  %v498_v10 = vrot.slane %v497_v0, 2 }
  0xf2   :  { %v464_v12 = vrot.slane %v463_v2, 1  ;;  %v470_v13 = vrot.slane %v469_v3, 1  ;;  %v476_v15 = vrot.slane %v475_v5, 1  ;;  %v482_v18 = vrot.slane %v481_v6, 1 }
  0xf3   :  { %v459_v19 = vadd.f32 %v458_v7, %v457_v61  ;;  %v488_v20 = vrot.slane %v487_v8, 1  ;;  %v494_v21 = vrot.slane %v493_v9, 1  ;;  %v499_v1 = vadd.f32 %v498_v10, %v497_v0 }
  0xf4   :  { %v465_v33 = vadd.f32 %v464_v12, %v463_v2  ;;  %v471_v47 = vadd.f32 %v470_v13, %v469_v3  ;;  %v477_v34 = vadd.f32 %v476_v15, %v475_v5  ;;  %v483_v36 = vadd.f32 %v482_v18, %v481_v6 }
  0xf5   :  { %v500_v39 = vrot.slane %v499_v1, 1  ;;  %2027 = vlog2.f32 %v459_v19  ;;  %v489_v42 = vadd.f32 %v488_v20, %v487_v8  ;;  %v2473_v41 = vsel %vm2466_vm0, %v434_v46, %v2396_v44 }
  0xf6   :  { %2029 = vlog2.f32 %v465_v33  ;;  %v495_v31 = vadd.f32 %v494_v21, %v493_v9  ;;  %v556_v45 = vrot.slane %v2473_v41, 4  ;;  %v330_v44 = vunpack.c.1.s8 %v2401_v43 }
  0xf7   :  { %2031 = vlog2.f32 %v471_v47  ;;  %v501_v48 = vadd.f32 %v500_v39, %v499_v1 }
  0xf8   :  { %2033 = vlog2.f32 %v477_v34  ;;  %v557_v49 = vmax.f32 %v2473_v41, %v556_v45  ;;  %v331_v61 = vcvt.s32.f32 %v330_v44 }
  0xf9   :  { %2035 = vlog2.f32 %v483_v36 }
  0xfa   :  { %2037 = vlog2.f32 %v489_v42  ;;  %v558_v14 = vrot.slane %v557_v49, 2  ;;  %vm332_vm2 = vcmp.eq.f32.partialorder %v331_v61, 0.0 }
  0xfb   :  { %2039 = vlog2.f32 %v495_v31  ;;  %v333_v19 = vsel %vm332_vm2, -inf, %v2270_v17 }
  0xfc   :  { %2041 = vlog2.f32 %v501_v48  ;;  %v559_v50 = vmax.f32 %v557_v49, %v558_v14 }
  0xfe   :  { %v560_v52 = vrot.slane %v559_v50, 1 }
  0xff   :  { %v2028_v16 = vpop.eup %2027 }
 0x100   :  { %v2030_v53 = vpop.eup %2029  ;;  %v503_v46 = vmul.f32 0.6931472, %v2028_v16  ;;  %v561_v37 = vmax.f32 %v559_v50, %v560_v52 }
 0x101   :  { %v2032_v54 = vpop.eup %2031  ;;  %v505_v35 = vmul.f32 0.6931472, %v2030_v53 }
 0x102   :  { %v2034_v30 = vpop.eup %2033  ;;  %v507_v55 = vmul.f32 0.6931472, %v2032_v54  ;;  %vm562_vm1 = vcmp.eq.f32.partialorder %v561_v37, -inf }
 0x103   :  { %v2036_v56 = vpop.eup %2035  ;;  %v509_v57 = vmul.f32 0.6931472, %v2034_v30  ;;  %v526_v59 = vsel %vm197_vm4, %v505_v35, %v503_v46  ;;  %v2480_v0 = vsel %vm562_vm1, 0.0, %v561_v37 }
 0x104   :  { %v2038_v60 = vpop.eup %2037  ;;  %v511_v62 = vmul.f32 0.6931472, %v2036_v56  ;;  %v527_v63 = vsel %vm199_vm5, %v507_v55, %v526_v59  ;;  %v564_v5 = vsub.f32 %v2473_v41, %v2480_v0 }
 0x105   :  { %v2040_v2 = vpop.eup %2039  ;;  %v513_v43 = vmul.f32 0.6931472, %v2038_v60  ;;  %v528_v3 = vsel %vm201_vm6, %v509_v57, %v527_v63 }
 0x106   :  { %v2042_v6 = vpop.eup %2041  ;;  %v515_v7 = vmul.f32 0.6931472, %v2040_v2  ;;  %v529_v8 = vsel %vm203_vm7, %v511_v62, %v528_v3  ;;  %v565_v12 = vmul.f32 1.442695, %v564_v5 }
 0x107   :  { %v517_v9 = vmul.f32 0.6931472, %v2042_v6  ;;  %v530_v10 = vsel %vm205_vm8, %v513_v43, %v529_v8 }
 0x108   :  { %v531_v13 = vsel %vm207_vm9, %v515_v7, %v530_v10  ;;  %2043 = vpow2.f32 %v565_v12 }
 0x109   :  { %v532_v15 = vsel %vm209_vm10, %v517_v9, %v531_v13 }
 0x10a   :  { %v534_v18 = vadd.f32 %v532_v15, %v2434_v51 }
 0x10c   :  { %v535_v20 = vadd.f32 %v2463_v40, %v534_v18 }
 0x10e   :  { %v536_v21 = vadd.f32 %v535_v20, %v333_v19 }
 0x110   :  { %v2495_v1 = vsel %vm2466_vm0, %v536_v21, %v2422_v32  ;;  %vm1954_vm0 = vcmp.gt.s32.totalorder %v2316_v11, 3 }
 0x111   :  { %v657_v33 = vrot.slane %v2495_v1, 4 }
 0x112   :  { %v2044_v47 = vpop.eup %2043 }
 0x113   :  { %v658_v34 = vmax.f32 %v2495_v1, %v657_v33  ;;  %v567_v36 = vmul.f32 %v2044_v47, %v2320_v23  ;;  %v568_v39 = vmul.f32 %v2044_v47, %v2324_v25  ;;  %v569_v51 = vmul.f32 %v2044_v47, %v2318_v22 }
 0x114   :  { %v570_v42 = vmul.f32 %v2044_v47, %v2322_v24  ;;  %v571_v40 = vmul.f32 %v2044_v47, %v2328_v27  ;;  %v572_v31 = vmul.f32 %v2044_v47, %v2326_v26  ;;  %v573_v32 = vmul.f32 %v2044_v47, %v2332_v29 }
 0x115   :  { %v574_v38 = vmul.f32 %v2044_v47, %v2330_v28  ;;  %v575_v45 = vrot.slane %v567_v36, 4  ;;  %v581_v48 = vrot.slane %v568_v39, 4  ;;  %v587_v49 = vrot.slane %v569_v51, 4 }
 0x116   :  { %v593_v14 = vrot.slane %v570_v42, 4  ;;  %v599_v50 = vrot.slane %v571_v40, 4  ;;  %v605_v16 = vrot.slane %v572_v31, 4  ;;  %v611_v52 = vrot.slane %v573_v32, 4 }
 0x117   :  { %v617_v53 = vrot.slane %v574_v38, 4  ;;  %v576_v44 = vadd.f32 %v575_v45, %v567_v36  ;;  %v582_v46 = vadd.f32 %v581_v48, %v568_v39  ;;  %v588_v54 = vadd.f32 %v587_v49, %v569_v51 }
 0x118   :  { %v594_v35 = vadd.f32 %v593_v14, %v570_v42  ;;  %v600_v37 = vadd.f32 %v599_v50, %v571_v40  ;;  %v606_v30 = vadd.f32 %v605_v16, %v572_v31  ;;  %v612_v55 = vadd.f32 %v611_v52, %v573_v32 }
 0x119   :  { %v618_v56 = vadd.f32 %v617_v53, %v574_v38  ;;  %v577_v57 = vrot.slane %v576_v44, 2  ;;  %v583_v59 = vrot.slane %v582_v46, 2  ;;  %v589_v60 = vrot.slane %v588_v54, 2 }
 0x11a   :  { %v595_v61 = vrot.slane %v594_v35, 2  ;;  %v601_v62 = vrot.slane %v600_v37, 2  ;;  %v607_v63 = vrot.slane %v606_v30, 2  ;;  %v613_v2 = vrot.slane %v612_v55, 2 }
 0x11b   :  { %v619_v43 = vrot.slane %v618_v56, 2  ;;  %v578_v3 = vadd.f32 %v577_v57, %v576_v44  ;;  %v584_v5 = vadd.f32 %v583_v59, %v582_v46  ;;  %v590_v6 = vadd.f32 %v589_v60, %v588_v54 }
 0x11c   :  { %v596_v7 = vadd.f32 %v595_v61, %v594_v35  ;;  %v602_v8 = vadd.f32 %v601_v62, %v600_v37  ;;  %v608_v9 = vadd.f32 %v607_v63, %v606_v30  ;;  %v614_v10 = vadd.f32 %v613_v2, %v612_v55 }
 0x11d   :  { %v620_v12 = vadd.f32 %v619_v43, %v618_v56  ;;  %v579_v13 = vrot.slane %v578_v3, 1  ;;  %v585_v15 = vrot.slane %v584_v5, 1  ;;  %v591_v18 = vrot.slane %v590_v6, 1 }
 0x11e   :  { %v597_v19 = vrot.slane %v596_v7, 1  ;;  %v603_v20 = vrot.slane %v602_v8, 1  ;;  %v609_v21 = vrot.slane %v608_v9, 1  ;;  %v615_v39 = vrot.slane %v614_v10, 1 }
 0x11f   :  { %v580_v33 = vadd.f32 %v579_v13, %v578_v3  ;;  %v586_v47 = vadd.f32 %v585_v15, %v584_v5  ;;  %v592_v36 = vadd.f32 %v591_v18, %v590_v6  ;;  %v621_v42 = vrot.slane %v620_v12, 1 }
 0x120   :  { %v598_v51 = vadd.f32 %v597_v19, %v596_v7  ;;  %v604_v40 = vadd.f32 %v603_v20, %v602_v8  ;;  %v659_v31 = vrot.slane %v658_v34, 2  ;;  %v610_v32 = vadd.f32 %v609_v21, %v608_v9 }
 0x121   :  { %2045 = vlog2.f32 %v580_v33  ;;  %v616_v38 = vadd.f32 %v615_v39, %v614_v10  ;;  %v622_v48 = vadd.f32 %v621_v42, %v620_v12  ;;  %v762_v10 = vsel %vm1951_vm11, 1, %v2269_v58  ;;  %v2524_v12 = vld [vmem:[%s2931_s1 + $0x10] sm:$0xff] }
 0x122   :  { %2047 = vlog2.f32 %v586_v47  ;;  %v660_v45 = vmax.f32 %v658_v34, %v659_v31  ;;  %v766_v18 = vrot.slane %v762_v10, %v2310_v4 }
 0x123   :  { %2049 = vlog2.f32 %v592_v36 }
 0x124   :  { %2051 = vlog2.f32 %v598_v51  ;;  %v661_v49 = vrot.slane %v660_v45, 1  ;;  %vm2536_vm12 = vcmp.eq.s32.totalorder %v766_v18, 1 }
 0x125   :  { %2053 = vlog2.f32 %v604_v40 }
 0x126   :  { %2055 = vlog2.f32 %v610_v32  ;;  %v662_v14 = vmax.f32 %v660_v45, %v661_v49 }
 0x127   :  { %2057 = vlog2.f32 %v616_v38 }
 0x128   :  { %2059 = vlog2.f32 %v622_v48  ;;  %vm663_vm3 = vcmp.eq.f32.partialorder %v662_v14, -inf }
 0x129   :  { %v2507_v50 = vsel %vm663_vm3, 0.0, %v662_v14 }
 0x12a   :  { %v665_v52 = vsub.f32 %v2495_v1, %v2507_v50 }
 0x12b   :  { %v2046_v16 = vpop.eup %2045 }
 0x12c   :  { %v2048_v53 = vpop.eup %2047  ;;  %v624_v44 = vmul.f32 0.6931472, %v2046_v16  ;;  %v666_v34 = vmul.f32 1.442695, %v665_v52 }
 0x12d   :  { %v2050_v46 = vpop.eup %2049  ;;  %v626_v54 = vmul.f32 0.6931472, %v2048_v53 }
 0x12e   :  { %v2052_v35 = vpop.eup %2051  ;;  %v628_v37 = vmul.f32 0.6931472, %v2050_v46  ;;  %2061 = vpow2.f32 %v666_v34 }
 0x12f   :  { %v2054_v30 = vpop.eup %2053  ;;  %v630_v55 = vmul.f32 0.6931472, %v2052_v35  ;;  %v647_v56 = vsel %vm197_vm4, %v626_v54, %v624_v44 }
 0x130   :  { %v2056_v57 = vpop.eup %2055  ;;  %v632_v59 = vmul.f32 0.6931472, %v2054_v30  ;;  %v648_v60 = vsel %vm199_vm5, %v628_v37, %v647_v56 }
 0x131   :  { %v2058_v61 = vpop.eup %2057  ;;  %v634_v62 = vmul.f32 0.6931472, %v2056_v57  ;;  %v649_v63 = vsel %vm201_vm6, %v630_v55, %v648_v60 }
 0x132   :  { %v2060_v2 = vpop.eup %2059  ;;  %v636_v43 = vmul.f32 0.6931472, %v2058_v61  ;;  %v650_v3 = vsel %vm203_vm7, %v632_v59, %v649_v63 }
 0x133   :  { %v638_v5 = vmul.f32 0.6931472, %v2060_v2  ;;  %v651_v6 = vsel %vm205_vm8, %v634_v62, %v650_v3 }
 0x134   :  { %v652_v7 = vsel %vm207_vm9, %v636_v43, %v651_v6 }
 0x135   :  { %v653_v8 = vsel %vm209_vm10, %v638_v5, %v652_v7 }
 0x136   :  { %v655_v9 = vadd.f32 %v653_v8, %v2480_v0 }
 0x138   :  { %v2062_v13 = vpop.eup %2061  ;;  %v656_v15 = vadd.f32 %v2524_v12, %v655_v9 }
 0x139   :  { %v668_v19 = vmul.f32 %v2062_v13, %v2320_v23  ;;  %v669_v20 = vmul.f32 %v2062_v13, %v2324_v25  ;;  %v670_v21 = vmul.f32 %v2062_v13, %v2318_v22  ;;  %v671_v0 = vmul.f32 %v2062_v13, %v2322_v24 }
 0x13a   :  { %v672_v33 = vmul.f32 %v2062_v13, %v2328_v27  ;;  %v673_v47 = vmul.f32 %v2062_v13, %v2326_v26  ;;  %v674_v36 = vmul.f32 %v2062_v13, %v2332_v29  ;;  %v675_v39 = vmul.f32 %v2062_v13, %v2330_v28 }
 0x13b   :  { %v676_v51 = vrot.slane %v668_v19, 4  ;;  %v682_v42 = vrot.slane %v669_v20, 4  ;;  %v688_v40 = vrot.slane %v670_v21, 4  ;;  %v694_v31 = vrot.slane %v671_v0, 4 }
 0x13c   :  { %v700_v32 = vrot.slane %v672_v33, 4  ;;  %v706_v38 = vrot.slane %v673_v47, 4  ;;  %v712_v45 = vrot.slane %v674_v36, 4  ;;  %v718_v48 = vrot.slane %v675_v39, 4 }
 0x13d   :  { %v677_v49 = vadd.f32 %v676_v51, %v668_v19  ;;  %v683_v14 = vadd.f32 %v682_v42, %v669_v20  ;;  %v689_v16 = vadd.f32 %v688_v40, %v670_v21  ;;  %v695_v52 = vadd.f32 %v694_v31, %v671_v0 }
 0x13e   :  { %v701_v53 = vadd.f32 %v700_v32, %v672_v33  ;;  %v707_v44 = vadd.f32 %v706_v38, %v673_v47  ;;  %v713_v46 = vadd.f32 %v712_v45, %v674_v36  ;;  %v719_v54 = vadd.f32 %v718_v48, %v675_v39 }
 0x13f   :  { %v678_v34 = vrot.slane %v677_v49, 2  ;;  %v684_v35 = vrot.slane %v683_v14, 2  ;;  %v690_v37 = vrot.slane %v689_v16, 2  ;;  %v696_v30 = vrot.slane %v695_v52, 2 }
 0x140   :  { %v702_v55 = vrot.slane %v701_v53, 2  ;;  %v708_v56 = vrot.slane %v707_v44, 2  ;;  %v714_v57 = vrot.slane %v713_v46, 2  ;;  %v720_v59 = vrot.slane %v719_v54, 2 }
 0x141   :  { %v679_v60 = vadd.f32 %v678_v34, %v677_v49  ;;  %v685_v61 = vadd.f32 %v684_v35, %v683_v14  ;;  %v691_v62 = vadd.f32 %v690_v37, %v689_v16  ;;  %v697_v63 = vadd.f32 %v696_v30, %v695_v52 }
 0x142   :  { %v703_v2 = vadd.f32 %v702_v55, %v701_v53  ;;  %v709_v43 = vadd.f32 %v708_v56, %v707_v44  ;;  %v715_v3 = vadd.f32 %v714_v57, %v713_v46  ;;  %v721_v5 = vadd.f32 %v720_v59, %v719_v54 }
 0x143   :  { %v680_v6 = vrot.slane %v679_v60, 1  ;;  %v686_v7 = vrot.slane %v685_v61, 1  ;;  %v692_v8 = vrot.slane %v691_v62, 1  ;;  %v698_v9 = vrot.slane %v697_v63, 1 }
 0x144   :  { %v704_v10 = vrot.slane %v703_v2, 1  ;;  %v710_v13 = vrot.slane %v709_v43, 1  ;;  %v716_v0 = vrot.slane %v715_v3, 1  ;;  %v722_v47 = vrot.slane %v721_v5, 1 }
 0x145   :  { %v681_v19 = vadd.f32 %v680_v6, %v679_v60  ;;  %v687_v20 = vadd.f32 %v686_v7, %v685_v61  ;;  %v693_v21 = vadd.f32 %v692_v8, %v691_v62  ;;  %v699_v33 = vadd.f32 %v698_v9, %v697_v63 }
 0x146   :  { %v705_v39 = vadd.f32 %v704_v10, %v703_v2  ;;  %v2543_v51 = vsel %vm2536_vm12, %v656_v15, %v2473_v41  ;;  %v711_v42 = vadd.f32 %v710_v13, %v709_v43  ;;  %v717_v31 = vadd.f32 %v716_v0, %v715_v3  ;;  %v2550_v41 = vld [vmem:[%s2932_s2 + $0x4] sm:$0xf]  }
 0x147   :  { %2063 = vlog2.f32 %v681_v19  ;;  %v778_v40 = vrot.slane %v2543_v51, 4  ;;  %v723_v32 = vadd.f32 %v722_v47, %v721_v5  ;;  %v552_v14 = vunpack.c.0.s8 %v2550_v41 }
 0x148   :  { %2065 = vlog2.f32 %v687_v20 }
 0x149   :  { %2067 = vlog2.f32 %v693_v21  ;;  %v779_v18 = vmax.f32 %v2543_v51, %v778_v40  ;;  %v553_v56 = vcvt.s32.f32 %v552_v14 }
 0x14a   :  { %2069 = vlog2.f32 %v699_v33 }
 0x14b   :  { %2071 = vlog2.f32 %v705_v39  ;;  %v780_v38 = vrot.slane %v779_v18, 2  ;;  %vm554_vm14 = vcmp.eq.f32.partialorder %v553_v56, 0.0 }
 0x14c   :  { %2073 = vlog2.f32 %v711_v42  ;;  %v555_v13 = vsel %vm554_vm14, -inf, %v2270_v17 }
 0x14d   :  { %2075 = vlog2.f32 %v717_v31  ;;  %v781_v45 = vmax.f32 %v779_v18, %v780_v38 }
 0x14e   :  { %2077 = vlog2.f32 %v723_v32 }
 0x14f   :  { %v782_v15 = vrot.slane %v781_v45, 1 }
 0x151   :  { %v2064_v48 = vpop.eup %2063  ;;  %v783_v52 = vmax.f32 %v781_v45, %v782_v15 }
 0x152   :  { %v2066_v49 = vpop.eup %2065  ;;  %v725_v16 = vmul.f32 0.6931472, %v2064_v48 }
 0x153   :  { %v2068_v53 = vpop.eup %2067  ;;  %v727_v44 = vmul.f32 0.6931472, %v2066_v49  ;;  %vm784_vm13 = vcmp.eq.f32.partialorder %v783_v52, -inf }
 0x154   :  { %v2070_v46 = vpop.eup %2069  ;;  %v729_v54 = vmul.f32 0.6931472, %v2068_v53  ;;  %v2554_v30 = vsel %vm784_vm13, 0.0, %v783_v52 }
 0x155   :  { %v2072_v34 = vpop.eup %2071  ;;  %v731_v35 = vmul.f32 0.6931472, %v2070_v46  ;;  %v748_v37 = vsel %vm197_vm4, %v727_v44, %v725_v16  ;;  %v786_v60 = vsub.f32 %v2543_v51, %v2554_v30 }
 0x156   :  { %v2074_v55 = vpop.eup %2073  ;;  %v733_v57 = vmul.f32 0.6931472, %v2072_v34  ;;  %v749_v59 = vsel %vm199_vm5, %v729_v54, %v748_v37 }
 0x157   :  { %v2076_v61 = vpop.eup %2075  ;;  %v735_v62 = vmul.f32 0.6931472, %v2074_v55  ;;  %v750_v63 = vsel %vm201_vm6, %v731_v35, %v749_v59  ;;  %v787_v5 = vmul.f32 1.442695, %v786_v60 }
 0x158   :  { %v2078_v2 = vpop.eup %2077  ;;  %v737_v43 = vmul.f32 0.6931472, %v2076_v61  ;;  %v751_v3 = vsel %vm203_vm7, %v733_v57, %v750_v63 }
 0x159   :  { %v739_v6 = vmul.f32 0.6931472, %v2078_v2  ;;  %v752_v7 = vsel %vm205_vm8, %v735_v62, %v751_v3  ;;  %2079 = vpow2.f32 %v787_v5 }
 0x15a   :  { %v753_v8 = vsel %vm207_vm9, %v737_v43, %v752_v7 }
 0x15b   :  { %v754_v9 = vsel %vm209_vm10, %v739_v6, %v753_v8 }
 0x15c   :  { %v756_v10 = vadd.f32 %v754_v9, %v2507_v50 }
 0x15e   :  { %v757_v19 = vadd.f32 %v2524_v12, %v756_v10 }
 0x160   :  { %v758_v20 = vadd.f32 %v757_v19, %v555_v13 }
 0x162   :  { %v2570_v21 = vsel %vm2536_vm12, %v758_v20, %v2495_v1  ;;  %vm1957_vm12 = vcmp.gt.s32.totalorder %v2316_v11, 4 }
 0x163   :  { %v2080_v0 = vpop.eup %2079  ;;  %v879_v33 = vrot.slane %v2570_v21, 4 }
 0x164   :  { %v789_v47 = vmul.f32 %v2080_v0, %v2320_v23  ;;  %v790_v39 = vmul.f32 %v2080_v0, %v2324_v25  ;;  %v791_v42 = vmul.f32 %v2080_v0, %v2318_v22  ;;  %v792_v50 = vmul.f32 %v2080_v0, %v2322_v24 }
 0x165   :  { %v793_v40 = vmul.f32 %v2080_v0, %v2328_v27  ;;  %v794_v12 = vmul.f32 %v2080_v0, %v2326_v26  ;;  %v795_v31 = vmul.f32 %v2080_v0, %v2332_v29  ;;  %v796_v1 = vmul.f32 %v2080_v0, %v2330_v28 }
 0x166   :  { %v797_v36 = vrot.slane %v789_v47, 4  ;;  %v803_v32 = vrot.slane %v790_v39, 4  ;;  %v809_v18 = vrot.slane %v791_v42, 4  ;;  %v815_v38 = vrot.slane %v792_v50, 4 }
 0x167   :  { %v821_v45 = vrot.slane %v793_v40, 4  ;;  %v827_v15 = vrot.slane %v794_v12, 4  ;;  %v833_v48 = vrot.slane %v795_v31, 4  ;;  %v839_v49 = vrot.slane %v796_v1, 4 }
 0x168   :  { %v798_v14 = vadd.f32 %v797_v36, %v789_v47  ;;  %v804_v16 = vadd.f32 %v803_v32, %v790_v39  ;;  %v810_v52 = vadd.f32 %v809_v18, %v791_v42  ;;  %v816_v53 = vadd.f32 %v815_v38, %v792_v50 }
 0x169   :  { %v822_v44 = vadd.f32 %v821_v45, %v793_v40  ;;  %v828_v46 = vadd.f32 %v827_v15, %v794_v12  ;;  %v834_v54 = vadd.f32 %v833_v48, %v795_v31  ;;  %v840_v34 = vadd.f32 %v839_v49, %v796_v1 }
 0x16a   :  { %v799_v35 = vrot.slane %v798_v14, 2  ;;  %v805_v37 = vrot.slane %v804_v16, 2  ;;  %v811_v55 = vrot.slane %v810_v52, 2  ;;  %v817_v56 = vrot.slane %v816_v53, 2 }
 0x16b   :  { %v823_v57 = vrot.slane %v822_v44, 2  ;;  %v829_v59 = vrot.slane %v828_v46, 2  ;;  %v835_v60 = vrot.slane %v834_v54, 2  ;;  %v841_v61 = vrot.slane %v840_v34, 2 }
 0x16c   :  { %v800_v62 = vadd.f32 %v799_v35, %v798_v14  ;;  %v806_v63 = vadd.f32 %v805_v37, %v804_v16  ;;  %v812_v2 = vadd.f32 %v811_v55, %v810_v52  ;;  %v818_v43 = vadd.f32 %v817_v56, %v816_v53 }
 0x16d   :  { %v824_v3 = vadd.f32 %v823_v57, %v822_v44  ;;  %v830_v5 = vadd.f32 %v829_v59, %v828_v46  ;;  %v836_v6 = vadd.f32 %v835_v60, %v834_v54  ;;  %v842_v7 = vadd.f32 %v841_v61, %v840_v34 }
 0x16e   :  { %v801_v8 = vrot.slane %v800_v62, 1  ;;  %v807_v9 = vrot.slane %v806_v63, 1  ;;  %v813_v10 = vrot.slane %v812_v2, 1  ;;  %v819_v13 = vrot.slane %v818_v43, 1 }
 0x16f   :  { %v825_v19 = vrot.slane %v824_v3, 1  ;;  %v831_v20 = vrot.slane %v830_v5, 1  ;;  %v837_v42 = vrot.slane %v836_v6, 1  ;;  %v843_v40 = vrot.slane %v842_v7, 1 }
 0x170   :  { %v802_v0 = vadd.f32 %v801_v8, %v800_v62  ;;  %v808_v47 = vadd.f32 %v807_v9, %v806_v63  ;;  %v814_v39 = vadd.f32 %v813_v10, %v812_v2  ;;  %v820_v50 = vadd.f32 %v819_v13, %v818_v43  ;;  %v2600_v10 = vld [vmem:[%s2931_s1 + $0x18] sm:$0xff] }
 0x171   :  { %v826_v12 = vadd.f32 %v825_v19, %v824_v3  ;;  %v880_v31 = vmax.f32 %v2570_v21, %v879_v33  ;;  %v832_v1 = vadd.f32 %v831_v20, %v830_v5  ;;  %v838_v36 = vadd.f32 %v837_v42, %v836_v6 }
 0x172   :  { %2081 = vlog2.f32 %v802_v0  ;;  %v844_v18 = vadd.f32 %v843_v40, %v842_v7  ;;  %v984_v43 = vsel %vm1954_vm0, 1, %v2269_v58 }
 0x173   :  { %2083 = vlog2.f32 %v808_v47  ;;  %v881_v32 = vrot.slane %v880_v31, 2  ;;  %v988_v8 = vrot.slane %v984_v43, %v2310_v4 }
 0x174   :  { %2085 = vlog2.f32 %v814_v39 }
 0x175   :  { %2087 = vlog2.f32 %v820_v50  ;;  %v882_v38 = vmax.f32 %v880_v31, %v881_v32  ;;  %vm2603_vm1 = vcmp.eq.s32.totalorder %v988_v8, 1 }
 0x176   :  { %2089 = vlog2.f32 %v826_v12 }
 0x177   :  { %2091 = vlog2.f32 %v832_v1  ;;  %v883_v45 = vrot.slane %v882_v38, 1 }
 0x178   :  { %2093 = vlog2.f32 %v838_v36 }
 0x179   :  { %2095 = vlog2.f32 %v844_v18  ;;  %v884_v15 = vmax.f32 %v882_v38, %v883_v45 }
 0x17b   :  { %vm885_vm15 = vcmp.eq.f32.partialorder %v884_v15, -inf }
 0x17c   :  { %v2082_v48 = vpop.eup %2081  ;;  %v2582_v16 = vsel %vm885_vm15, 0.0, %v884_v15 }
 0x17d   :  { %v2084_v49 = vpop.eup %2083  ;;  %v846_v14 = vmul.f32 0.6931472, %v2082_v48  ;;  %v887_v53 = vsub.f32 %v2570_v21, %v2582_v16 }
 0x17e   :  { %v2086_v33 = vpop.eup %2085  ;;  %v848_v52 = vmul.f32 0.6931472, %v2084_v49 }
 0x17f   :  { %v2088_v44 = vpop.eup %2087  ;;  %v850_v46 = vmul.f32 0.6931472, %v2086_v33  ;;  %v888_v37 = vmul.f32 1.442695, %v887_v53 }
 0x180   :  { %v2090_v54 = vpop.eup %2089  ;;  %v852_v34 = vmul.f32 0.6931472, %v2088_v44  ;;  %v869_v35 = vsel %vm197_vm4, %v848_v52, %v846_v14 }
 0x181   :  { %v2092_v55 = vpop.eup %2091  ;;  %v854_v56 = vmul.f32 0.6931472, %v2090_v54  ;;  %v870_v57 = vsel %vm199_vm5, %v850_v46, %v869_v35  ;;  %2097 = vpow2.f32 %v888_v37 }
 0x182   :  { %v2094_v59 = vpop.eup %2093  ;;  %v856_v60 = vmul.f32 0.6931472, %v2092_v55  ;;  %v871_v61 = vsel %vm201_vm6, %v852_v34, %v870_v57 }
 0x183   :  { %v2096_v62 = vpop.eup %2095  ;;  %v858_v63 = vmul.f32 0.6931472, %v2094_v59  ;;  %v872_v2 = vsel %vm203_vm7, %v854_v56, %v871_v61 }
 0x184   :  { %v860_v3 = vmul.f32 0.6931472, %v2096_v62  ;;  %v873_v5 = vsel %vm205_vm8, %v856_v60, %v872_v2 }
 0x185   :  { %v874_v6 = vsel %vm207_vm9, %v858_v63, %v873_v5 }
 0x186   :  { %v875_v7 = vsel %vm209_vm10, %v860_v3, %v874_v6 }
 0x187   :  { %v877_v9 = vadd.f32 %v875_v7, %v2554_v30 }
 0x189   :  { %v878_v13 = vadd.f32 %v2600_v10, %v877_v9 }
 0x18b   :  { %v2610_v20 = vsel %vm2603_vm1, %v878_v13, %v2543_v51  ;;  %v2098_v0 = vpop.eup %2097 }
 0x18c   :  { %v1000_v47 = vrot.slane %v2610_v20, 4  ;;  %v890_v30 = vmul.f32 %v2098_v0, %v2320_v23  ;;  %v891_v39 = vmul.f32 %v2098_v0, %v2324_v25  ;;  %v892_v42 = vmul.f32 %v2098_v0, %v2318_v22 }
 0x18d   :  { %v893_v50 = vmul.f32 %v2098_v0, %v2322_v24  ;;  %v894_v40 = vmul.f32 %v2098_v0, %v2328_v27  ;;  %v895_v12 = vmul.f32 %v2098_v0, %v2326_v26  ;;  %v896_v31 = vmul.f32 %v2098_v0, %v2332_v29 }
 0x18e   :  { %v897_v51 = vmul.f32 %v2098_v0, %v2330_v28  ;;  %v898_v1 = vrot.slane %v890_v30, 4  ;;  %v904_v36 = vrot.slane %v891_v39, 4  ;;  %v910_v32 = vrot.slane %v892_v42, 4 }
 0x18f   :  { %v916_v18 = vrot.slane %v893_v50, 4  ;;  %v922_v38 = vrot.slane %v894_v40, 4  ;;  %v928_v45 = vrot.slane %v895_v12, 4  ;;  %v934_v15 = vrot.slane %v896_v31, 4 }
 0x190   :  { %v940_v48 = vrot.slane %v897_v51, 4  ;;  %v899_v49 = vadd.f32 %v898_v1, %v890_v30  ;;  %v905_v14 = vadd.f32 %v904_v36, %v891_v39  ;;  %v911_v33 = vadd.f32 %v910_v32, %v892_v42 }
 0x191   :  { %v917_v52 = vadd.f32 %v916_v18, %v893_v50  ;;  %v923_v53 = vadd.f32 %v922_v38, %v894_v40  ;;  %v929_v44 = vadd.f32 %v928_v45, %v895_v12  ;;  %v935_v46 = vadd.f32 %v934_v15, %v896_v31 }
 0x192   :  { %v941_v54 = vadd.f32 %v940_v48, %v897_v51  ;;  %v900_v34 = vrot.slane %v899_v49, 2  ;;  %v906_v35 = vrot.slane %v905_v14, 2  ;;  %v912_v37 = vrot.slane %v911_v33, 2 }
 0x193   :  { %v918_v55 = vrot.slane %v917_v52, 2  ;;  %v924_v56 = vrot.slane %v923_v53, 2  ;;  %v930_v57 = vrot.slane %v929_v44, 2  ;;  %v936_v59 = vrot.slane %v935_v46, 2 }
 0x194   :  { %v942_v60 = vrot.slane %v941_v54, 2  ;;  %v901_v61 = vadd.f32 %v900_v34, %v899_v49  ;;  %v907_v62 = vadd.f32 %v906_v35, %v905_v14  ;;  %v913_v63 = vadd.f32 %v912_v37, %v911_v33 }
 0x195   :  { %v919_v2 = vadd.f32 %v918_v55, %v917_v52  ;;  %v925_v43 = vadd.f32 %v924_v56, %v923_v53  ;;  %v931_v3 = vadd.f32 %v930_v57, %v929_v44  ;;  %v937_v5 = vadd.f32 %v936_v59, %v935_v46 }
 0x196   :  { %v943_v6 = vadd.f32 %v942_v60, %v941_v54  ;;  %v902_v7 = vrot.slane %v901_v61, 1  ;;  %v908_v8 = vrot.slane %v907_v62, 1  ;;  %v914_v9 = vrot.slane %v913_v63, 1 }
 0x197   :  { %v920_v13 = vrot.slane %v919_v2, 1  ;;  %v926_v0 = vrot.slane %v925_v43, 1  ;;  %v932_v30 = vrot.slane %v931_v3, 1  ;;  %v938_v40 = vrot.slane %v937_v5, 1 }
 0x198   :  { %v903_v39 = vadd.f32 %v902_v7, %v901_v61  ;;  %v909_v42 = vadd.f32 %v908_v8, %v907_v62  ;;  %v915_v50 = vadd.f32 %v914_v9, %v913_v63  ;;  %v944_v31 = vrot.slane %v943_v6, 1 }
 0x199   :  { %v921_v12 = vadd.f32 %v920_v13, %v919_v2  ;;  %v927_v51 = vadd.f32 %v926_v0, %v925_v43  ;;  %v1001_v1 = vmax.f32 %v2610_v20, %v1000_v47  ;;  %v933_v36 = vadd.f32 %v932_v30, %v931_v3 }
 0x19a   :  { %2099 = vlog2.f32 %v903_v39  ;;  %v939_v32 = vadd.f32 %v938_v40, %v937_v5  ;;  %v945_v38 = vadd.f32 %v944_v31, %v943_v6  ;;  %v774_v54 = vunpack.c.1.s8 %v2550_v41 }
 0x19b   :  { %2101 = vlog2.f32 %v909_v42  ;;  %v1002_v18 = vrot.slane %v1001_v1, 2 }
 0x19c   :  { %2103 = vlog2.f32 %v915_v50  ;;  %v775_v43 = vcvt.s32.f32 %v774_v54 }
 0x19d   :  { %2105 = vlog2.f32 %v921_v12  ;;  %v1003_v45 = vmax.f32 %v1001_v1, %v1002_v18 }
 0x19e   :  { %2107 = vlog2.f32 %v927_v51  ;;  %vm776_vm3 = vcmp.eq.f32.partialorder %v775_v43, 0.0 }
 0x19f   :  { %2109 = vlog2.f32 %v933_v36  ;;  %v1004_v15 = vrot.slane %v1003_v45, 1  ;;  %v777_v0 = vsel %vm776_vm3, -inf, %v2270_v17 }
 0x1a0   :  { %2111 = vlog2.f32 %v939_v32 }
 0x1a1   :  { %2113 = vlog2.f32 %v945_v38  ;;  %v1005_v48 = vmax.f32 %v1003_v45, %v1004_v15 }
 0x1a3   :  { %vm1006_vm2 = vcmp.eq.f32.partialorder %v1005_v48, -inf }
 0x1a4   :  { %v2100_v49 = vpop.eup %2099  ;;  %v2622_v52 = vsel %vm1006_vm2, 0.0, %v1005_v48 }
 0x1a5   :  { %v2102_v14 = vpop.eup %2101  ;;  %v947_v33 = vmul.f32 0.6931472, %v2100_v49  ;;  %v1008_v44 = vsub.f32 %v2610_v20, %v2622_v52 }
 0x1a6   :  { %v2104_v47 = vpop.eup %2103  ;;  %v949_v53 = vmul.f32 0.6931472, %v2102_v14 }
 0x1a7   :  { %v2106_v46 = vpop.eup %2105  ;;  %v951_v34 = vmul.f32 0.6931472, %v2104_v47  ;;  %v1009_v56 = vmul.f32 1.442695, %v1008_v44 }
 0x1a8   :  { %v2108_v35 = vpop.eup %2107  ;;  %v953_v37 = vmul.f32 0.6931472, %v2106_v46  ;;  %v970_v55 = vsel %vm197_vm4, %v949_v53, %v947_v33 }
 0x1a9   :  { %v2110_v57 = vpop.eup %2109  ;;  %v955_v59 = vmul.f32 0.6931472, %v2108_v35  ;;  %v971_v60 = vsel %vm199_vm5, %v951_v34, %v970_v55  ;;  %2115 = vpow2.f32 %v1009_v56 }
 0x1aa   :  { %v2112_v61 = vpop.eup %2111  ;;  %v957_v62 = vmul.f32 0.6931472, %v2110_v57  ;;  %v972_v63 = vsel %vm201_vm6, %v953_v37, %v971_v60 }
 0x1ab   :  { %v2114_v2 = vpop.eup %2113  ;;  %v959_v3 = vmul.f32 0.6931472, %v2112_v61  ;;  %v973_v41 = vsel %vm203_vm7, %v955_v59, %v972_v63 }
 0x1ac   :  { %v961_v5 = vmul.f32 0.6931472, %v2114_v2  ;;  %v974_v6 = vsel %vm205_vm8, %v957_v62, %v973_v41 }
 0x1ad   :  { %v975_v7 = vsel %vm207_vm9, %v959_v3, %v974_v6 }
 0x1ae   :  { %v976_v8 = vsel %vm209_vm10, %v961_v5, %v975_v7 }
 0x1af   :  { %v978_v9 = vadd.f32 %v976_v8, %v2582_v16 }
 0x1b1   :  { %v979_v13 = vadd.f32 %v2600_v10, %v978_v9 }
 0x1b3   :  { %v2116_v30 = vpop.eup %2115  ;;  %v980_v39 = vadd.f32 %v979_v13, %v777_v0 }
 0x1b4   :  { %v1011_v42 = vmul.f32 %v2116_v30, %v2320_v23  ;;  %v1012_v50 = vmul.f32 %v2116_v30, %v2324_v25  ;;  %v1013_v40 = vmul.f32 %v2116_v30, %v2318_v22  ;;  %v1014_v12 = vmul.f32 %v2116_v30, %v2322_v24 }
 0x1b5   :  { %v1015_v31 = vmul.f32 %v2116_v30, %v2328_v27  ;;  %v1016_v51 = vmul.f32 %v2116_v30, %v2326_v26  ;;  %v1017_v16 = vmul.f32 %v2116_v30, %v2332_v29  ;;  %v1018_v10 = vmul.f32 %v2116_v30, %v2330_v28 }
 0x1b6   :  { %v1019_v1 = vrot.slane %v1011_v42, 4  ;;  %v1025_v36 = vrot.slane %v1012_v50, 4  ;;  %v1031_v32 = vrot.slane %v1013_v40, 4  ;;  %v1037_v18 = vrot.slane %v1014_v12, 4 }
 0x1b7   :  { %v1043_v38 = vrot.slane %v1015_v31, 4  ;;  %v1049_v45 = vrot.slane %v1016_v51, 4  ;;  %v1055_v15 = vrot.slane %v1017_v16, 4  ;;  %v1061_v33 = vrot.slane %v1018_v10, 4 }
 0x1b8   :  { %v1020_v48 = vadd.f32 %v1019_v1, %v1011_v42  ;;  %v1026_v49 = vadd.f32 %v1025_v36, %v1012_v50  ;;  %v1032_v14 = vadd.f32 %v1031_v32, %v1013_v40  ;;  %v1038_v47 = vadd.f32 %v1037_v18, %v1014_v12 }
 0x1b9   :  { %v1044_v53 = vadd.f32 %v1043_v38, %v1015_v31  ;;  %v1050_v44 = vadd.f32 %v1049_v45, %v1016_v51  ;;  %v1056_v46 = vadd.f32 %v1055_v15, %v1017_v16  ;;  %v1062_v37 = vadd.f32 %v1061_v33, %v1018_v10 }
 0x1ba   :  { %v1021_v54 = vrot.slane %v1020_v48, 2  ;;  %v1027_v34 = vrot.slane %v1026_v49, 2  ;;  %v1033_v35 = vrot.slane %v1032_v14, 2  ;;  %v1039_v55 = vrot.slane %v1038_v47, 2 }
 0x1bb   :  { %v1045_v56 = vrot.slane %v1044_v53, 2  ;;  %v1051_v57 = vrot.slane %v1050_v44, 2  ;;  %v1057_v59 = vrot.slane %v1056_v46, 2  ;;  %v1063_v63 = vrot.slane %v1062_v37, 2 }
 0x1bc   :  { %v1022_v60 = vadd.f32 %v1021_v54, %v1020_v48  ;;  %v1028_v61 = vadd.f32 %v1027_v34, %v1026_v49  ;;  %v1034_v62 = vadd.f32 %v1033_v35, %v1032_v14  ;;  %v1040_v2 = vadd.f32 %v1039_v55, %v1038_v47 }
 0x1bd   :  { %v1046_v43 = vadd.f32 %v1045_v56, %v1044_v53  ;;  %v1052_v3 = vadd.f32 %v1051_v57, %v1050_v44  ;;  %v1058_v41 = vadd.f32 %v1057_v59, %v1056_v46  ;;  %v1064_v8 = vadd.f32 %v1063_v63, %v1062_v37 }
 0x1be   :  { %v1023_v5 = vrot.slane %v1022_v60, 1  ;;  %v1029_v6 = vrot.slane %v1028_v61, 1  ;;  %v1035_v7 = vrot.slane %v1034_v62, 1  ;;  %v2648_v9 = vsel %vm2603_vm1, %v980_v39, %v2570_v21 }
 0x1bf   :  { %v1041_v13 = vrot.slane %v1040_v2, 1  ;;  %v1047_v0 = vrot.slane %v1046_v43, 1  ;;  %v1053_v30 = vrot.slane %v1052_v3, 1  ;;  %v1059_v12 = vrot.slane %v1058_v41, 1 }
 0x1c0   :  { %v1024_v42 = vadd.f32 %v1023_v5, %v1022_v60  ;;  %v1030_v50 = vadd.f32 %v1029_v6, %v1028_v61  ;;  %v1036_v40 = vadd.f32 %v1035_v7, %v1034_v62  ;;  %v1065_v51 = vrot.slane %v1064_v8, 1 }
 0x1c1   :  { %v1042_v31 = vadd.f32 %v1041_v13, %v1040_v2  ;;  %v1048_v16 = vadd.f32 %v1047_v0, %v1046_v43  ;;  %v1101_v10 = vrot.slane %v2648_v9, 4  ;;  %v1054_v1 = vadd.f32 %v1053_v30, %v1052_v3 }
 0x1c2   :  { %2117 = vlog2.f32 %v1024_v42  ;;  %v1060_v36 = vadd.f32 %v1059_v12, %v1058_v41  ;;  %v1066_v19 = vadd.f32 %v1065_v51, %v1064_v8  ;;  %v1206_v2 = vsel %vm1957_vm12, 1, %v2269_v58  ;;  %v2670_v8 = vld [vmem:[%s2931_s1 + $0x20] sm:$0xff] }
 0x1c3   :  { %2119 = vlog2.f32 %v1030_v50  ;;  %v1102_v21 = vmax.f32 %v2648_v9, %v1101_v10  ;;  %v1210_v6 = vrot.slane %v1206_v2, %v2310_v4  ;;  %vm1960_vm1 = vcmp.gt.s32.totalorder %v2316_v11, 5 }
 0x1c4   :  { %2121 = vlog2.f32 %v1036_v40 }
 0x1c5   :  { %2123 = vlog2.f32 %v1042_v31  ;;  %v1103_v39 = vrot.slane %v1102_v21, 2  ;;  %vm2673_vm13 = vcmp.eq.s32.totalorder %v1210_v6, 1 }
 0x1c6   :  { %2125 = vlog2.f32 %v1048_v16 }
 0x1c7   :  { %2127 = vlog2.f32 %v1054_v1  ;;  %v1104_v32 = vmax.f32 %v1102_v21, %v1103_v39 }
 0x1c8   :  { %2129 = vlog2.f32 %v1060_v36 }
 0x1c9   :  { %2131 = vlog2.f32 %v1066_v19  ;;  %v1105_v18 = vrot.slane %v1104_v32, 1 }
 0x1cb   :  { %v1106_v45 = vmax.f32 %v1104_v32, %v1105_v18 }
 0x1cc   :  { %v2118_v38 = vpop.eup %2117 }
 0x1cd   :  { %v2120_v15 = vpop.eup %2119  ;;  %v1068_v48 = vmul.f32 0.6931472, %v2118_v38  ;;  %vm1107_vm11 = vcmp.eq.f32.partialorder %v1106_v45, -inf }
 0x1ce   :  { %v2122_v49 = vpop.eup %2121  ;;  %v1070_v14 = vmul.f32 0.6931472, %v2120_v15  ;;  %v2652_v53 = vsel %vm1107_vm11, 0.0, %v1106_v45 }
 0x1cf   :  { %v2124_v33 = vpop.eup %2123  ;;  %v1072_v47 = vmul.f32 0.6931472, %v2122_v49  ;;  %v1109_v34 = vsub.f32 %v2648_v9, %v2652_v53 }
 0x1d0   :  { %v2126_v44 = vpop.eup %2125  ;;  %v1074_v46 = vmul.f32 0.6931472, %v2124_v33  ;;  %v1091_v54 = vsel %vm197_vm4, %v1070_v14, %v1068_v48 }
 0x1d1   :  { %v2128_v35 = vpop.eup %2127  ;;  %v1076_v37 = vmul.f32 0.6931472, %v2126_v44  ;;  %v1092_v55 = vsel %vm199_vm5, %v1072_v47, %v1091_v54  ;;  %v1110_v60 = vmul.f32 1.442695, %v1109_v34 }
 0x1d2   :  { %v2130_v56 = vpop.eup %2129  ;;  %v1078_v57 = vmul.f32 0.6931472, %v2128_v35  ;;  %v1093_v59 = vsel %vm201_vm6, %v1074_v46, %v1092_v55 }
 0x1d3   :  { %v2132_v61 = vpop.eup %2131  ;;  %v1080_v62 = vmul.f32 0.6931472, %v2130_v56  ;;  %v1094_v63 = vsel %vm203_vm7, %v1076_v37, %v1093_v59  ;;  %2133 = vpow2.f32 %v1110_v60 }
 0x1d4   :  { %v1082_v43 = vmul.f32 0.6931472, %v2132_v61  ;;  %v1095_v3 = vsel %vm205_vm8, %v1078_v57, %v1094_v63 }
 0x1d5   :  { %v1096_v41 = vsel %vm207_vm9, %v1080_v62, %v1095_v3 }
 0x1d6   :  { %v1097_v5 = vsel %vm209_vm10, %v1082_v43, %v1096_v41 }
 0x1d7   :  { %v1099_v7 = vadd.f32 %v1097_v5, %v2622_v52 }
 0x1d9   :  { %v1100_v13 = vadd.f32 %v2670_v8, %v1099_v7 }
 0x1db   :  { %v2680_v30 = vsel %vm2673_vm13, %v1100_v13, %v2610_v20 }
 0x1dc   :  { %v1222_v42 = vrot.slane %v2680_v30, 4 }
 0x1dd   :  { %v2134_v50 = vpop.eup %2133 }
 0x1de   :  { %v1223_v52 = vmax.f32 %v2680_v30, %v1222_v42  ;;  %v1112_v40 = vmul.f32 %v2134_v50, %v2320_v23  ;;  %v1113_v12 = vmul.f32 %v2134_v50, %v2324_v25  ;;  %v1114_v31 = vmul.f32 %v2134_v50, %v2318_v22 }
 0x1df   :  { %v1115_v51 = vmul.f32 %v2134_v50, %v2322_v24  ;;  %v1116_v16 = vmul.f32 %v2134_v50, %v2328_v27  ;;  %v1117_v10 = vmul.f32 %v2134_v50, %v2326_v26  ;;  %v1118_v20 = vmul.f32 %v2134_v50, %v2332_v29 }
 0x1e0   :  { %v1119_v1 = vmul.f32 %v2134_v50, %v2330_v28  ;;  %v1120_v36 = vrot.slane %v1112_v40, 4  ;;  %v1126_v21 = vrot.slane %v1113_v12, 4  ;;  %v1132_v19 = vrot.slane %v1114_v31, 4 }
 0x1e1   :  { %v1138_v39 = vrot.slane %v1115_v51, 4  ;;  %v1144_v32 = vrot.slane %v1116_v16, 4  ;;  %v1150_v18 = vrot.slane %v1117_v10, 4  ;;  %v1156_v38 = vrot.slane %v1118_v20, 4 }
 0x1e2   :  { %v1162_v45 = vrot.slane %v1119_v1, 4  ;;  %v1121_v15 = vadd.f32 %v1120_v36, %v1112_v40  ;;  %v1127_v48 = vadd.f32 %v1126_v21, %v1113_v12  ;;  %v1133_v49 = vadd.f32 %v1132_v19, %v1114_v31 }
 0x1e3   :  { %v1139_v14 = vadd.f32 %v1138_v39, %v1115_v51  ;;  %v1145_v33 = vadd.f32 %v1144_v32, %v1116_v16  ;;  %v1151_v47 = vadd.f32 %v1150_v18, %v1117_v10  ;;  %v1157_v44 = vadd.f32 %v1156_v38, %v1118_v20  ;;  %v2695_v38 = vld [vmem:[%s2932_s2 + $0x8] sm:$0xf]  }
 0x1e4   :  { %v1163_v46 = vadd.f32 %v1162_v45, %v1119_v1  ;;  %v1122_v54 = vrot.slane %v1121_v15, 2  ;;  %v1128_v34 = vrot.slane %v1127_v48, 2  ;;  %v1134_v35 = vrot.slane %v1133_v49, 2 }
 0x1e5   :  { %v1140_v37 = vrot.slane %v1139_v14, 2  ;;  %v1146_v55 = vrot.slane %v1145_v33, 2  ;;  %v1152_v56 = vrot.slane %v1151_v47, 2  ;;  %v1158_v57 = vrot.slane %v1157_v44, 2 }
 0x1e6   :  { %v1164_v59 = vrot.slane %v1163_v46, 2  ;;  %v1123_v60 = vadd.f32 %v1122_v54, %v1121_v15  ;;  %v1129_v61 = vadd.f32 %v1128_v34, %v1127_v48  ;;  %v1135_v62 = vadd.f32 %v1134_v35, %v1133_v49 }
 0x1e7   :  { %v1141_v63 = vadd.f32 %v1140_v37, %v1139_v14  ;;  %v1147_v2 = vadd.f32 %v1146_v55, %v1145_v33  ;;  %v1153_v43 = vadd.f32 %v1152_v56, %v1151_v47  ;;  %v1159_v3 = vadd.f32 %v1158_v57, %v1157_v44 }
 0x1e8   :  { %v1165_v41 = vadd.f32 %v1164_v59, %v1163_v46  ;;  %v1124_v5 = vrot.slane %v1123_v60, 1  ;;  %v1130_v6 = vrot.slane %v1129_v61, 1  ;;  %v1136_v7 = vrot.slane %v1135_v62, 1 }
 0x1e9   :  { %v1142_v13 = vrot.slane %v1141_v63, 1  ;;  %v1148_v42 = vrot.slane %v1147_v2, 1  ;;  %v1154_v50 = vrot.slane %v1153_v43, 1  ;;  %v1160_v51 = vrot.slane %v1159_v3, 1 }
 0x1ea   :  { %v1125_v40 = vadd.f32 %v1124_v5, %v1123_v60  ;;  %v1131_v12 = vadd.f32 %v1130_v6, %v1129_v61  ;;  %v1137_v31 = vadd.f32 %v1136_v7, %v1135_v62  ;;  %v1166_v10 = vrot.slane %v1165_v41, 1 }
 0x1eb   :  { %v1143_v16 = vadd.f32 %v1142_v13, %v1141_v63  ;;  %v1149_v20 = vadd.f32 %v1148_v42, %v1147_v2  ;;  %v1224_v1 = vrot.slane %v1223_v52, 2  ;;  %v1155_v36 = vadd.f32 %v1154_v50, %v1153_v43 }
 0x1ec   :  { %2135 = vlog2.f32 %v1125_v40  ;;  %v1161_v21 = vadd.f32 %v1160_v51, %v1159_v3  ;;  %v1167_v39 = vadd.f32 %v1166_v10, %v1165_v41  ;;  %v996_v49 = vunpack.c.0.s8 %v2695_v38 }
 0x1ed   :  { %2137 = vlog2.f32 %v1131_v12  ;;  %v1225_v19 = vmax.f32 %v1223_v52, %v1224_v1 }
 0x1ee   :  { %2139 = vlog2.f32 %v1137_v31  ;;  %v997_v56 = vcvt.s32.f32 %v996_v49 }
 0x1ef   :  { %2141 = vlog2.f32 %v1143_v16  ;;  %v1226_v32 = vrot.slane %v1225_v19, 1 }
 0x1f0   :  { %2143 = vlog2.f32 %v1149_v20  ;;  %vm998_vm15 = vcmp.eq.f32.partialorder %v997_v56, 0.0 }
 0x1f1   :  { %2145 = vlog2.f32 %v1155_v36  ;;  %v1227_v18 = vmax.f32 %v1225_v19, %v1226_v32  ;;  %v999_v13 = vsel %vm998_vm15, -inf, %v2270_v17 }
 0x1f2   :  { %2147 = vlog2.f32 %v1161_v21 }
 0x1f3   :  { %2149 = vlog2.f32 %v1167_v39  ;;  %vm1228_vm14 = vcmp.eq.f32.partialorder %v1227_v18, -inf }
 0x1f4   :  { %v2697_v45 = vsel %vm1228_vm14, 0.0, %v1227_v18 }
 0x1f5   :  { %v1230_v52 = vsub.f32 %v2680_v30, %v2697_v45 }
 0x1f6   :  { %v2136_v15 = vpop.eup %2135 }
 0x1f7   :  { %v2138_v48 = vpop.eup %2137  ;;  %v1169_v14 = vmul.f32 0.6931472, %v2136_v15  ;;  %v1231_v44 = vmul.f32 1.442695, %v1230_v52 }
 0x1f8   :  { %v2140_v33 = vpop.eup %2139  ;;  %v1171_v47 = vmul.f32 0.6931472, %v2138_v48 }
 0x1f9   :  { %v2142_v46 = vpop.eup %2141  ;;  %v1173_v54 = vmul.f32 0.6931472, %v2140_v33  ;;  %2151 = vpow2.f32 %v1231_v44 }
 0x1fa   :  { %v2144_v34 = vpop.eup %2143  ;;  %v1175_v35 = vmul.f32 0.6931472, %v2142_v46  ;;  %v1192_v37 = vsel %vm197_vm4, %v1171_v47, %v1169_v14 }
 0x1fb   :  { %v2146_v55 = vpop.eup %2145  ;;  %v1177_v57 = vmul.f32 0.6931472, %v2144_v34  ;;  %v1193_v59 = vsel %vm199_vm5, %v1173_v54, %v1192_v37 }
 0x1fc   :  { %v2148_v60 = vpop.eup %2147  ;;  %v1179_v61 = vmul.f32 0.6931472, %v2146_v55  ;;  %v1194_v62 = vsel %vm201_vm6, %v1175_v35, %v1193_v59 }
 0x1fd   :  { %v2150_v63 = vpop.eup %2149  ;;  %v1181_v2 = vmul.f32 0.6931472, %v2148_v60  ;;  %v1195_v43 = vsel %vm203_vm7, %v1177_v57, %v1194_v62 }
 0x1fe   :  { %v1183_v3 = vmul.f32 0.6931472, %v2150_v63  ;;  %v1196_v41 = vsel %vm205_vm8, %v1179_v61, %v1195_v43 }
 0x1ff   :  { %v1197_v5 = vsel %vm207_vm9, %v1181_v2, %v1196_v41 }
 0x200   :  { %v1198_v6 = vsel %vm209_vm10, %v1183_v3, %v1197_v5 }
 0x201   :  { %v1200_v7 = vadd.f32 %v1198_v6, %v2652_v53 }
 0x203   :  { %v1201_v42 = vadd.f32 %v2670_v8, %v1200_v7  ;;  %v2152_v50 = vpop.eup %2151 }
 0x204   :  { %v1233_v12 = vmul.f32 %v2152_v50, %v2320_v23  ;;  %v1234_v31 = vmul.f32 %v2152_v50, %v2324_v25  ;;  %v1235_v51 = vmul.f32 %v2152_v50, %v2318_v22  ;;  %v1236_v16 = vmul.f32 %v2152_v50, %v2322_v24 }
 0x205   :  { %v1202_v40 = vadd.f32 %v1201_v42, %v999_v13  ;;  %v1237_v10 = vmul.f32 %v2152_v50, %v2328_v27  ;;  %v1238_v20 = vmul.f32 %v2152_v50, %v2326_v26  ;;  %v1239_v53 = vmul.f32 %v2152_v50, %v2332_v29 }
 0x206   :  { %v1240_v1 = vmul.f32 %v2152_v50, %v2330_v28  ;;  %v1241_v36 = vrot.slane %v1233_v12, 4  ;;  %v1247_v21 = vrot.slane %v1234_v31, 4  ;;  %v1253_v19 = vrot.slane %v1235_v51, 4 }
 0x207   :  { %v2722_v8 = vsel %vm2673_vm13, %v1202_v40, %v2648_v9  ;;  %v1259_v39 = vrot.slane %v1236_v16, 4  ;;  %v1265_v32 = vrot.slane %v1237_v10, 4  ;;  %v1271_v18 = vrot.slane %v1238_v20, 4 }
 0x208   :  { %v1242_v15 = vadd.f32 %v1241_v36, %v1233_v12  ;;  %v1248_v52 = vadd.f32 %v1247_v21, %v1234_v31  ;;  %v1277_v48 = vrot.slane %v1239_v53, 4  ;;  %v1283_v49 = vrot.slane %v1240_v1, 4 }
 0x209   :  { %v1254_v14 = vadd.f32 %v1253_v19, %v1235_v51  ;;  %v1260_v33 = vadd.f32 %v1259_v39, %v1236_v16  ;;  %v1266_v47 = vadd.f32 %v1265_v32, %v1237_v10  ;;  %v1272_v44 = vadd.f32 %v1271_v18, %v1238_v20 }
 0x20a   :  { %v1243_v46 = vrot.slane %v1242_v15, 2  ;;  %v1249_v0 = vrot.slane %v1248_v52, 2  ;;  %v1278_v9 = vadd.f32 %v1277_v48, %v1239_v53  ;;  %v1284_v54 = vadd.f32 %v1283_v49, %v1240_v1 }
 0x20b   :  { %v1255_v34 = vrot.slane %v1254_v14, 2  ;;  %v1261_v35 = vrot.slane %v1260_v33, 2  ;;  %v1267_v37 = vrot.slane %v1266_v47, 2  ;;  %v1273_v55 = vrot.slane %v1272_v44, 2 }
 0x20c   :  { %v1244_v56 = vadd.f32 %v1243_v46, %v1242_v15  ;;  %v1250_v57 = vadd.f32 %v1249_v0, %v1248_v52  ;;  %v1279_v59 = vrot.slane %v1278_v9, 2  ;;  %v1285_v60 = vrot.slane %v1284_v54, 2 }
 0x20d   :  { %v1256_v61 = vadd.f32 %v1255_v34, %v1254_v14  ;;  %v1262_v62 = vadd.f32 %v1261_v35, %v1260_v33  ;;  %v1268_v63 = vadd.f32 %v1267_v37, %v1266_v47  ;;  %v1274_v2 = vadd.f32 %v1273_v55, %v1272_v44 }
 0x20e   :  { %v1245_v43 = vrot.slane %v1244_v56, 1  ;;  %v1251_v3 = vrot.slane %v1250_v57, 1  ;;  %v1280_v41 = vadd.f32 %v1279_v59, %v1278_v9  ;;  %v1286_v5 = vadd.f32 %v1285_v60, %v1284_v54 }
 0x20f   :  { %v1257_v6 = vrot.slane %v1256_v61, 1  ;;  %v1263_v7 = vrot.slane %v1262_v62, 1  ;;  %v1269_v13 = vrot.slane %v1268_v63, 1  ;;  %v1275_v42 = vrot.slane %v1274_v2, 1 }
 0x210   :  { %v1246_v50 = vadd.f32 %v1245_v43, %v1244_v56  ;;  %v1252_v40 = vadd.f32 %v1251_v3, %v1250_v57  ;;  %v1281_v12 = vrot.slane %v1280_v41, 1  ;;  %v1287_v16 = vrot.slane %v1286_v5, 1 }
 0x211   :  { %v1258_v31 = vadd.f32 %v1257_v6, %v1256_v61  ;;  %v1264_v51 = vadd.f32 %v1263_v7, %v1262_v62  ;;  %v1270_v10 = vadd.f32 %v1269_v13, %v1268_v63  ;;  %v1323_v20 = vrot.slane %v2722_v8, 4  ;;  %v2745_v7 = vld [vmem:[%s2931_s1 + $0x28] sm:$0xff] }
 0x212   :  { %2153 = vlog2.f32 %v1246_v50  ;;  %v1276_v53 = vadd.f32 %v1275_v42, %v1274_v2  ;;  %v1282_v1 = vadd.f32 %v1281_v12, %v1280_v41  ;;  %v1288_v21 = vadd.f32 %v1287_v16, %v1286_v5 }
 0x213   :  { %2155 = vlog2.f32 %v1252_v40  ;;  %v1324_v36 = vmax.f32 %v2722_v8, %v1323_v20  ;;  %v1428_v63 = vsel %vm1960_vm1, 1, %v2269_v58  ;;  %vm1963_vm13 = vcmp.gt.s32.totalorder %v2316_v11, 6 }
 0x214   :  { %2157 = vlog2.f32 %v1258_v31  ;;  %v1432_v5 = vrot.slane %v1428_v63, %v2310_v4 }
 0x215   :  { %2159 = vlog2.f32 %v1264_v51  ;;  %v1325_v19 = vrot.slane %v1324_v36, 2 }
 0x216   :  { %2161 = vlog2.f32 %v1270_v10  ;;  %vm2748_vm2 = vcmp.eq.s32.totalorder %v1432_v5, 1 }
 0x217   :  { %2163 = vlog2.f32 %v1276_v53  ;;  %v1326_v39 = vmax.f32 %v1324_v36, %v1325_v19 }
 0x218   :  { %2165 = vlog2.f32 %v1282_v1 }
 0x219   :  { %2167 = vlog2.f32 %v1288_v21  ;;  %v1327_v32 = vrot.slane %v1326_v39, 1 }
 0x21b   :  { %v1328_v15 = vmax.f32 %v1326_v39, %v1327_v32 }
 0x21c   :  { %v2154_v18 = vpop.eup %2153 }
 0x21d   :  { %v2156_v52 = vpop.eup %2155  ;;  %v1290_v48 = vmul.f32 0.6931472, %v2154_v18  ;;  %vm1329_vm0 = vcmp.eq.f32.partialorder %v1328_v15, -inf }
 0x21e   :  { %v2158_v49 = vpop.eup %2157  ;;  %v1292_v14 = vmul.f32 0.6931472, %v2156_v52  ;;  %v2727_v44 = vsel %vm1329_vm0, 0.0, %v1328_v15 }
 0x21f   :  { %v2160_v33 = vpop.eup %2159  ;;  %v1294_v47 = vmul.f32 0.6931472, %v2158_v49  ;;  %v1331_v54 = vsub.f32 %v2722_v8, %v2727_v44 }
 0x220   :  { %v2162_v46 = vpop.eup %2161  ;;  %v1296_v0 = vmul.f32 0.6931472, %v2160_v33  ;;  %v1313_v9 = vsel %vm197_vm4, %v1292_v14, %v1290_v48 }
 0x221   :  { %v2164_v34 = vpop.eup %2163  ;;  %v1298_v35 = vmul.f32 0.6931472, %v2162_v46  ;;  %v1314_v37 = vsel %vm199_vm5, %v1294_v47, %v1313_v9  ;;  %v1332_v59 = vmul.f32 1.442695, %v1331_v54 }
 0x222   :  { %v2166_v55 = vpop.eup %2165  ;;  %v1300_v56 = vmul.f32 0.6931472, %v2164_v34  ;;  %v1315_v57 = vsel %vm201_vm6, %v1296_v0, %v1314_v37 }
 0x223   :  { %v2168_v60 = vpop.eup %2167  ;;  %v1302_v61 = vmul.f32 0.6931472, %v2166_v55  ;;  %v1316_v62 = vsel %vm203_vm7, %v1298_v35, %v1315_v57  ;;  %2169 = vpow2.f32 %v1332_v59 }
 0x224   :  { %v1304_v2 = vmul.f32 0.6931472, %v2168_v60  ;;  %v1317_v43 = vsel %vm205_vm8, %v1300_v56, %v1316_v62 }
 0x225   :  { %v1318_v3 = vsel %vm207_vm9, %v1302_v61, %v1317_v43 }
 0x226   :  { %v1319_v41 = vsel %vm209_vm10, %v1304_v2, %v1318_v3 }
 0x227   :  { %v1321_v6 = vadd.f32 %v1319_v41, %v2697_v45 }
 0x229   :  { %v1322_v13 = vadd.f32 %v2745_v7, %v1321_v6 }
 0x22b   :  { %v2755_v50 = vsel %vm2748_vm2, %v1322_v13, %v2680_v30 }
 0x22c   :  { %v1444_v40 = vrot.slane %v2755_v50, 4 }
 0x22d   :  { %v2170_v12 = vpop.eup %2169 }
 0x22e   :  { %v1445_v45 = vmax.f32 %v2755_v50, %v1444_v40  ;;  %v1334_v31 = vmul.f32 %v2170_v12, %v2320_v23  ;;  %v1335_v51 = vmul.f32 %v2170_v12, %v2324_v25  ;;  %v1336_v16 = vmul.f32 %v2170_v12, %v2318_v22 }
 0x22f   :  { %v1337_v10 = vmul.f32 %v2170_v12, %v2322_v24  ;;  %v1338_v20 = vmul.f32 %v2170_v12, %v2328_v27  ;;  %v1339_v53 = vmul.f32 %v2170_v12, %v2326_v26  ;;  %v1340_v30 = vmul.f32 %v2170_v12, %v2332_v29 }
 0x230   :  { %v1341_v1 = vmul.f32 %v2170_v12, %v2330_v28  ;;  %v1342_v36 = vrot.slane %v1334_v31, 4  ;;  %v1348_v21 = vrot.slane %v1335_v51, 4  ;;  %v1354_v19 = vrot.slane %v1336_v16, 4 }
 0x231   :  { %v1360_v39 = vrot.slane %v1337_v10, 4  ;;  %v1366_v32 = vrot.slane %v1338_v20, 4  ;;  %v1372_v18 = vrot.slane %v1339_v53, 4  ;;  %v1378_v15 = vrot.slane %v1340_v30, 4 }
 0x232   :  { %v1384_v52 = vrot.slane %v1341_v1, 4  ;;  %v1343_v48 = vadd.f32 %v1342_v36, %v1334_v31  ;;  %v1349_v49 = vadd.f32 %v1348_v21, %v1335_v51  ;;  %v1355_v14 = vadd.f32 %v1354_v19, %v1336_v16 }
 0x233   :  { %v1361_v33 = vadd.f32 %v1360_v39, %v1337_v10  ;;  %v1367_v47 = vadd.f32 %v1366_v32, %v1338_v20  ;;  %v1373_v46 = vadd.f32 %v1372_v18, %v1339_v53  ;;  %v1379_v0 = vadd.f32 %v1378_v15, %v1340_v30 }
 0x234   :  { %v1385_v9 = vadd.f32 %v1384_v52, %v1341_v1  ;;  %v1344_v54 = vrot.slane %v1343_v48, 2  ;;  %v1350_v34 = vrot.slane %v1349_v49, 2  ;;  %v1356_v35 = vrot.slane %v1355_v14, 2 }
 0x235   :  { %v1362_v37 = vrot.slane %v1361_v33, 2  ;;  %v1368_v55 = vrot.slane %v1367_v47, 2  ;;  %v1374_v56 = vrot.slane %v1373_v46, 2  ;;  %v1380_v57 = vrot.slane %v1379_v0, 2 }
 0x236   :  { %v1386_v59 = vrot.slane %v1385_v9, 2  ;;  %v1345_v60 = vadd.f32 %v1344_v54, %v1343_v48  ;;  %v1351_v61 = vadd.f32 %v1350_v34, %v1349_v49  ;;  %v1357_v62 = vadd.f32 %v1356_v35, %v1355_v14 }
 0x237   :  { %v1363_v63 = vadd.f32 %v1362_v37, %v1361_v33  ;;  %v1369_v2 = vadd.f32 %v1368_v55, %v1367_v47  ;;  %v1375_v43 = vadd.f32 %v1374_v56, %v1373_v46  ;;  %v1381_v3 = vadd.f32 %v1380_v57, %v1379_v0 }
 0x238   :  { %v1387_v41 = vadd.f32 %v1386_v59, %v1385_v9  ;;  %v1346_v5 = vrot.slane %v1345_v60, 1  ;;  %v1352_v6 = vrot.slane %v1351_v61, 1  ;;  %v1358_v13 = vrot.slane %v1357_v62, 1 }
 0x239   :  { %v1364_v40 = vrot.slane %v1363_v63, 1  ;;  %v1370_v12 = vrot.slane %v1369_v2, 1  ;;  %v1376_v31 = vrot.slane %v1375_v43, 1  ;;  %v1382_v20 = vrot.slane %v1381_v3, 1 }
 0x23a   :  { %v1347_v51 = vadd.f32 %v1346_v5, %v1345_v60  ;;  %v1353_v16 = vadd.f32 %v1352_v6, %v1351_v61  ;;  %v1359_v10 = vadd.f32 %v1358_v13, %v1357_v62  ;;  %v1388_v30 = vrot.slane %v1387_v41, 1 }
 0x23b   :  { %v1365_v53 = vadd.f32 %v1364_v40, %v1363_v63  ;;  %v1371_v1 = vadd.f32 %v1370_v12, %v1369_v2  ;;  %v1446_v36 = vrot.slane %v1445_v45, 2  ;;  %v1377_v21 = vadd.f32 %v1376_v31, %v1375_v43 }
 0x23c   :  { %2171 = vlog2.f32 %v1347_v51  ;;  %v1383_v19 = vadd.f32 %v1382_v20, %v1381_v3  ;;  %v1389_v32 = vadd.f32 %v1388_v30, %v1387_v41  ;;  %v1218_v33 = vunpack.c.1.s8 %v2695_v38 }
 0x23d   :  { %2173 = vlog2.f32 %v1353_v16  ;;  %v1447_v39 = vmax.f32 %v1445_v45, %v1446_v36 }
 0x23e   :  { %2175 = vlog2.f32 %v1359_v10  ;;  %v1219_v56 = vcvt.s32.f32 %v1218_v33 }
 0x23f   :  { %2177 = vlog2.f32 %v1365_v53  ;;  %v1448_v18 = vrot.slane %v1447_v39, 1 }
 0x240   :  { %2179 = vlog2.f32 %v1371_v1  ;;  %vm1220_vm11 = vcmp.eq.f32.partialorder %v1219_v56, 0.0 }
 0x241   :  { %2181 = vlog2.f32 %v1377_v21  ;;  %v1449_v15 = vmax.f32 %v1447_v39, %v1448_v18  ;;  %v1221_v13 = vsel %vm1220_vm11, -inf, %v2270_v17 }
 0x242   :  { %2183 = vlog2.f32 %v1383_v19 }
 0x243   :  { %2185 = vlog2.f32 %v1389_v32  ;;  %vm1450_vm3 = vcmp.eq.f32.partialorder %v1449_v15, -inf }
 0x244   :  { %v2767_v52 = vsel %vm1450_vm3, 0.0, %v1449_v15 }
 0x245   :  { %v1452_v49 = vsub.f32 %v2755_v50, %v2767_v52 }
 0x246   :  { %v2172_v48 = vpop.eup %2171 }
 0x247   :  { %v2174_v14 = vpop.eup %2173  ;;  %v1391_v47 = vmul.f32 0.6931472, %v2172_v48  ;;  %v1453_v0 = vmul.f32 1.442695, %v1452_v49 }
 0x248   :  { %v2176_v45 = vpop.eup %2175  ;;  %v1393_v46 = vmul.f32 0.6931472, %v2174_v14 }
 0x249   :  { %v2178_v9 = vpop.eup %2177  ;;  %v1395_v54 = vmul.f32 0.6931472, %v2176_v45  ;;  %2187 = vpow2.f32 %v1453_v0 }
 0x24a   :  { %v2180_v34 = vpop.eup %2179  ;;  %v1397_v35 = vmul.f32 0.6931472, %v2178_v9  ;;  %v1414_v37 = vsel %vm197_vm4, %v1393_v46, %v1391_v47 }
 0x24b   :  { %v2182_v55 = vpop.eup %2181  ;;  %v1399_v57 = vmul.f32 0.6931472, %v2180_v34  ;;  %v1415_v59 = vsel %vm199_vm5, %v1395_v54, %v1414_v37 }
 0x24c   :  { %v2184_v60 = vpop.eup %2183  ;;  %v1401_v61 = vmul.f32 0.6931472, %v2182_v55  ;;  %v1416_v38 = vsel %vm201_vm6, %v1397_v35, %v1415_v59 }
 0x24d   :  { %v2186_v62 = vpop.eup %2185  ;;  %v1403_v63 = vmul.f32 0.6931472, %v2184_v60  ;;  %v1417_v2 = vsel %vm203_vm7, %v1399_v57, %v1416_v38 }
 0x24e   :  { %v1405_v43 = vmul.f32 0.6931472, %v2186_v62  ;;  %v1418_v3 = vsel %vm205_vm8, %v1401_v61, %v1417_v2 }
 0x24f   :  { %v1419_v41 = vsel %vm207_vm9, %v1403_v63, %v1418_v3 }
 0x250   :  { %v1420_v5 = vsel %vm209_vm10, %v1405_v43, %v1419_v41 }
 0x251   :  { %v1422_v6 = vadd.f32 %v1420_v5, %v2727_v44 }
 0x253   :  { %v1423_v40 = vadd.f32 %v2745_v7, %v1422_v6  ;;  %v2188_v12 = vpop.eup %2187 }
 0x254   :  { %v1455_v51 = vmul.f32 %v2188_v12, %v2320_v23  ;;  %v1456_v16 = vmul.f32 %v2188_v12, %v2324_v25  ;;  %v1457_v10 = vmul.f32 %v2188_v12, %v2318_v22  ;;  %v1458_v20 = vmul.f32 %v2188_v12, %v2322_v24 }
 0x255   :  { %v1424_v31 = vadd.f32 %v1423_v40, %v1221_v13  ;;  %v1459_v53 = vmul.f32 %v2188_v12, %v2328_v27  ;;  %v1460_v30 = vmul.f32 %v2188_v12, %v2326_v26  ;;  %v1461_v44 = vmul.f32 %v2188_v12, %v2332_v29 }
 0x256   :  { %v1462_v1 = vmul.f32 %v2188_v12, %v2330_v28  ;;  %v1463_v36 = vrot.slane %v1455_v51, 4  ;;  %v1469_v21 = vrot.slane %v1456_v16, 4  ;;  %v1475_v19 = vrot.slane %v1457_v10, 4 }
 0x257   :  { %v2792_v7 = vsel %vm2748_vm2, %v1424_v31, %v2722_v8  ;;  %v1481_v39 = vrot.slane %v1458_v20, 4  ;;  %v1487_v32 = vrot.slane %v1459_v53, 4  ;;  %v1493_v18 = vrot.slane %v1460_v30, 4 }
 0x258   :  { %v1464_v15 = vadd.f32 %v1463_v36, %v1455_v51  ;;  %v1470_v48 = vadd.f32 %v1469_v21, %v1456_v16  ;;  %v1499_v49 = vrot.slane %v1461_v44, 4  ;;  %v1505_v14 = vrot.slane %v1462_v1, 4 }
 0x259   :  { %v1476_v33 = vadd.f32 %v1475_v19, %v1457_v10  ;;  %v1482_v47 = vadd.f32 %v1481_v39, %v1458_v20  ;;  %v1488_v45 = vadd.f32 %v1487_v32, %v1459_v53  ;;  %v1494_v46 = vadd.f32 %v1493_v18, %v1460_v30 }
 0x25a   :  { %v1465_v0 = vrot.slane %v1464_v15, 2  ;;  %v1471_v42 = vrot.slane %v1470_v48, 2  ;;  %v1500_v8 = vadd.f32 %v1499_v49, %v1461_v44  ;;  %v1506_v9 = vadd.f32 %v1505_v14, %v1462_v1 }
 0x25b   :  { %v1477_v54 = vrot.slane %v1476_v33, 2  ;;  %v1483_v34 = vrot.slane %v1482_v47, 2  ;;  %v1489_v35 = vrot.slane %v1488_v45, 2  ;;  %v1495_v37 = vrot.slane %v1494_v46, 2 }
 0x25c   :  { %v1466_v55 = vadd.f32 %v1465_v0, %v1464_v15  ;;  %v1472_v56 = vadd.f32 %v1471_v42, %v1470_v48  ;;  %v1501_v57 = vrot.slane %v1500_v8, 2  ;;  %v1507_v59 = vrot.slane %v1506_v9, 2 }
 0x25d   :  { %v1478_v60 = vadd.f32 %v1477_v54, %v1476_v33  ;;  %v1484_v61 = vadd.f32 %v1483_v34, %v1482_v47  ;;  %v1490_v38 = vadd.f32 %v1489_v35, %v1488_v45  ;;  %v1496_v62 = vadd.f32 %v1495_v37, %v1494_v46 }
 0x25e   :  { %v1467_v63 = vrot.slane %v1466_v55, 1  ;;  %v1473_v2 = vrot.slane %v1472_v56, 1  ;;  %v1502_v43 = vadd.f32 %v1501_v57, %v1500_v8  ;;  %v1508_v3 = vadd.f32 %v1507_v59, %v1506_v9 }
 0x25f   :  { %v1479_v41 = vrot.slane %v1478_v60, 1  ;;  %v1485_v5 = vrot.slane %v1484_v61, 1  ;;  %v1491_v6 = vrot.slane %v1490_v38, 1  ;;  %v1497_v13 = vrot.slane %v1496_v62, 1 }
 0x260   :  { %v1468_v40 = vadd.f32 %v1467_v63, %v1466_v55  ;;  %v1474_v12 = vadd.f32 %v1473_v2, %v1472_v56  ;;  %v1503_v31 = vrot.slane %v1502_v43, 1  ;;  %v1509_v10 = vrot.slane %v1508_v3, 1 }
 0x261   :  { %v1480_v51 = vadd.f32 %v1479_v41, %v1478_v60  ;;  %v1486_v16 = vadd.f32 %v1485_v5, %v1484_v61  ;;  %v1492_v20 = vadd.f32 %v1491_v6, %v1490_v38  ;;  %v1545_v53 = vrot.slane %v2792_v7, 4  ;;  %v2815_v41 = vld [vmem:[%s2931_s1 + $0x30] sm:$0xff] }
 0x262   :  { %2189 = vlog2.f32 %v1468_v40  ;;  %v1498_v30 = vadd.f32 %v1497_v13, %v1496_v62  ;;  %v1504_v44 = vadd.f32 %v1503_v31, %v1502_v43  ;;  %v1510_v36 = vadd.f32 %v1509_v10, %v1508_v3 }
 0x263   :  { %2191 = vlog2.f32 %v1474_v12  ;;  %v1546_v1 = vmax.f32 %v2792_v7, %v1545_v53  ;;  %v1650_v61 = vsel %vm1963_vm13, 1, %v2269_v58  ;;  %vm1966_vm2 = vcmp.gt.s32.totalorder %v2316_v11, 7 }
 0x264   :  { %2193 = vlog2.f32 %v1480_v51  ;;  %v1654_v43 = vrot.slane %v1650_v61, %v2310_v4 }
 0x265   :  { %2195 = vlog2.f32 %v1486_v16  ;;  %v1547_v21 = vrot.slane %v1546_v1, 2 }
 0x266   :  { %2197 = vlog2.f32 %v1492_v20  ;;  %vm2818_vm14 = vcmp.eq.s32.totalorder %v1654_v43, 1 }
 0x267   :  { %2199 = vlog2.f32 %v1498_v30  ;;  %v1548_v19 = vmax.f32 %v1546_v1, %v1547_v21 }
 0x268   :  { %2201 = vlog2.f32 %v1504_v44 }
 0x269   :  { %2203 = vlog2.f32 %v1510_v36  ;;  %v1549_v39 = vrot.slane %v1548_v19, 1 }
 0x26b   :  { %v1550_v18 = vmax.f32 %v1548_v19, %v1549_v39 }
 0x26c   :  { %v2190_v32 = vpop.eup %2189 }
 0x26d   :  { %v2192_v15 = vpop.eup %2191  ;;  %v1512_v48 = vmul.f32 0.6931472, %v2190_v32  ;;  %vm1551_vm12 = vcmp.eq.f32.partialorder %v1550_v18, -inf }
 0x26e   :  { %v2194_v49 = vpop.eup %2193  ;;  %v1514_v14 = vmul.f32 0.6931472, %v2192_v15  ;;  %v2797_v45 = vsel %vm1551_vm12, 0.0, %v1550_v18 }
 0x26f   :  { %v2196_v33 = vpop.eup %2195  ;;  %v1516_v47 = vmul.f32 0.6931472, %v2194_v49  ;;  %v1553_v8 = vsub.f32 %v2792_v7, %v2797_v45 }
 0x270   :  { %v2198_v46 = vpop.eup %2197  ;;  %v1518_v0 = vmul.f32 0.6931472, %v2196_v33  ;;  %v1535_v42 = vsel %vm197_vm4, %v1514_v14, %v1512_v48 }
 0x271   :  { %v2200_v9 = vpop.eup %2199  ;;  %v1520_v54 = vmul.f32 0.6931472, %v2198_v46  ;;  %v1536_v34 = vsel %vm199_vm5, %v1516_v47, %v1535_v42  ;;  %v1554_v56 = vmul.f32 1.442695, %v1553_v8 }
 0x272   :  { %v2202_v35 = vpop.eup %2201  ;;  %v1522_v37 = vmul.f32 0.6931472, %v2200_v9  ;;  %v1537_v55 = vsel %vm201_vm6, %v1518_v0, %v1536_v34 }
 0x273   :  { %v2204_v57 = vpop.eup %2203  ;;  %v1524_v59 = vmul.f32 0.6931472, %v2202_v35  ;;  %v1538_v60 = vsel %vm203_vm7, %v1520_v54, %v1537_v55  ;;  %2205 = vpow2.f32 %v1554_v56 }
 0x274   :  { %v1526_v38 = vmul.f32 0.6931472, %v2204_v57  ;;  %v1539_v62 = vsel %vm205_vm8, %v1522_v37, %v1538_v60 }
 0x275   :  { %v1540_v63 = vsel %vm207_vm9, %v1524_v59, %v1539_v62 }
 0x276   :  { %v1541_v2 = vsel %vm209_vm10, %v1526_v38, %v1540_v63 }
 0x277   :  { %v1543_v3 = vadd.f32 %v1541_v2, %v2767_v52 }
 0x279   :  { %v1544_v5 = vadd.f32 %v2815_v41, %v1543_v3 }
 0x27b   :  { %v2825_v13 = vsel %vm2818_vm14, %v1544_v5, %v2755_v50 }
 0x27c   :  { %v1666_v40 = vrot.slane %v2825_v13, 4 }
 0x27d   :  { %v2206_v12 = vpop.eup %2205 }
 0x27e   :  { %v1667_v52 = vmax.f32 %v2825_v13, %v1666_v40  ;;  %v1556_v31 = vmul.f32 %v2206_v12, %v2320_v23  ;;  %v1557_v51 = vmul.f32 %v2206_v12, %v2324_v25  ;;  %v1558_v16 = vmul.f32 %v2206_v12, %v2318_v22 }
 0x27f   :  { %v1559_v10 = vmul.f32 %v2206_v12, %v2322_v24  ;;  %v1560_v20 = vmul.f32 %v2206_v12, %v2328_v27  ;;  %v1561_v53 = vmul.f32 %v2206_v12, %v2326_v26  ;;  %v1562_v50 = vmul.f32 %v2206_v12, %v2332_v29 }
 0x280   :  { %v1563_v30 = vmul.f32 %v2206_v12, %v2330_v28  ;;  %v1564_v44 = vrot.slane %v1556_v31, 4  ;;  %v1570_v1 = vrot.slane %v1557_v51, 4  ;;  %v1576_v36 = vrot.slane %v1558_v16, 4 }
 0x281   :  { %v1582_v21 = vrot.slane %v1559_v10, 4  ;;  %v1588_v19 = vrot.slane %v1560_v20, 4  ;;  %v1594_v39 = vrot.slane %v1561_v53, 4  ;;  %v1600_v32 = vrot.slane %v1562_v50, 4 }
 0x282   :  { %v1606_v18 = vrot.slane %v1563_v30, 4  ;;  %v1565_v15 = vadd.f32 %v1564_v44, %v1556_v31  ;;  %v1571_v48 = vadd.f32 %v1570_v1, %v1557_v51  ;;  %v1577_v49 = vadd.f32 %v1576_v36, %v1558_v16 }
 0x283   :  { %v1583_v14 = vadd.f32 %v1582_v21, %v1559_v10  ;;  %v1589_v33 = vadd.f32 %v1588_v19, %v1560_v20  ;;  %v1595_v47 = vadd.f32 %v1594_v39, %v1561_v53  ;;  %v1601_v46 = vadd.f32 %v1600_v32, %v1562_v50  ;;  %v2840_v32 = vld [vmem:[%s2932_s2 + $0xc] sm:$0xf]  }
 0x284   :  { %v1607_v0 = vadd.f32 %v1606_v18, %v1563_v30  ;;  %v1566_v42 = vrot.slane %v1565_v15, 2  ;;  %v1572_v8 = vrot.slane %v1571_v48, 2  ;;  %v1578_v9 = vrot.slane %v1577_v49, 2 }
 0x285   :  { %v1584_v54 = vrot.slane %v1583_v14, 2  ;;  %v1590_v34 = vrot.slane %v1589_v33, 2  ;;  %v1596_v35 = vrot.slane %v1595_v47, 2  ;;  %v1602_v37 = vrot.slane %v1601_v46, 2 }
 0x286   :  { %v1608_v55 = vrot.slane %v1607_v0, 2  ;;  %v1567_v56 = vadd.f32 %v1566_v42, %v1565_v15  ;;  %v1573_v57 = vadd.f32 %v1572_v8, %v1571_v48  ;;  %v1579_v59 = vadd.f32 %v1578_v9, %v1577_v49 }
 0x287   :  { %v1585_v60 = vadd.f32 %v1584_v54, %v1583_v14  ;;  %v1591_v61 = vadd.f32 %v1590_v34, %v1589_v33  ;;  %v1597_v38 = vadd.f32 %v1596_v35, %v1595_v47  ;;  %v1603_v62 = vadd.f32 %v1602_v37, %v1601_v46 }
 0x288   :  { %v1609_v63 = vadd.f32 %v1608_v55, %v1607_v0  ;;  %v1568_v2 = vrot.slane %v1567_v56, 1  ;;  %v1574_v43 = vrot.slane %v1573_v57, 1  ;;  %v1580_v3 = vrot.slane %v1579_v59, 1 }
 0x289   :  { %v1586_v5 = vrot.slane %v1585_v60, 1  ;;  %v1592_v40 = vrot.slane %v1591_v61, 1  ;;  %v1598_v12 = vrot.slane %v1597_v38, 1  ;;  %v1604_v10 = vrot.slane %v1603_v62, 1 }
 0x28a   :  { %v1569_v31 = vadd.f32 %v1568_v2, %v1567_v56  ;;  %v1575_v51 = vadd.f32 %v1574_v43, %v1573_v57  ;;  %v1581_v16 = vadd.f32 %v1580_v3, %v1579_v59  ;;  %v1610_v53 = vrot.slane %v1609_v63, 1 }
 0x28b   :  { %v1587_v20 = vadd.f32 %v1586_v5, %v1585_v60  ;;  %v1593_v50 = vadd.f32 %v1592_v40, %v1591_v61  ;;  %v1668_v30 = vrot.slane %v1667_v52, 2  ;;  %v1599_v44 = vadd.f32 %v1598_v12, %v1597_v38 }
 0x28c   :  { %2207 = vlog2.f32 %v1569_v31  ;;  %v1605_v1 = vadd.f32 %v1604_v10, %v1603_v62  ;;  %v1611_v21 = vadd.f32 %v1610_v53, %v1609_v63  ;;  %v1440_v49 = vunpack.c.0.s8 %v2840_v32 }
 0x28d   :  { %2209 = vlog2.f32 %v1575_v51  ;;  %v1669_v36 = vmax.f32 %v1667_v52, %v1668_v30 }
 0x28e   :  { %2211 = vlog2.f32 %v1581_v16  ;;  %v1441_v35 = vcvt.s32.f32 %v1440_v49 }
 0x28f   :  { %2213 = vlog2.f32 %v1587_v20  ;;  %v1670_v19 = vrot.slane %v1669_v36, 1 }
 0x290   :  { %2215 = vlog2.f32 %v1593_v50  ;;  %vm1442_vm0 = vcmp.eq.f32.partialorder %v1441_v35, 0.0 }
 0x291   :  { %2217 = vlog2.f32 %v1599_v44  ;;  %v1671_v39 = vmax.f32 %v1669_v36, %v1670_v19  ;;  %v1443_v5 = vsel %vm1442_vm0, -inf, %v2270_v17 }
 0x292   :  { %2219 = vlog2.f32 %v1605_v1 }
 0x293   :  { %2221 = vlog2.f32 %v1611_v21  ;;  %vm1672_vm15 = vcmp.eq.f32.partialorder %v1671_v39, -inf }
 0x294   :  { %v2842_v18 = vsel %vm1672_vm15, 0.0, %v1671_v39 }
 0x295   :  { %v1674_v52 = vsub.f32 %v2825_v13, %v2842_v18 }
 0x296   :  { %v2208_v15 = vpop.eup %2207 }
 0x297   :  { %v2210_v48 = vpop.eup %2209  ;;  %v1613_v14 = vmul.f32 0.6931472, %v2208_v15  ;;  %v1675_v46 = vmul.f32 1.442695, %v1674_v52 }
 0x298   :  { %v2212_v33 = vpop.eup %2211  ;;  %v1615_v47 = vmul.f32 0.6931472, %v2210_v48 }
 0x299   :  { %v2214_v0 = vpop.eup %2213  ;;  %v1617_v42 = vmul.f32 0.6931472, %v2212_v33  ;;  %2223 = vpow2.f32 %v1675_v46 }
 0x29a   :  { %v2216_v8 = vpop.eup %2215  ;;  %v1619_v9 = vmul.f32 0.6931472, %v2214_v0  ;;  %v1636_v54 = vsel %vm197_vm4, %v1615_v47, %v1613_v14 }
 0x29b   :  { %v2218_v34 = vpop.eup %2217  ;;  %v1621_v37 = vmul.f32 0.6931472, %v2216_v8  ;;  %v1637_v55 = vsel %vm199_vm5, %v1617_v42, %v1636_v54 }
 0x29c   :  { %v2220_v56 = vpop.eup %2219  ;;  %v1623_v57 = vmul.f32 0.6931472, %v2218_v34  ;;  %v1638_v59 = vsel %vm201_vm6, %v1619_v9, %v1637_v55 }
 0x29d   :  { %v2222_v60 = vpop.eup %2221  ;;  %v1625_v61 = vmul.f32 0.6931472, %v2220_v56  ;;  %v1639_v38 = vsel %vm203_vm7, %v1621_v37, %v1638_v59 }
 0x29e   :  { %v1627_v62 = vmul.f32 0.6931472, %v2222_v60  ;;  %v1640_v63 = vsel %vm205_vm8, %v1623_v57, %v1639_v38 }
 0x29f   :  { %v1641_v2 = vsel %vm207_vm9, %v1625_v61, %v1640_v63 }
 0x2a0   :  { %v1642_v43 = vsel %vm209_vm10, %v1627_v62, %v1641_v2 }
 0x2a1   :  { %v1644_v3 = vadd.f32 %v1642_v43, %v2797_v45 }
 0x2a3   :  { %v1645_v40 = vadd.f32 %v2815_v41, %v1644_v3  ;;  %v2224_v12 = vpop.eup %2223 }
 0x2a4   :  { %v1677_v51 = vmul.f32 %v2224_v12, %v2320_v23  ;;  %v1678_v16 = vmul.f32 %v2224_v12, %v2324_v25  ;;  %v1679_v10 = vmul.f32 %v2224_v12, %v2318_v22  ;;  %v1680_v20 = vmul.f32 %v2224_v12, %v2322_v24 }
 0x2a5   :  { %v1646_v31 = vadd.f32 %v1645_v40, %v1443_v5  ;;  %v1681_v53 = vmul.f32 %v2224_v12, %v2328_v27  ;;  %v1682_v50 = vmul.f32 %v2224_v12, %v2326_v26  ;;  %v1683_v45 = vmul.f32 %v2224_v12, %v2332_v29 }
 0x2a6   :  { %v1684_v30 = vmul.f32 %v2224_v12, %v2330_v28  ;;  %v1685_v44 = vrot.slane %v1677_v51, 4  ;;  %v1691_v1 = vrot.slane %v1678_v16, 4  ;;  %v1697_v36 = vrot.slane %v1679_v10, 4 }
 0x2a7   :  { %v2867_v41 = vsel %vm2818_vm14, %v1646_v31, %v2792_v7  ;;  %v1703_v21 = vrot.slane %v1680_v20, 4  ;;  %v1709_v19 = vrot.slane %v1681_v53, 4  ;;  %v1715_v39 = vrot.slane %v1682_v50, 4 }
 0x2a8   :  { %v1686_v15 = vadd.f32 %v1685_v44, %v1677_v51  ;;  %v1692_v52 = vadd.f32 %v1691_v1, %v1678_v16  ;;  %v1721_v48 = vrot.slane %v1683_v45, 4  ;;  %v1727_v49 = vrot.slane %v1684_v30, 4 }
 0x2a9   :  { %v1698_v14 = vadd.f32 %v1697_v36, %v1679_v10  ;;  %v1704_v33 = vadd.f32 %v1703_v21, %v1680_v20  ;;  %v1710_v47 = vadd.f32 %v1709_v19, %v1681_v53  ;;  %v1716_v46 = vadd.f32 %v1715_v39, %v1682_v50 }
 0x2aa   :  { %v1687_v0 = vrot.slane %v1686_v15, 2  ;;  %v1693_v6 = vrot.slane %v1692_v52, 2  ;;  %v1722_v7 = vadd.f32 %v1721_v48, %v1683_v45  ;;  %v1728_v42 = vadd.f32 %v1727_v49, %v1684_v30 }
 0x2ab   :  { %v1699_v8 = vrot.slane %v1698_v14, 2  ;;  %v1705_v9 = vrot.slane %v1704_v33, 2  ;;  %v1711_v54 = vrot.slane %v1710_v47, 2  ;;  %v1717_v34 = vrot.slane %v1716_v46, 2 }
 0x2ac   :  { %v1688_v35 = vadd.f32 %v1687_v0, %v1686_v15  ;;  %v1694_v37 = vadd.f32 %v1693_v6, %v1692_v52  ;;  %v1723_v55 = vrot.slane %v1722_v7, 2  ;;  %v1729_v56 = vrot.slane %v1728_v42, 2 }
 0x2ad   :  { %v1700_v57 = vadd.f32 %v1699_v8, %v1698_v14  ;;  %v1706_v59 = vadd.f32 %v1705_v9, %v1704_v33  ;;  %v1712_v60 = vadd.f32 %v1711_v54, %v1710_v47  ;;  %v1718_v61 = vadd.f32 %v1717_v34, %v1716_v46 }
 0x2ae   :  { %v1689_v38 = vrot.slane %v1688_v35, 1  ;;  %v1695_v62 = vrot.slane %v1694_v37, 1  ;;  %v1724_v63 = vadd.f32 %v1723_v55, %v1722_v7  ;;  %v1730_v2 = vadd.f32 %v1729_v56, %v1728_v42 }
 0x2af   :  { %v1701_v43 = vrot.slane %v1700_v57, 1  ;;  %v1707_v3 = vrot.slane %v1706_v59, 1  ;;  %v1713_v5 = vrot.slane %v1712_v60, 1  ;;  %v1719_v40 = vrot.slane %v1718_v61, 1 }
 0x2b0   :  { %v1690_v12 = vadd.f32 %v1689_v38, %v1688_v35  ;;  %v1696_v31 = vadd.f32 %v1695_v62, %v1694_v37  ;;  %v1725_v51 = vrot.slane %v1724_v63, 1  ;;  %v1731_v20 = vrot.slane %v1730_v2, 1 }
 0x2b1   :  { %v1702_v16 = vadd.f32 %v1701_v43, %v1700_v57  ;;  %v1708_v10 = vadd.f32 %v1707_v3, %v1706_v59  ;;  %v1714_v53 = vadd.f32 %v1713_v5, %v1712_v60  ;;  %v1767_v50 = vrot.slane %v2867_v41, 4 }
 0x2b2   :  { %2225 = vlog2.f32 %v1690_v12  ;;  %v1720_v45 = vadd.f32 %v1719_v40, %v1718_v61  ;;  %v1726_v30 = vadd.f32 %v1725_v51, %v1724_v63  ;;  %v1732_v1 = vadd.f32 %v1731_v20, %v1730_v2  ;;  %v2890_v2 = vld [vmem:[%s2931_s1 + $0x38] sm:$0xff] }
 0x2b3   :  { %2227 = vlog2.f32 %v1696_v31  ;;  %v1768_v44 = vmax.f32 %v2867_v41, %v1767_v50  ;;  %v1872_v34 = vsel %vm1966_vm2, 1, %v2269_v58 }
 0x2b4   :  { %2229 = vlog2.f32 %v1702_v16  ;;  %v1876_v38 = vrot.slane %v1872_v34, %v2310_v4 }
 0x2b5   :  { %2231 = vlog2.f32 %v1708_v10  ;;  %v1769_v36 = vrot.slane %v1768_v44, 2 }
 0x2b6   :  { %2233 = vlog2.f32 %v1714_v53  ;;  %vm2892_vm3 = vcmp.eq.s32.totalorder %v1876_v38, 1 }
 0x2b7   :  { %2235 = vlog2.f32 %v1720_v45  ;;  %v1770_v21 = vmax.f32 %v1768_v44, %v1769_v36 }
 0x2b8   :  { %2237 = vlog2.f32 %v1726_v30 }
 0x2b9   :  { %2239 = vlog2.f32 %v1732_v1  ;;  %v1771_v19 = vrot.slane %v1770_v21, 1 }
 0x2bb   :  { %v1772_v15 = vmax.f32 %v1770_v21, %v1771_v19 }
 0x2bc   :  { %v2226_v39 = vpop.eup %2225 }
 0x2bd   :  { %v2228_v52 = vpop.eup %2227  ;;  %v1734_v48 = vmul.f32 0.6931472, %v2226_v39  ;;  %vm1773_vm1 = vcmp.eq.f32.partialorder %v1772_v15, -inf }
 0x2be   :  { %v2230_v49 = vpop.eup %2229  ;;  %v1736_v14 = vmul.f32 0.6931472, %v2228_v52  ;;  %v2873_v46 = vsel %vm1773_vm1, 0.0, %v1772_v15 }
 0x2bf   :  { %v2232_v33 = vpop.eup %2231  ;;  %v1738_v47 = vmul.f32 0.6931472, %v2230_v49  ;;  %v1775_v42 = vsub.f32 %v2867_v41, %v2873_v46 }
 0x2c0   :  { %v2234_v0 = vpop.eup %2233  ;;  %v1740_v6 = vmul.f32 0.6931472, %v2232_v33  ;;  %v1757_v7 = vsel %vm197_vm4, %v1736_v14, %v1734_v48 }
 0x2c1   :  { %v2236_v8 = vpop.eup %2235  ;;  %v1742_v9 = vmul.f32 0.6931472, %v2234_v0  ;;  %v1758_v54 = vsel %vm199_vm5, %v1738_v47, %v1757_v7  ;;  %v1776_v55 = vmul.f32 1.442695, %v1775_v42 }
 0x2c2   :  { %v2238_v35 = vpop.eup %2237  ;;  %v1744_v37 = vmul.f32 0.6931472, %v2236_v8  ;;  %v1759_v11 = vsel %vm201_vm6, %v1740_v6, %v1758_v54 }
 0x2c3   :  { %v2240_v56 = vpop.eup %2239  ;;  %v1746_v57 = vmul.f32 0.6931472, %v2238_v35  ;;  %v1760_v59 = vsel %vm203_vm7, %v1742_v9, %v1759_v11  ;;  %2241 = vpow2.f32 %v1776_v55 }
 0x2c4   :  { %v1748_v60 = vmul.f32 0.6931472, %v2240_v56  ;;  %v1761_v61 = vsel %vm205_vm8, %v1744_v37, %v1760_v59 }
 0x2c5   :  { %v1762_v62 = vsel %vm207_vm9, %v1746_v57, %v1761_v61 }
 0x2c6   :  { %v1763_v63 = vsel %vm209_vm10, %v1748_v60, %v1762_v62 }
 0x2c7   :  { %v1765_v58 = vadd.f32 %v1763_v63, %v2842_v18 }
 0x2c9   :  { %v1766_v3 = vadd.f32 %v2890_v2, %v1765_v58 }
 0x2cb   :  { %v1878_v4 = vsel %vm2892_vm3, %v1766_v3, %v2825_v13 }
 0x2cc   :  { %1880 = vst [vmem:[#allocation2] sm:$0xff] %v1878_v4 }
 0x2cd   :  { %v2242_v5 = vpop.eup %2241 }
 0x2ce   :  { %v1778_v40 = vmul.f32 %v2242_v5, %v2320_v23  ;;  %v1779_v18 = vmul.f32 %v2242_v5, %v2324_v25  ;;  %v1780_v12 = vmul.f32 %v2242_v5, %v2318_v22  ;;  %v1781_v31 = vmul.f32 %v2242_v5, %v2322_v24 }
 0x2cf   :  { %v1782_v51 = vmul.f32 %v2242_v5, %v2328_v27  ;;  %v1783_v16 = vmul.f32 %v2242_v5, %v2326_v26  ;;  %v1784_v10 = vmul.f32 %v2242_v5, %v2332_v29  ;;  %v1785_v20 = vmul.f32 %v2242_v5, %v2330_v28 }
 0x2d0   :  { %v1786_v53 = vrot.slane %v1778_v40, 4  ;;  %v1792_v13 = vrot.slane %v1779_v18, 4  ;;  %v1798_v50 = vrot.slane %v1780_v12, 4  ;;  %v1804_v45 = vrot.slane %v1781_v31, 4 }
 0x2d1   :  { %v1810_v30 = vrot.slane %v1782_v51, 4  ;;  %v1816_v23 = vrot.slane %v1783_v16, 4  ;;  %v1822_v44 = vrot.slane %v1784_v10, 4  ;;  %v1828_v25 = vrot.slane %v1785_v20, 4 }
 0x2d2   :  { %v1787_v1 = vadd.f32 %v1786_v53, %v1778_v40  ;;  %v1793_v22 = vadd.f32 %v1792_v13, %v1779_v18  ;;  %v1799_v36 = vadd.f32 %v1798_v50, %v1780_v12  ;;  %v1805_v24 = vadd.f32 %v1804_v45, %v1781_v31 }
 0x2d3   :  { %v1811_v21 = vadd.f32 %v1810_v30, %v1782_v51  ;;  %v1817_v27 = vadd.f32 %v1816_v23, %v1783_v16  ;;  %v1823_v19 = vadd.f32 %v1822_v44, %v1784_v10  ;;  %v1829_v26 = vadd.f32 %v1828_v25, %v1785_v20 }
 0x2d4   :  { %v1788_v39 = vrot.slane %v1787_v1, 2  ;;  %v1794_v29 = vrot.slane %v1793_v22, 2  ;;  %v1800_v15 = vrot.slane %v1799_v36, 2  ;;  %v1806_v28 = vrot.slane %v1805_v24, 2 }
 0x2d5   :  { %v1812_v52 = vrot.slane %v1811_v21, 2  ;;  %v1818_v48 = vrot.slane %v1817_v27, 2  ;;  %v1824_v49 = vrot.slane %v1823_v19, 2  ;;  %v1830_v14 = vrot.slane %v1829_v26, 2 }
 0x2d6   :  { %v1789_v33 = vadd.f32 %v1788_v39, %v1787_v1  ;;  %v1795_v47 = vadd.f32 %v1794_v29, %v1793_v22  ;;  %v1801_v0 = vadd.f32 %v1800_v15, %v1799_v36  ;;  %v1807_v6 = vadd.f32 %v1806_v28, %v1805_v24 }
 0x2d7   :  { %v1813_v7 = vadd.f32 %v1812_v52, %v1811_v21  ;;  %v1819_v42 = vadd.f32 %v1818_v48, %v1817_v27  ;;  %v1825_v8 = vadd.f32 %v1824_v49, %v1823_v19  ;;  %v1831_v9 = vadd.f32 %v1830_v14, %v1829_v26 }
 0x2d8   :  { %v1790_v54 = vrot.slane %v1789_v33, 1  ;;  %v1796_v34 = vrot.slane %v1795_v47, 1  ;;  %v1802_v35 = vrot.slane %v1801_v0, 1  ;;  %v1808_v37 = vrot.slane %v1807_v6, 1 }
 0x2d9   :  { %v1814_v11 = vrot.slane %v1813_v7, 1  ;;  %v1820_v55 = vrot.slane %v1819_v42, 1  ;;  %v1826_v60 = vrot.slane %v1825_v8, 1  ;;  %v1832_v38 = vrot.slane %v1831_v9, 1 }
 0x2da   :  { %v1791_v56 = vadd.f32 %v1790_v54, %v1789_v33  ;;  %v1797_v57 = vadd.f32 %v1796_v34, %v1795_v47  ;;  %v1803_v59 = vadd.f32 %v1802_v35, %v1801_v0  ;;  %v1809_v61 = vadd.f32 %v1808_v37, %v1807_v6 }
 0x2db   :  { %v1815_v62 = vadd.f32 %v1814_v11, %v1813_v7  ;;  %v1821_v63 = vadd.f32 %v1820_v55, %v1819_v42  ;;  %v1827_v58 = vadd.f32 %v1826_v60, %v1825_v8  ;;  %v1833_v3 = vadd.f32 %v1832_v38, %v1831_v9 }
 0x2dc   :  { %2243 = vlog2.f32 %v1791_v56  ;;  %v1662_v40 = vunpack.c.1.s8 %v2840_v32 }
 0x2dd   :  { %2245 = vlog2.f32 %v1797_v57 }
 0x2de   :  { %2247 = vlog2.f32 %v1803_v59  ;;  %v1663_v50 = vcvt.s32.f32 %v1662_v40 }
 0x2df   :  { %2249 = vlog2.f32 %v1809_v61 }
 0x2e0   :  { %2251 = vlog2.f32 %v1815_v62  ;;  %vm1664_vm11 = vcmp.eq.f32.partialorder %v1663_v50, 0.0 }
 0x2e1   :  { %2253 = vlog2.f32 %v1821_v63  ;;  %v1665_v26 = vsel %vm1664_vm11, -inf, %v2270_v17 }
 0x2e2   :  { %2255 = vlog2.f32 %v1827_v58 }
 0x2e3   :  { %2257 = vlog2.f32 %v1833_v3 }
 0x2e6   :  { %v2244_v4 = vpop.eup %2243 }
 0x2e7   :  { %v2246_v5 = vpop.eup %2245  ;;  %v1835_v18 = vmul.f32 0.6931472, %v2244_v4 }
 0x2e8   :  { %v2248_v12 = vpop.eup %2247  ;;  %v1837_v31 = vmul.f32 0.6931472, %v2246_v5 }
 0x2e9   :  { %v2250_v51 = vpop.eup %2249  ;;  %v1839_v16 = vmul.f32 0.6931472, %v2248_v12 }
 0x2ea   :  { %v2252_v10 = vpop.eup %2251  ;;  %v1841_v20 = vmul.f32 0.6931472, %v2250_v51  ;;  %v1858_v53 = vsel %vm197_vm4, %v1837_v31, %v1835_v18 }
 0x2eb   :  { %v2254_v13 = vpop.eup %2253  ;;  %v1843_v45 = vmul.f32 0.6931472, %v2252_v10  ;;  %v1859_v30 = vsel %vm199_vm5, %v1839_v16, %v1858_v53 }
 0x2ec   :  { %v2256_v23 = vpop.eup %2255  ;;  %v1845_v44 = vmul.f32 0.6931472, %v2254_v13  ;;  %v1860_v25 = vsel %vm201_vm6, %v1841_v20, %v1859_v30 }
 0x2ed   :  { %v2258_v1 = vpop.eup %2257  ;;  %v1847_v32 = vmul.f32 0.6931472, %v2256_v23  ;;  %v1861_v22 = vsel %vm203_vm7, %v1843_v45, %v1860_v25 }
 0x2ee   :  { %v1849_v36 = vmul.f32 0.6931472, %v2258_v1  ;;  %v1862_v24 = vsel %vm205_vm8, %v1845_v44, %v1861_v22 }
 0x2ef   :  { %v1863_v21 = vsel %vm207_vm9, %v1847_v32, %v1862_v24 }
 0x2f0   :  { %v1864_v27 = vsel %vm209_vm10, %v1849_v36, %v1863_v21 }
 0x2f1   :  { %v1866_v19 = vadd.f32 %v1864_v27, %v2873_v46 }
 0x2f3   :  { %v1867_v39 = vadd.f32 %v2890_v2, %v1866_v19 }
 0x2f5   :  { %v1868_v29 = vadd.f32 %v1867_v39, %v1665_v26 }
 0x2f7   :  { %v1879_v15 = vsel %vm2892_vm3, %v1868_v29, %v2867_v41 }
 0x2f8   :  { %1881 = vst [vmem:[#allocation2 + $0x8] sm:$0xff] %v1879_v15 }
 0x2f9 PF:  { %v1885_v28 = vld [vmem:[%s2933_s5] sm:$0xff]  ;;  %v2271_v52 = vmov 0   ;;  %vm1936_vm6 = vcmask 1040384  }
 0x2fa   :  { %2259 = vset.pattern.permute.xlu0 %v2271_v52  ;;  %v1886_v48 = vld [vmem:[#allocation2] sm:$0xff] }
 0x2fb   :  { %1889 = vperm.xlu0 %2259, %v1885_v28  }
 0x2ff   :  { %v1914_v46 = vld [vmem:[#allocation2 + $0x8] sm:$0xff] }
 0x37a   :  { %v1890_v49 = vpop.permute.xlu0 %1889 }
 0x37b   :  { %v1892_v17 = vadd.f32 %v1890_v49, %v1886_v48  ;;  %v1915_v14 = vadd.f32 %v1914_v46, %v1890_v49 }
 0x37d   :  { %v1893_v2 = vrot.slane %v1892_v17, 4  ;;  %v1916_v33 = vrot.slane %v1915_v14, 4 }
 0x37f   :  { %v1894_v47 = vmax.f32 %v1892_v17, %v1893_v2  ;;  %v1917_v0 = vmax.f32 %v1915_v14, %v1916_v33 }
 0x381   :  { %v1895_v43 = vrot.slane %v1894_v47, 2  ;;  %v1918_v41 = vrot.slane %v1917_v0, 2 }
 0x383   :  { %v1896_v6 = vmax.f32 %v1894_v47, %v1895_v43  ;;  %v1919_v7 = vmax.f32 %v1917_v0, %v1918_v41 }
 0x385   :  { %v1897_v42 = vrot.slane %v1896_v6, 1  ;;  %v1920_v8 = vrot.slane %v1919_v7, 1 }
 0x387   :  { %v1898_v9 = vmax.f32 %v1896_v6, %v1897_v42  ;;  %v1921_v54 = vmax.f32 %v1919_v7, %v1920_v8 }
 0x389   :  { %vm1899_vm4 = vcmp.eq.f32.partialorder %v1898_v9, -inf  ;;  %vm1922_vm5 = vcmp.eq.f32.partialorder %v1921_v54, -inf }
 0x38a   :  { %v1900_v34 = vsel %vm1899_vm4, 0.0, %v1898_v9  ;;  %v1923_v35 = vsel %vm1922_vm5, 0.0, %v1921_v54 }
 0x38b   :  { %v1901_v37 = vsub.f32 %v1892_v17, %v1900_v34  ;;  %v1924_v11 = vsub.f32 %v1915_v14, %v1923_v35 }
 0x38d   :  { %v1902_v55 = vmul.f32 1.442695, %v1901_v37  ;;  %v1925_v56 = vmul.f32 1.442695, %v1924_v11 }
 0x38f   :  { %2260 = vpow2.f32 %v1902_v55 }
 0x390   :  { %2262 = vpow2.f32 %v1925_v56 }
 0x399   :  { %v2261_v57 = vpop.eup %2260 }
 0x39a   :  { %v2263_v59 = vpop.eup %2262  ;;  %v1904_v60 = vrot.slane %v2261_v57, 4 }
 0x39b   :  { %v1927_v61 = vrot.slane %v2263_v59, 4 }
 0x39c   :  { %v1905_v38 = vadd.f32 %v2261_v57, %v1904_v60 }
 0x39d   :  { %v1928_v62 = vadd.f32 %v2263_v59, %v1927_v61 }
 0x39e   :  { %v1906_v63 = vrot.slane %v1905_v38, 2 }
 0x39f   :  { %v1929_v58 = vrot.slane %v1928_v62, 2 }
 0x3a0   :  { %v1907_v3 = vadd.f32 %v1906_v63, %v1905_v38 }
 0x3a1   :  { %v1930_v4 = vadd.f32 %v1929_v58, %v1928_v62 }
 0x3a2   :  { %v1908_v5 = vrot.slane %v1907_v3, 1 }
 0x3a3   :  { %v1931_v40 = vrot.slane %v1930_v4, 1 }
 0x3a4   :  { %v1909_v18 = vadd.f32 %v1908_v5, %v1907_v3 }
 0x3a5   :  { %v1932_v12 = vadd.f32 %v1931_v40, %v1930_v4 }
 0x3a6   :  { %2264 = vlog2.f32 %v1909_v18 }
 0x3a7   :  { %2266 = vlog2.f32 %v1932_v12 }
 0x3b0   :  { %v2265_v31 = vpop.eup %2264 }
 0x3b1   :  { %v2267_v51 = vpop.eup %2266  ;;  %v1911_v16 = vmul.f32 0.6931472, %v2265_v31 }
 0x3b2   :  { %v1934_v10 = vmul.f32 0.6931472, %v2267_v51 }
 0x3b3   :  { %v1912_v20 = vadd.f32 %v1911_v16, %v1900_v34 }
 0x3b4   :  { %v1935_v53 = vadd.f32 %v1934_v10, %v1923_v35 }
 0x3b6   :  { %v1937_v13 = vsel %vm1936_vm6, %v1912_v20, %v1935_v53 }
 0x3b7   :  { %1938 = vst [vmem:[%s2934_s6] sm:$0x3] %v1937_v13 }

</bundles_post_ra>
